<compile_context>
chip_gen: v7x
topology: tpu7x:2x2x1
jax: 0.10.0
libtpu: 0.0.40
codegen_flags: <defaults>
</compile_context>

<pallas_src>
import functools

import jax
import jax.numpy as jnp
from jax.experimental import pallas as pl
from jax.experimental.pallas import tpu as pltpu

_VMEM_LIMIT = 48 * 1024 * 1024  # explicit scoped-VMEM cap; fits v7x (64 MiB)


# ----------------------------------------------------------------------------
# Pallas kernel 1: 3x3 conv (pad=1, stride in {1,2}) + folded BN + ReLU.
#
# The stride is removed OUTSIDE the kernel by splitting the padded NHWC input
# into s*s phase tensors  ph[p][q] = xpad[:, p::s, q::s, :].  Tap (di, dj)
# then reads a unit-stride, statically-offset slice of one phase, so the
# kernel only does contiguous loads + 9 accumulating (Wo, C) @ (C, tn) dots.
# Grid = (batch, O-tile); output rows are produced by an in-kernel fori loop.
# ----------------------------------------------------------------------------
def _conv3x3_kernel(*refs, s, n_ph, Ho, Wo, taps):
    ph_refs = refs[:n_ph]                         # each (Hph, Wph, C)  bf16
    w_ref = refs[n_ph]                            # (9, C, tn)          bf16
    b_ref = refs[n_ph + 1]                        # (1, tn)             f32
    o_ref = refs[n_ph + 2]                        # (Ho, Wo, tn)

    tn = o_ref.shape[-1]
    bias = b_ref[...]                             # (1, tn) f32

    def row_body(y, carry):
        acc = jnp.zeros((Wo, tn), jnp.float32)
        for t, (di, dj) in enumerate(taps):
            p, a = di % s, di // s
            q, bb = dj % s, dj // s
            row = ph_refs[p * s + q][y + a]       # (Wph, C)  dynamic row load
            lhs = row[bb:bb + Wo, :]              # (Wo, C)   static slice
            acc = acc + jnp.dot(lhs, w_ref[t],
                                preferred_element_type=jnp.float32)
        o_ref[y] = jnp.maximum(acc + bias, 0.0).astype(o_ref.dtype)
        return carry

    jax.lax.fori_loop(0, Ho, row_body, 0)


def conv3x3_bn_relu(x_nhwc, w9, bias, stride, out_dtype=jnp.float32):
    """x: (B, H, W, C);  w9: (9, C, O) bf16 (BN folded);  bias: (1, O) f32."""
    B, H, W, C = x_nhwc.shape
    O = w9.shape[-1]
    s = int(stride)
    Ho = (H + 2 - 3) // s + 1
    Wo = (W + 2 - 3) // s + 1

    xpad = jnp.pad(x_nhwc, ((0, 0), (1, 1), (1, 1), (0, 0))).astype(jnp.bfloat16)
    phases = [xpad[:, p::s, q::s, :] for p in range(s) for q in range(s)]
    taps = tuple((di, dj) for di in range(3) for dj in range(3))

    # generation-friendly output tile (256 wide where possible, 128x MXU min)
    tn = 256 if O % 256 == 0 else (128 if O % 128 == 0 else O)
    grid = (B, O // tn)

    in_specs = [pl.BlockSpec((None,) + ph.shape[1:],
                             lambda b, j: (b, 0, 0, 0)) for ph in phases]
    in_specs += [
        pl.BlockSpec((9, C, tn), lambda b, j: (0, 0, j)),
        pl.BlockSpec((1, tn), lambda b, j: (0, j)),
    ]
    out_spec = pl.BlockSpec((None, Ho, Wo, tn), lambda b, j: (b, 0, 0, j))

    kernel = functools.partial(_conv3x3_kernel, s=s, n_ph=s * s,
                               Ho=Ho, Wo=Wo, taps=taps)
    # TODO(synk): for very large images, row-block the output with a halo DMA
    #             instead of keeping the whole phase image resident per step.
    return pl.pallas_call(
        kernel,
        out_shape=jax.ShapeDtypeStruct((B, Ho, Wo, O), out_dtype),
        grid=grid,
        in_specs=in_specs,
        out_specs=out_spec,
        compiler_params=pltpu.CompilerParams(
            dimension_semantics=("parallel", "parallel"),
            vmem_limit_bytes=_VMEM_LIMIT),
    )(*phases, w9, bias)


# ----------------------------------------------------------------------------
# Pallas kernel 2: fused spatial encoder.
#   Per row-tile of (B, H*W):  relu(xyz@Wxyz + ft1@Wft1 + b1) -> relu(.@W2+b2)
#   -> relu(.@W3+b3) -> relu(.@W4+b4), stored once, with the per-image global
#   max accumulated in a VMEM scratch and flushed on the last row-tile.
# ----------------------------------------------------------------------------
def _encoder_kernel(xyz_ref, ft1_ref, wxyz_ref, wft1_ref, w2_ref, w3_ref,
                    w4_ref, b1_ref, b2_ref, b3_ref, b4_ref,
                    f_ref, g_ref, gmax_scr):
    r = pl.program_id(1)

    h = jnp.dot(xyz_ref[...], wxyz_ref[...], preferred_element_type=jnp.float32)
    h = h + jnp.dot(ft1_ref[...], wft1_ref[...],
                    preferred_element_type=jnp.float32)
    h = jnp.maximum(h + b1_ref[...], 0.0)
    for w_ref, b_ref in ((w2_ref, b2_ref), (w3_ref, b3_ref), (w4_ref, b4_ref)):
        h = jnp.dot(h.astype(jnp.bfloat16), w_ref[...],
                    preferred_element_type=jnp.float32)
        h = jnp.maximum(h + b_ref[...], 0.0)
    f_ref[...] = h.astype(f_ref.dtype)

    tile_max = jnp.max(h, axis=0, keepdims=True)          # (1, 512)

    @pl.when(r == 0)
    def _():
        gmax_scr[...] = jnp.full(gmax_scr.shape, -jnp.inf, gmax_scr.dtype)

    gmax_scr[...] = jnp.maximum(gmax_scr[...], tile_max)

    @pl.when(r == pl.num_programs(1) - 1)
    def _():
        g_ref[...] = gmax_scr[...]


def spatial_encoder(ft_1, rs_xyz, pn):
    """ft_1: (B, H, W, 1024) f32, rs_xyz: (B, H, W, 3) f32 -> (f, g)."""
    B, H, W, C = ft_1.shape
    L = H * W
    ft1_rows = ft_1.reshape(B, L, C).astype(jnp.bfloat16)
    xyz_rows = rs_xyz.reshape(B, L, 3).astype(jnp.bfloat16)

    tm = L if L <= 256 else 256
    Lp = -(-L // tm) * tm
    if Lp != L:  # edge-replicate pad: duplicated rows do not change the max
        ft1_rows = jnp.pad(ft1_rows, ((0, 0), (0, Lp - L), (0, 0)), mode="edge")
        xyz_rows = jnp.pad(xyz_rows, ((0, 0), (0, Lp - L), (0, 0)), mode="edge")
    nR = Lp // tm
    Co = pn["w4"].shape[1]

    in_specs = [
        pl.BlockSpec((None, tm, 3), lambda b, r: (b, r, 0)),
        pl.BlockSpec((None, tm, C), lambda b, r: (b, r, 0)),
    ]
    for name in ("w_xyz", "w_ft1", "w2", "w3", "w4", "b1", "b2", "b3", "b4"):
        in_specs.append(pl.BlockSpec(pn[name].shape, lambda b, r: (0, 0)))

    out_shape = (jax.ShapeDtypeStruct((B, Lp, Co), jnp.float32),
                 jax.ShapeDtypeStruct((B, 1, Co), jnp.float32))
    out_specs = (pl.BlockSpec((None, tm, Co), lambda b, r: (b, r, 0)),
                 pl.BlockSpec((None, 1, Co), lambda b, r: (b, 0, 0)))

    f, g = pl.pallas_call(
        _encoder_kernel,
        out_shape=out_shape,
        grid=(B, nR),
        in_specs=in_specs,
        out_specs=out_specs,
        scratch_shapes=[pltpu.VMEM((1, Co), jnp.float32)],
        compiler_params=pltpu.CompilerParams(
            dimension_semantics=("parallel", "arbitrary"),
            vmem_limit_bytes=_VMEM_LIMIT),
    )(xyz_rows, ft1_rows, pn["w_xyz"], pn["w_ft1"], pn["w2"], pn["w3"],
      pn["w4"], pn["b1"], pn["b2"], pn["b3"], pn["b4"])

    f = f[:, :L, :].reshape(B, H, W, Co)
    return f, g[:, 0, :]


# ----------------------------------------------------------------------------
# Parameters (deterministic synthetic init; shapes from XYZNet.__init__).
# Weights are BN-folded / split / cast to bf16 ONCE here, not per forward.
# ----------------------------------------------------------------------------
def init_params(key, in_channel=6, pn_conv_channels=(128, 128, 256, 512)):
    res_dims = [(in_channel, 64), (64, 128), (128, 1024)]   # -> 1024 channels
    assert len(pn_conv_channels) == 4

    keys = jax.random.split(key, 32)
    ki = iter(keys)

    def nrm(k, shape, scale=0.05):
        return scale * jax.random.normal(k, shape, jnp.float32)

    eps = 1e-5
    res = []
    for (ci, co) in res_dims:
        w = nrm(next(ki), (3, 3, ci, co))                    # HWIO
        gamma = 1.0 + 0.01 * jax.random.normal(next(ki), (co,), jnp.float32)
        beta = 0.01 * jax.random.normal(next(ki), (co,), jnp.float32)
        mean = jnp.zeros((co,), jnp.float32)
        var = jnp.ones((co,), jnp.float32)
        scale = gamma / jnp.sqrt(var + eps)                  # general BN fold
        bias = beta - mean * scale
        w9 = (w * scale[None, None, None, :]).reshape(9, ci, co)
        res.append({"w9": w9.astype(jnp.bfloat16),
                    "b": bias.reshape(1, co)})

    # point-wise net over cat([xyz(3), ft_1(1024)]); first weight pre-split
    c_prev = 1024 + 3
    pw, pb = [], []
    for co in pn_conv_channels:
        pw.append(nrm(next(ki), (c_prev, co)))
        pb.append(0.01 * jax.random.normal(next(ki), (co,), jnp.float32))
        c_prev = co
    pn = {
        "w_xyz": pw[0][:3].astype(jnp.bfloat16),
        "w_ft1": pw[0][3:].astype(jnp.bfloat16),
        "w2": pw[1].astype(jnp.bfloat16),
        "w3": pw[2].astype(jnp.bfloat16),
        "w4": pw[3].astype(jnp.bfloat16),
        "b1": pb[0].reshape(1, -1),
        "b2": pb[1].reshape(1, -1),
        "b3": pb[2].reshape(1, -1),
        "b4": pb[3].reshape(1, -1),
    }
    return {"res": res, "pn": pn}


# ----------------------------------------------------------------------------
# XYZNet forward (public interface NCHW, internal NHWC).
# ----------------------------------------------------------------------------
def xyznet_forward(params, xyzrgb, *, strides=(2, 2, 1)):
    x = jnp.transpose(xyzrgb, (0, 2, 3, 1))                  # NCHW -> NHWC once

    # ft_1 = resnet_extractor(xyzrgb): 3x [3x3 conv + BN + ReLU] (reconstructed)
    h = x
    n_res = len(params["res"])
    for li, (lp, s) in enumerate(zip(params["res"], strides)):
        out_dt = jnp.float32 if li == n_res - 1 else jnp.bfloat16
        h = conv3x3_bn_relu(h, lp["w9"], lp["b"], s, out_dtype=out_dt)
    ft_1 = h                                                 # (B, H', W', 1024)
    B, Hh, Ww, _ = ft_1.shape

    # rs_xyz = F.interpolate(xyzrgb[:, :3], (H', W'), mode='nearest')
    Hin, Win = x.shape[1], x.shape[2]
    rows = (jnp.arange(Hh) * Hin // Hh).astype(jnp.int32)
    cols = (jnp.arange(Ww) * Win // Ww).astype(jnp.int32)
    rs_xyz = jnp.take(jnp.take(x[..., :3], rows, axis=1), cols, axis=2)

    # ft_2 = spatial_encoder(ft_1, rs_xyz): fused 1x1 chain + global max
    f, g = spatial_encoder(ft_1, rs_xyz, params["pn"])       # (B,H',W',512),(B,512)
    g_map = jnp.broadcast_to(g[:, None, None, :], (B, Hh, Ww, g.shape[-1]))
    ft_2 = jnp.concatenate([f, g_map], axis=-1)              # (B, H', W', 1024)

    ft_3 = jnp.concatenate([ft_1, ft_2], axis=-1)            # (B, H', W', 2048)
    return (jnp.transpose(ft_3, (0, 3, 1, 2)),               # back to NCHW
            jnp.transpose(rs_xyz, (0, 3, 1, 2)))


if __name__ == "__main__":
    key = jax.random.PRNGKey(0)
    k_in, k_par = jax.random.split(key)

    # xyzrgb: 6 channels (xyz + rgb) as used when instantiating XYZNet(6).
    x = jax.random.normal(k_in, (2, 6, 16, 16), jnp.float32)
    params = init_params(k_par, in_channel=6)

    fwd = jax.jit(xyznet_forward, static_argnames=("strides",))
    ft_3, rs_xyz = fwd(params, x, strides=(2, 2, 1))
    jax.block_until_ready((ft_3, rs_xyz))

    assert ft_3.shape == (2, 2048, 4, 4), ft_3.shape
    assert rs_xyz.shape == (2, 3, 4, 4), rs_xyz.shape
    assert bool(jnp.all(jnp.isfinite(ft_3))) and bool(jnp.all(jnp.isfinite(rs_xyz)))
    print("KERNEL_OK")
</pallas_src>

<mosaic_0001>
module attributes {stable_mosaic.version = 11 : i64} {
  func.func @_conv3x3_kernel(%arg0: i32, %arg1: i32, %arg2: memref<1x9x9x6xbf16, #tpu.memory_space<vmem>>, %arg3: memref<1x9x9x6xbf16, #tpu.memory_space<vmem>>, %arg4: memref<1x9x9x6xbf16, #tpu.memory_space<vmem>>, %arg5: memref<1x9x9x6xbf16, #tpu.memory_space<vmem>>, %arg6: memref<9x6x64xbf16, #tpu.memory_space<vmem>>, %arg7: memref<1x64xf32, #tpu.memory_space<vmem>>, %arg8: memref<1x8x8x64xbf16, #tpu.memory_space<vmem>>) attributes {dimension_semantics = [#tpu.dimension_semantics<parallel>, #tpu.dimension_semantics<parallel>], iteration_bounds = array<i64: 2, 1>, scalar_prefetch = 0 : i64, scratch_operands = 0 : i64, tpu.core_type = #tpu.core_type<tc>, window_params = [{transform_indices = @transform_0, window_bounds = array<i64: 1, 9, 9, 6>}, {transform_indices = @transform_1, window_bounds = array<i64: 1, 9, 9, 6>}, {transform_indices = @transform_2, window_bounds = array<i64: 1, 9, 9, 6>}, {transform_indices = @transform_3, window_bounds = array<i64: 1, 9, 9, 6>}, {transform_indices = @transform_4, window_bounds = array<i64: 9, 6, 64>}, {transform_indices = @transform_5, window_bounds = array<i64: 1, 64>}, {transform_indices = @transform_6, window_bounds = array<i64: 1, 8, 8, 64>}]} {
    %c0 = arith.constant 0 : index
    %c0_0 = arith.constant 0 : index
    %0 = vector.load %arg7[%c0, %c0_0] : memref<1x64xf32, #tpu.memory_space<vmem>>, vector<1x64xf32>
    %c0_i32 = arith.constant 0 : i32
    %c8_i32 = arith.constant 8 : i32
    %1 = arith.addi %c0_i32, %c8_i32 : i32
    %c1_i32 = arith.constant 1 : i32
    scf.for %arg9 = %c0_i32 to %1 step %c1_i32  : i32 {
      %cst = arith.constant 0.000000e+00 : f32
      %2 = vector.broadcast %cst : f32 to vector<8x64xf32>
      %c0_i32_2 = arith.constant 0 : i32
      %3 = arith.addi %arg9, %c0_i32_2 : i32
      %c0_3 = arith.constant 0 : index
      %4 = arith.index_cast %3 : i32 to index
      %c0_4 = arith.constant 0 : index
      %c0_5 = arith.constant 0 : index
      %5 = vector.load %arg2[%c0_3, %4, %c0_4, %c0_5] : memref<1x9x9x6xbf16, #tpu.memory_space<vmem>>, vector<1x1x9x6xbf16>
      %6 = vector.shape_cast %5 : vector<1x1x9x6xbf16> to vector<9x6xbf16>
      %7 = vector.extract_strided_slice %6 {offsets = [0, 0], sizes = [8, 6], strides = [1, 1]} : vector<9x6xbf16> to vector<8x6xbf16>
      %c0_6 = arith.constant 0 : index
      %c0_7 = arith.constant 0 : index
      %c0_8 = arith.constant 0 : index
      %8 = vector.load %arg6[%c0_6, %c0_7, %c0_8] : memref<9x6x64xbf16, #tpu.memory_space<vmem>>, vector<1x6x64xbf16>
      %9 = vector.shape_cast %8 : vector<1x6x64xbf16> to vector<6x64xbf16>
      %cst_9 = arith.constant dense<0.000000e+00> : vector<8x64xf32>
      %10 = tpu.matmul %7, %9, %cst_9 {dimension_numbers = #tpu.dot_dimension_numbers<[1], [0], [0], [1], [0, 0, 1, 1], [], []>} : vector<8x6xbf16>, vector<6x64xbf16>, vector<8x64xf32> -> vector<8x64xf32>
      %11 = arith.addf %2, %10 : vector<8x64xf32>
      %c0_i32_10 = arith.constant 0 : i32
      %12 = arith.addi %arg9, %c0_i32_10 : i32
      %c0_11 = arith.constant 0 : index
      %13 = arith.index_cast %12 : i32 to index
      %c0_12 = arith.constant 0 : index
      %c0_13 = arith.constant 0 : index
      %14 = vector.load %arg3[%c0_11, %13, %c0_12, %c0_13] : memref<1x9x9x6xbf16, #tpu.memory_space<vmem>>, vector<1x1x9x6xbf16>
      %15 = vector.shape_cast %14 : vector<1x1x9x6xbf16> to vector<9x6xbf16>
      %16 = vector.extract_strided_slice %15 {offsets = [0, 0], sizes = [8, 6], strides = [1, 1]} : vector<9x6xbf16> to vector<8x6xbf16>
      %c1 = arith.constant 1 : index
      %c0_14 = arith.constant 0 : index
      %c0_15 = arith.constant 0 : index
      %17 = vector.load %arg6[%c1, %c0_14, %c0_15] : memref<9x6x64xbf16, #tpu.memory_space<vmem>>, vector<1x6x64xbf16>
      %18 = vector.shape_cast %17 : vector<1x6x64xbf16> to vector<6x64xbf16>
      %cst_16 = arith.constant dense<0.000000e+00> : vector<8x64xf32>
      %19 = tpu.matmul %16, %18, %cst_16 {dimension_numbers = #tpu.dot_dimension_numbers<[1], [0], [0], [1], [0, 0, 1, 1], [], []>} : vector<8x6xbf16>, vector<6x64xbf16>, vector<8x64xf32> -> vector<8x64xf32>
      %20 = arith.addf %11, %19 : vector<8x64xf32>
      %c0_i32_17 = arith.constant 0 : i32
      %21 = arith.addi %arg9, %c0_i32_17 : i32
      %c0_18 = arith.constant 0 : index
      %22 = arith.index_cast %21 : i32 to index
      %c0_19 = arith.constant 0 : index
      %c0_20 = arith.constant 0 : index
      %23 = vector.load %arg2[%c0_18, %22, %c0_19, %c0_20] : memref<1x9x9x6xbf16, #tpu.memory_space<vmem>>, vector<1x1x9x6xbf16>
      %24 = vector.shape_cast %23 : vector<1x1x9x6xbf16> to vector<9x6xbf16>
      %25 = vector.extract_strided_slice %24 {offsets = [1, 0], sizes = [8, 6], strides = [1, 1]} : vector<9x6xbf16> to vector<8x6xbf16>
      %c2 = arith.constant 2 : index
      %c0_21 = arith.constant 0 : index
      %c0_22 = arith.constant 0 : index
      %26 = vector.load %arg6[%c2, %c0_21, %c0_22] : memref<9x6x64xbf16, #tpu.memory_space<vmem>>, vector<1x6x64xbf16>
      %27 = vector.shape_cast %26 : vector<1x6x64xbf16> to vector<6x64xbf16>
      %cst_23 = arith.constant dense<0.000000e+00> : vector<8x64xf32>
      %28 = tpu.matmul %25, %27, %cst_23 {dimension_numbers = #tpu.dot_dimension_numbers<[1], [0], [0], [1], [0, 0, 1, 1], [], []>} : vector<8x6xbf16>, vector<6x64xbf16>, vector<8x64xf32> -> vector<8x64xf32>
      %29 = arith.addf %20, %28 : vector<8x64xf32>
      %c0_i32_24 = arith.constant 0 : i32
      %30 = arith.addi %arg9, %c0_i32_24 : i32
      %c0_25 = arith.constant 0 : index
      %31 = arith.index_cast %30 : i32 to index
      %c0_26 = arith.constant 0 : index
      %c0_27 = arith.constant 0 : index
      %32 = vector.load %arg4[%c0_25, %31, %c0_26, %c0_27] : memref<1x9x9x6xbf16, #tpu.memory_space<vmem>>, vector<1x1x9x6xbf16>
      %33 = vector.shape_cast %32 : vector<1x1x9x6xbf16> to vector<9x6xbf16>
      %34 = vector.extract_strided_slice %33 {offsets = [0, 0], sizes = [8, 6], strides = [1, 1]} : vector<9x6xbf16> to vector<8x6xbf16>
      %c3 = arith.constant 3 : index
      %c0_28 = arith.constant 0 : index
      %c0_29 = arith.constant 0 : index
      %35 = vector.load %arg6[%c3, %c0_28, %c0_29] : memref<9x6x64xbf16, #tpu.memory_space<vmem>>, vector<1x6x64xbf16>
      %36 = vector.shape_cast %35 : vector<1x6x64xbf16> to vector<6x64xbf16>
      %cst_30 = arith.constant dense<0.000000e+00> : vector<8x64xf32>
      %37 = tpu.matmul %34, %36, %cst_30 {dimension_numbers = #tpu.dot_dimension_numbers<[1], [0], [0], [1], [0, 0, 1, 1], [], []>} : vector<8x6xbf16>, vector<6x64xbf16>, vector<8x64xf32> -> vector<8x64xf32>
      %38 = arith.addf %29, %37 : vector<8x64xf32>
      %c0_i32_31 = arith.constant 0 : i32
      %39 = arith.addi %arg9, %c0_i32_31 : i32
      %c0_32 = arith.constant 0 : index
      %40 = arith.index_cast %39 : i32 to index
      %c0_33 = arith.constant 0 : index
      %c0_34 = arith.constant 0 : index
      %41 = vector.load %arg5[%c0_32, %40, %c0_33, %c0_34] : memref<1x9x9x6xbf16, #tpu.memory_space<vmem>>, vector<1x1x9x6xbf16>
      %42 = vector.shape_cast %41 : vector<1x1x9x6xbf16> to vector<9x6xbf16>
      %43 = vector.extract_strided_slice %42 {offsets = [0, 0], sizes = [8, 6], strides = [1, 1]} : vector<9x6xbf16> to vector<8x6xbf16>
      %c4 = arith.constant 4 : index
      %c0_35 = arith.constant 0 : index
      %c0_36 = arith.constant 0 : index
      %44 = vector.load %arg6[%c4, %c0_35, %c0_36] : memref<9x6x64xbf16, #tpu.memory_space<vmem>>, vector<1x6x64xbf16>
      %45 = vector.shape_cast %44 : vector<1x6x64xbf16> to vector<6x64xbf16>
      %cst_37 = arith.constant dense<0.000000e+00> : vector<8x64xf32>
      %46 = tpu.matmul %43, %45, %cst_37 {dimension_numbers = #tpu.dot_dimension_numbers<[1], [0], [0], [1], [0, 0, 1, 1], [], []>} : vector<8x6xbf16>, vector<6x64xbf16>, vector<8x64xf32> -> vector<8x64xf32>
      %47 = arith.addf %38, %46 : vector<8x64xf32>
      %c0_i32_38 = arith.constant 0 : i32
      %48 = arith.addi %arg9, %c0_i32_38 : i32
      %c0_39 = arith.constant 0 : index
      %49 = arith.index_cast %48 : i32 to index
      %c0_40 = arith.constant 0 : index
      %c0_41 = arith.constant 0 : index
      %50 = vector.load %arg4[%c0_39, %49, %c0_40, %c0_41] : memref<1x9x9x6xbf16, #tpu.memory_space<vmem>>, vector<1x1x9x6xbf16>
      %51 = vector.shape_cast %50 : vector<1x1x9x6xbf16> to vector<9x6xbf16>
      %52 = vector.extract_strided_slice %51 {offsets = [1, 0], sizes = [8, 6], strides = [1, 1]} : vector<9x6xbf16> to vector<8x6xbf16>
      %c5 = arith.constant 5 : index
      %c0_42 = arith.constant 0 : index
      %c0_43 = arith.constant 0 : index
      %53 = vector.load %arg6[%c5, %c0_42, %c0_43] : memref<9x6x64xbf16, #tpu.memory_space<vmem>>, vector<1x6x64xbf16>
      %54 = vector.shape_cast %53 : vector<1x6x64xbf16> to vector<6x64xbf16>
      %cst_44 = arith.constant dense<0.000000e+00> : vector<8x64xf32>
      %55 = tpu.matmul %52, %54, %cst_44 {dimension_numbers = #tpu.dot_dimension_numbers<[1], [0], [0], [1], [0, 0, 1, 1], [], []>} : vector<8x6xbf16>, vector<6x64xbf16>, vector<8x64xf32> -> vector<8x64xf32>
      %56 = arith.addf %47, %55 : vector<8x64xf32>
      %c1_i32_45 = arith.constant 1 : i32
      %57 = arith.addi %arg9, %c1_i32_45 : i32
      %c0_46 = arith.constant 0 : index
      %58 = arith.index_cast %57 : i32 to index
      %c0_47 = arith.constant 0 : index
      %c0_48 = arith.constant 0 : index
      %59 = vector.load %arg2[%c0_46, %58, %c0_47, %c0_48] : memref<1x9x9x6xbf16, #tpu.memory_space<vmem>>, vector<1x1x9x6xbf16>
      %60 = vector.shape_cast %59 : vector<1x1x9x6xbf16> to vector<9x6xbf16>
      %61 = vector.extract_strided_slice %60 {offsets = [0, 0], sizes = [8, 6], strides = [1, 1]} : vector<9x6xbf16> to vector<8x6xbf16>
      %c6 = arith.constant 6 : index
      %c0_49 = arith.constant 0 : index
      %c0_50 = arith.constant 0 : index
      %62 = vector.load %arg6[%c6, %c0_49, %c0_50] : memref<9x6x64xbf16, #tpu.memory_space<vmem>>, vector<1x6x64xbf16>
      %63 = vector.shape_cast %62 : vector<1x6x64xbf16> to vector<6x64xbf16>
      %cst_51 = arith.constant dense<0.000000e+00> : vector<8x64xf32>
      %64 = tpu.matmul %61, %63, %cst_51 {dimension_numbers = #tpu.dot_dimension_numbers<[1], [0], [0], [1], [0, 0, 1, 1], [], []>} : vector<8x6xbf16>, vector<6x64xbf16>, vector<8x64xf32> -> vector<8x64xf32>
      %65 = arith.addf %56, %64 : vector<8x64xf32>
      %c1_i32_52 = arith.constant 1 : i32
      %66 = arith.addi %arg9, %c1_i32_52 : i32
      %c0_53 = arith.constant 0 : index
      %67 = arith.index_cast %66 : i32 to index
      %c0_54 = arith.constant 0 : index
      %c0_55 = arith.constant 0 : index
      %68 = vector.load %arg3[%c0_53, %67, %c0_54, %c0_55] : memref<1x9x9x6xbf16, #tpu.memory_space<vmem>>, vector<1x1x9x6xbf16>
      %69 = vector.shape_cast %68 : vector<1x1x9x6xbf16> to vector<9x6xbf16>
      %70 = vector.extract_strided_slice %69 {offsets = [0, 0], sizes = [8, 6], strides = [1, 1]} : vector<9x6xbf16> to vector<8x6xbf16>
      %c7 = arith.constant 7 : index
      %c0_56 = arith.constant 0 : index
      %c0_57 = arith.constant 0 : index
      %71 = vector.load %arg6[%c7, %c0_56, %c0_57] : memref<9x6x64xbf16, #tpu.memory_space<vmem>>, vector<1x6x64xbf16>
      %72 = vector.shape_cast %71 : vector<1x6x64xbf16> to vector<6x64xbf16>
      %cst_58 = arith.constant dense<0.000000e+00> : vector<8x64xf32>
      %73 = tpu.matmul %70, %72, %cst_58 {dimension_numbers = #tpu.dot_dimension_numbers<[1], [0], [0], [1], [0, 0, 1, 1], [], []>} : vector<8x6xbf16>, vector<6x64xbf16>, vector<8x64xf32> -> vector<8x64xf32>
      %74 = arith.addf %65, %73 : vector<8x64xf32>
      %c1_i32_59 = arith.constant 1 : i32
      %75 = arith.addi %arg9, %c1_i32_59 : i32
      %c0_60 = arith.constant 0 : index
      %76 = arith.index_cast %75 : i32 to index
      %c0_61 = arith.constant 0 : index
      %c0_62 = arith.constant 0 : index
      %77 = vector.load %arg2[%c0_60, %76, %c0_61, %c0_62] : memref<1x9x9x6xbf16, #tpu.memory_space<vmem>>, vector<1x1x9x6xbf16>
      %78 = vector.shape_cast %77 : vector<1x1x9x6xbf16> to vector<9x6xbf16>
      %79 = vector.extract_strided_slice %78 {offsets = [1, 0], sizes = [8, 6], strides = [1, 1]} : vector<9x6xbf16> to vector<8x6xbf16>
      %c8 = arith.constant 8 : index
      %c0_63 = arith.constant 0 : index
      %c0_64 = arith.constant 0 : index
      %80 = vector.load %arg6[%c8, %c0_63, %c0_64] : memref<9x6x64xbf16, #tpu.memory_space<vmem>>, vector<1x6x64xbf16>
      %81 = vector.shape_cast %80 : vector<1x6x64xbf16> to vector<6x64xbf16>
      %cst_65 = arith.constant dense<0.000000e+00> : vector<8x64xf32>
      %82 = tpu.matmul %79, %81, %cst_65 {dimension_numbers = #tpu.dot_dimension_numbers<[1], [0], [0], [1], [0, 0, 1, 1], [], []>} : vector<8x6xbf16>, vector<6x64xbf16>, vector<8x64xf32> -> vector<8x64xf32>
      %83 = arith.addf %74, %82 : vector<8x64xf32>
      %84 = vector.broadcast %0 : vector<1x64xf32> to vector<8x64xf32>
      %85 = arith.addf %83, %84 : vector<8x64xf32>
      %cst_66 = arith.constant 0.000000e+00 : f32
      %86 = vector.broadcast %cst_66 : f32 to vector<8x64xf32>
      %87 = arith.maximumf %85, %86 : vector<8x64xf32>
      %88 = arith.truncf %87 : vector<8x64xf32> to vector<8x64xbf16>
      %c0_67 = arith.constant 0 : index
      %89 = arith.index_cast %arg9 : i32 to index
      %c0_68 = arith.constant 0 : index
      %c0_69 = arith.constant 0 : index
      %90 = vector.load %arg8[%c0_67, %89, %c0_68, %c0_69] : memref<1x8x8x64xbf16, #tpu.memory_space<vmem>>, vector<1x1x8x64xbf16>
      %91 = vector.shape_cast %90 : vector<1x1x8x64xbf16> to vector<8x64xbf16>
      %92 = vector.shape_cast %88 : vector<8x64xbf16> to vector<1x1x8x64xbf16>
      tpu.vector_store %arg8[%c0_67, %89, %c0_68, %c0_69], %92 {strides = array<i32>} : memref<1x8x8x64xbf16, #tpu.memory_space<vmem>>, vector<1x1x8x64xbf16>,
    }
    %c8_i32_1 = arith.constant 8 : i32
    return
  }
  func.func @transform_0(%arg0: i32, %arg1: i32) -> (i32, i32, i32, i32) {
    %c0_i32 = arith.constant 0 : i32
    %c0_i32_0 = arith.constant 0 : i32
    %c0_i32_1 = arith.constant 0 : i32
    %c0_i32_2 = arith.constant 0 : i32
    return %arg0, %c0_i32, %c0_i32_0, %c0_i32_1 : i32, i32, i32, i32
  }
  func.func @transform_1(%arg0: i32, %arg1: i32) -> (i32, i32, i32, i32) {
    %c0_i32 = arith.constant 0 : i32
    %c0_i32_0 = arith.constant 0 : i32
    %c0_i32_1 = arith.constant 0 : i32
    %c0_i32_2 = arith.constant 0 : i32
    return %arg0, %c0_i32, %c0_i32_0, %c0_i32_1 : i32, i32, i32, i32
  }
  func.func @transform_2(%arg0: i32, %arg1: i32) -> (i32, i32, i32, i32) {
    %c0_i32 = arith.constant 0 : i32
    %c0_i32_0 = arith.constant 0 : i32
    %c0_i32_1 = arith.constant 0 : i32
    %c0_i32_2 = arith.constant 0 : i32
    return %arg0, %c0_i32, %c0_i32_0, %c0_i32_1 : i32, i32, i32, i32
  }
  func.func @transform_3(%arg0: i32, %arg1: i32) -> (i32, i32, i32, i32) {
    %c0_i32 = arith.constant 0 : i32
    %c0_i32_0 = arith.constant 0 : i32
    %c0_i32_1 = arith.constant 0 : i32
    %c0_i32_2 = arith.constant 0 : i32
    return %arg0, %c0_i32, %c0_i32_0, %c0_i32_1 : i32, i32, i32, i32
  }
  func.func @transform_4(%arg0: i32, %arg1: i32) -> (i32, i32, i32) {
    %c0_i32 = arith.constant 0 : i32
    %c0_i32_0 = arith.constant 0 : i32
    %c0_i32_1 = arith.constant 0 : i32
    return %c0_i32, %c0_i32_0, %arg1 : i32, i32, i32
  }
  func.func @transform_5(%arg0: i32, %arg1: i32) -> (i32, i32) {
    %c0_i32 = arith.constant 0 : i32
    %c0_i32_0 = arith.constant 0 : i32
    return %c0_i32, %arg1 : i32, i32
  }
  func.func @transform_6(%arg0: i32, %arg1: i32) -> (i32, i32, i32, i32) {
    %c0_i32 = arith.constant 0 : i32
    %c0_i32_0 = arith.constant 0 : i32
    %c0_i32_1 = arith.constant 0 : i32
    return %arg0, %c0_i32, %c0_i32_0, %arg1 : i32, i32, i32, i32
  }
}

module attributes {stable_mosaic.version = 11 : i64} {
  func.func @_conv3x3_kernel(%arg0: i32, %arg1: i32, %arg2: memref<1x5x5x64xbf16, #tpu.memory_space<vmem>>, %arg3: memref<1x5x5x64xbf16, #tpu.memory_space<vmem>>, %arg4: memref<1x5x5x64xbf16, #tpu.memory_space<vmem>>, %arg5: memref<1x5x5x64xbf16, #tpu.memory_space<vmem>>, %arg6: memref<9x64x128xbf16, #tpu.memory_space<vmem>>, %arg7: memref<1x128xf32, #tpu.memory_space<vmem>>, %arg8: memref<1x4x4x128xbf16, #tpu.memory_space<vmem>>) attributes {dimension_semantics = [#tpu.dimension_semantics<parallel>, #tpu.dimension_semantics<parallel>], iteration_bounds = array<i64: 2, 1>, scalar_prefetch = 0 : i64, scratch_operands = 0 : i64, tpu.core_type = #tpu.core_type<tc>, window_params = [{transform_indices = @transform_0, window_bounds = array<i64: 1, 5, 5, 64>}, {transform_indices = @transform_1, window_bounds = array<i64: 1, 5, 5, 64>}, {transform_indices = @transform_2, window_bounds = array<i64: 1, 5, 5, 64>}, {transform_indices = @transform_3, window_bounds = array<i64: 1, 5, 5, 64>}, {transform_indices = @transform_4, window_bounds = array<i64: 9, 64, 128>}, {transform_indices = @transform_5, window_bounds = array<i64: 1, 128>}, {transform_indices = @transform_6, window_bounds = array<i64: 1, 4, 4, 128>}]} {
    %c0 = arith.constant 0 : index
    %c0_0 = arith.constant 0 : index
    %0 = vector.load %arg7[%c0, %c0_0] : memref<1x128xf32, #tpu.memory_space<vmem>>, vector<1x128xf32>
    %c0_i32 = arith.constant 0 : i32
    %c4_i32 = arith.constant 4 : i32
    %1 = arith.addi %c0_i32, %c4_i32 : i32
    %c1_i32 = arith.constant 1 : i32
    scf.for %arg9 = %c0_i32 to %1 step %c1_i32  : i32 {
      %cst = arith.constant 0.000000e+00 : f32
      %2 = vector.broadcast %cst : f32 to vector<4x128xf32>
      %c0_i32_2 = arith.constant 0 : i32
      %3 = arith.addi %arg9, %c0_i32_2 : i32
      %c0_3 = arith.constant 0 : index
      %4 = arith.index_cast %3 : i32 to index
      %c0_4 = arith.constant 0 : index
      %c0_5 = arith.constant 0 : index
      %5 = vector.load %arg2[%c0_3, %4, %c0_4, %c0_5] : memref<1x5x5x64xbf16, #tpu.memory_space<vmem>>, vector<1x1x5x64xbf16>
      %6 = vector.shape_cast %5 : vector<1x1x5x64xbf16> to vector<5x64xbf16>
      %7 = vector.extract_strided_slice %6 {offsets = [0, 0], sizes = [4, 64], strides = [1, 1]} : vector<5x64xbf16> to vector<4x64xbf16>
      %c0_6 = arith.constant 0 : index
      %c0_7 = arith.constant 0 : index
      %c0_8 = arith.constant 0 : index
      %8 = vector.load %arg6[%c0_6, %c0_7, %c0_8] : memref<9x64x128xbf16, #tpu.memory_space<vmem>>, vector<1x64x128xbf16>
      %9 = vector.shape_cast %8 : vector<1x64x128xbf16> to vector<64x128xbf16>
      %cst_9 = arith.constant dense<0.000000e+00> : vector<4x128xf32>
      %10 = tpu.matmul %7, %9, %cst_9 {dimension_numbers = #tpu.dot_dimension_numbers<[1], [0], [0], [1], [0, 0, 1, 1], [], []>} : vector<4x64xbf16>, vector<64x128xbf16>, vector<4x128xf32> -> vector<4x128xf32>
      %11 = arith.addf %2, %10 : vector<4x128xf32>
      %c0_i32_10 = arith.constant 0 : i32
      %12 = arith.addi %arg9, %c0_i32_10 : i32
      %c0_11 = arith.constant 0 : index
      %13 = arith.index_cast %12 : i32 to index
      %c0_12 = arith.constant 0 : index
      %c0_13 = arith.constant 0 : index
      %14 = vector.load %arg3[%c0_11, %13, %c0_12, %c0_13] : memref<1x5x5x64xbf16, #tpu.memory_space<vmem>>, vector<1x1x5x64xbf16>
      %15 = vector.shape_cast %14 : vector<1x1x5x64xbf16> to vector<5x64xbf16>
      %16 = vector.extract_strided_slice %15 {offsets = [0, 0], sizes = [4, 64], strides = [1, 1]} : vector<5x64xbf16> to vector<4x64xbf16>
      %c1 = arith.constant 1 : index
      %c0_14 = arith.constant 0 : index
      %c0_15 = arith.constant 0 : index
      %17 = vector.load %arg6[%c1, %c0_14, %c0_15] : memref<9x64x128xbf16, #tpu.memory_space<vmem>>, vector<1x64x128xbf16>
      %18 = vector.shape_cast %17 : vector<1x64x128xbf16> to vector<64x128xbf16>
      %cst_16 = arith.constant dense<0.000000e+00> : vector<4x128xf32>
      %19 = tpu.matmul %16, %18, %cst_16 {dimension_numbers = #tpu.dot_dimension_numbers<[1], [0], [0], [1], [0, 0, 1, 1], [], []>} : vector<4x64xbf16>, vector<64x128xbf16>, vector<4x128xf32> -> vector<4x128xf32>
      %20 = arith.addf %11, %19 : vector<4x128xf32>
      %c0_i32_17 = arith.constant 0 : i32
      %21 = arith.addi %arg9, %c0_i32_17 : i32
      %c0_18 = arith.constant 0 : index
      %22 = arith.index_cast %21 : i32 to index
      %c0_19 = arith.constant 0 : index
      %c0_20 = arith.constant 0 : index
      %23 = vector.load %arg2[%c0_18, %22, %c0_19, %c0_20] : memref<1x5x5x64xbf16, #tpu.memory_space<vmem>>, vector<1x1x5x64xbf16>
      %24 = vector.shape_cast %23 : vector<1x1x5x64xbf16> to vector<5x64xbf16>
      %25 = vector.extract_strided_slice %24 {offsets = [1, 0], sizes = [4, 64], strides = [1, 1]} : vector<5x64xbf16> to vector<4x64xbf16>
      %c2 = arith.constant 2 : index
      %c0_21 = arith.constant 0 : index
      %c0_22 = arith.constant 0 : index
      %26 = vector.load %arg6[%c2, %c0_21, %c0_22] : memref<9x64x128xbf16, #tpu.memory_space<vmem>>, vector<1x64x128xbf16>
      %27 = vector.shape_cast %26 : vector<1x64x128xbf16> to vector<64x128xbf16>
      %cst_23 = arith.constant dense<0.000000e+00> : vector<4x128xf32>
      %28 = tpu.matmul %25, %27, %cst_23 {dimension_numbers = #tpu.dot_dimension_numbers<[1], [0], [0], [1], [0, 0, 1, 1], [], []>} : vector<4x64xbf16>, vector<64x128xbf16>, vector<4x128xf32> -> vector<4x128xf32>
      %29 = arith.addf %20, %28 : vector<4x128xf32>
      %c0_i32_24 = arith.constant 0 : i32
      %30 = arith.addi %arg9, %c0_i32_24 : i32
      %c0_25 = arith.constant 0 : index
      %31 = arith.index_cast %30 : i32 to index
      %c0_26 = arith.constant 0 : index
      %c0_27 = arith.constant 0 : index
      %32 = vector.load %arg4[%c0_25, %31, %c0_26, %c0_27] : memref<1x5x5x64xbf16, #tpu.memory_space<vmem>>, vector<1x1x5x64xbf16>
      %33 = vector.shape_cast %32 : vector<1x1x5x64xbf16> to vector<5x64xbf16>
      %34 = vector.extract_strided_slice %33 {offsets = [0, 0], sizes = [4, 64], strides = [1, 1]} : vector<5x64xbf16> to vector<4x64xbf16>
      %c3 = arith.constant 3 : index
      %c0_28 = arith.constant 0 : index
      %c0_29 = arith.constant 0 : index
      %35 = vector.load %arg6[%c3, %c0_28, %c0_29] : memref<9x64x128xbf16, #tpu.memory_space<vmem>>, vector<1x64x128xbf16>
      %36 = vector.shape_cast %35 : vector<1x64x128xbf16> to vector<64x128xbf16>
      %cst_30 = arith.constant dense<0.000000e+00> : vector<4x128xf32>
      %37 = tpu.matmul %34, %36, %cst_30 {dimension_numbers = #tpu.dot_dimension_numbers<[1], [0], [0], [1], [0, 0, 1, 1], [], []>} : vector<4x64xbf16>, vector<64x128xbf16>, vector<4x128xf32> -> vector<4x128xf32>
      %38 = arith.addf %29, %37 : vector<4x128xf32>
      %c0_i32_31 = arith.constant 0 : i32
      %39 = arith.addi %arg9, %c0_i32_31 : i32
      %c0_32 = arith.constant 0 : index
      %40 = arith.index_cast %39 : i32 to index
      %c0_33 = arith.constant 0 : index
      %c0_34 = arith.constant 0 : index
      %41 = vector.load %arg5[%c0_32, %40, %c0_33, %c0_34] : memref<1x5x5x64xbf16, #tpu.memory_space<vmem>>, vector<1x1x5x64xbf16>
      %42 = vector.shape_cast %41 : vector<1x1x5x64xbf16> to vector<5x64xbf16>
      %43 = vector.extract_strided_slice %42 {offsets = [0, 0], sizes = [4, 64], strides = [1, 1]} : vector<5x64xbf16> to vector<4x64xbf16>
      %c4 = arith.constant 4 : index
      %c0_35 = arith.constant 0 : index
      %c0_36 = arith.constant 0 : index
      %44 = vector.load %arg6[%c4, %c0_35, %c0_36] : memref<9x64x128xbf16, #tpu.memory_space<vmem>>, vector<1x64x128xbf16>
      %45 = vector.shape_cast %44 : vector<1x64x128xbf16> to vector<64x128xbf16>
      %cst_37 = arith.constant dense<0.000000e+00> : vector<4x128xf32>
      %46 = tpu.matmul %43, %45, %cst_37 {dimension_numbers = #tpu.dot_dimension_numbers<[1], [0], [0], [1], [0, 0, 1, 1], [], []>} : vector<4x64xbf16>, vector<64x128xbf16>, vector<4x128xf32> -> vector<4x128xf32>
      %47 = arith.addf %38, %46 : vector<4x128xf32>
      %c0_i32_38 = arith.constant 0 : i32
      %48 = arith.addi %arg9, %c0_i32_38 : i32
      %c0_39 = arith.constant 0 : index
      %49 = arith.index_cast %48 : i32 to index
      %c0_40 = arith.constant 0 : index
      %c0_41 = arith.constant 0 : index
      %50 = vector.load %arg4[%c0_39, %49, %c0_40, %c0_41] : memref<1x5x5x64xbf16, #tpu.memory_space<vmem>>, vector<1x1x5x64xbf16>
      %51 = vector.shape_cast %50 : vector<1x1x5x64xbf16> to vector<5x64xbf16>
      %52 = vector.extract_strided_slice %51 {offsets = [1, 0], sizes = [4, 64], strides = [1, 1]} : vector<5x64xbf16> to vector<4x64xbf16>
      %c5 = arith.constant 5 : index
      %c0_42 = arith.constant 0 : index
      %c0_43 = arith.constant 0 : index
      %53 = vector.load %arg6[%c5, %c0_42, %c0_43] : memref<9x64x128xbf16, #tpu.memory_space<vmem>>, vector<1x64x128xbf16>
      %54 = vector.shape_cast %53 : vector<1x64x128xbf16> to vector<64x128xbf16>
      %cst_44 = arith.constant dense<0.000000e+00> : vector<4x128xf32>
      %55 = tpu.matmul %52, %54, %cst_44 {dimension_numbers = #tpu.dot_dimension_numbers<[1], [0], [0], [1], [0, 0, 1, 1], [], []>} : vector<4x64xbf16>, vector<64x128xbf16>, vector<4x128xf32> -> vector<4x128xf32>
      %56 = arith.addf %47, %55 : vector<4x128xf32>
      %c1_i32_45 = arith.constant 1 : i32
      %57 = arith.addi %arg9, %c1_i32_45 : i32
      %c0_46 = arith.constant 0 : index
      %58 = arith.index_cast %57 : i32 to index
      %c0_47 = arith.constant 0 : index
      %c0_48 = arith.constant 0 : index
      %59 = vector.load %arg2[%c0_46, %58, %c0_47, %c0_48] : memref<1x5x5x64xbf16, #tpu.memory_space<vmem>>, vector<1x1x5x64xbf16>
      %60 = vector.shape_cast %59 : vector<1x1x5x64xbf16> to vector<5x64xbf16>
      %61 = vector.extract_strided_slice %60 {offsets = [0, 0], sizes = [4, 64], strides = [1, 1]} : vector<5x64xbf16> to vector<4x64xbf16>
      %c6 = arith.constant 6 : index
      %c0_49 = arith.constant 0 : index
      %c0_50 = arith.constant 0 : index
      %62 = vector.load %arg6[%c6, %c0_49, %c0_50] : memref<9x64x128xbf16, #tpu.memory_space<vmem>>, vector<1x64x128xbf16>
      %63 = vector.shape_cast %62 : vector<1x64x128xbf16> to vector<64x128xbf16>
      %cst_51 = arith.constant dense<0.000000e+00> : vector<4x128xf32>
      %64 = tpu.matmul %61, %63, %cst_51 {dimension_numbers = #tpu.dot_dimension_numbers<[1], [0], [0], [1], [0, 0, 1, 1], [], []>} : vector<4x64xbf16>, vector<64x128xbf16>, vector<4x128xf32> -> vector<4x128xf32>
      %65 = arith.addf %56, %64 : vector<4x128xf32>
      %c1_i32_52 = arith.constant 1 : i32
      %66 = arith.addi %arg9, %c1_i32_52 : i32
      %c0_53 = arith.constant 0 : index
      %67 = arith.index_cast %66 : i32 to index
      %c0_54 = arith.constant 0 : index
      %c0_55 = arith.constant 0 : index
      %68 = vector.load %arg3[%c0_53, %67, %c0_54, %c0_55] : memref<1x5x5x64xbf16, #tpu.memory_space<vmem>>, vector<1x1x5x64xbf16>
      %69 = vector.shape_cast %68 : vector<1x1x5x64xbf16> to vector<5x64xbf16>
      %70 = vector.extract_strided_slice %69 {offsets = [0, 0], sizes = [4, 64], strides = [1, 1]} : vector<5x64xbf16> to vector<4x64xbf16>
      %c7 = arith.constant 7 : index
      %c0_56 = arith.constant 0 : index
      %c0_57 = arith.constant 0 : index
      %71 = vector.load %arg6[%c7, %c0_56, %c0_57] : memref<9x64x128xbf16, #tpu.memory_space<vmem>>, vector<1x64x128xbf16>
      %72 = vector.shape_cast %71 : vector<1x64x128xbf16> to vector<64x128xbf16>
      %cst_58 = arith.constant dense<0.000000e+00> : vector<4x128xf32>
      %73 = tpu.matmul %70, %72, %cst_58 {dimension_numbers = #tpu.dot_dimension_numbers<[1], [0], [0], [1], [0, 0, 1, 1], [], []>} : vector<4x64xbf16>, vector<64x128xbf16>, vector<4x128xf32> -> vector<4x128xf32>
      %74 = arith.addf %65, %73 : vector<4x128xf32>
      %c1_i32_59 = arith.constant 1 : i32
      %75 = arith.addi %arg9, %c1_i32_59 : i32
      %c0_60 = arith.constant 0 : index
      %76 = arith.index_cast %75 : i32 to index
      %c0_61 = arith.constant 0 : index
      %c0_62 = arith.constant 0 : index
      %77 = vector.load %arg2[%c0_60, %76, %c0_61, %c0_62] : memref<1x5x5x64xbf16, #tpu.memory_space<vmem>>, vector<1x1x5x64xbf16>
      %78 = vector.shape_cast %77 : vector<1x1x5x64xbf16> to vector<5x64xbf16>
      %79 = vector.extract_strided_slice %78 {offsets = [1, 0], sizes = [4, 64], strides = [1, 1]} : vector<5x64xbf16> to vector<4x64xbf16>
      %c8 = arith.constant 8 : index
      %c0_63 = arith.constant 0 : index
      %c0_64 = arith.constant 0 : index
      %80 = vector.load %arg6[%c8, %c0_63, %c0_64] : memref<9x64x128xbf16, #tpu.memory_space<vmem>>, vector<1x64x128xbf16>
      %81 = vector.shape_cast %80 : vector<1x64x128xbf16> to vector<64x128xbf16>
      %cst_65 = arith.constant dense<0.000000e+00> : vector<4x128xf32>
      %82 = tpu.matmul %79, %81, %cst_65 {dimension_numbers = #tpu.dot_dimension_numbers<[1], [0], [0], [1], [0, 0, 1, 1], [], []>} : vector<4x64xbf16>, vector<64x128xbf16>, vector<4x128xf32> -> vector<4x128xf32>
      %83 = arith.addf %74, %82 : vector<4x128xf32>
      %84 = vector.broadcast %0 : vector<1x128xf32> to vector<4x128xf32>
      %85 = arith.addf %83, %84 : vector<4x128xf32>
      %cst_66 = arith.constant 0.000000e+00 : f32
      %86 = vector.broadcast %cst_66 : f32 to vector<4x128xf32>
      %87 = arith.maximumf %85, %86 : vector<4x128xf32>
      %88 = arith.truncf %87 : vector<4x128xf32> to vector<4x128xbf16>
      %c0_67 = arith.constant 0 : index
      %89 = arith.index_cast %arg9 : i32 to index
      %c0_68 = arith.constant 0 : index
      %c0_69 = arith.constant 0 : index
      %90 = vector.load %arg8[%c0_67, %89, %c0_68, %c0_69] : memref<1x4x4x128xbf16, #tpu.memory_space<vmem>>, vector<1x1x4x128xbf16>
      %91 = vector.shape_cast %90 : vector<1x1x4x128xbf16> to vector<4x128xbf16>
      %92 = vector.shape_cast %88 : vector<4x128xbf16> to vector<1x1x4x128xbf16>
      tpu.vector_store %arg8[%c0_67, %89, %c0_68, %c0_69], %92 {strides = array<i32>} : memref<1x4x4x128xbf16, #tpu.memory_space<vmem>>, vector<1x1x4x128xbf16>,
    }
    %c4_i32_1 = arith.constant 4 : i32
    return
  }
  func.func @transform_0(%arg0: i32, %arg1: i32) -> (i32, i32, i32, i32) {
    %c0_i32 = arith.constant 0 : i32
    %c0_i32_0 = arith.constant 0 : i32
    %c0_i32_1 = arith.constant 0 : i32
    %c0_i32_2 = arith.constant 0 : i32
    return %arg0, %c0_i32, %c0_i32_0, %c0_i32_1 : i32, i32, i32, i32
  }
  func.func @transform_1(%arg0: i32, %arg1: i32) -> (i32, i32, i32, i32) {
    %c0_i32 = arith.constant 0 : i32
    %c0_i32_0 = arith.constant 0 : i32
    %c0_i32_1 = arith.constant 0 : i32
    %c0_i32_2 = arith.constant 0 : i32
    return %arg0, %c0_i32, %c0_i32_0, %c0_i32_1 : i32, i32, i32, i32
  }
  func.func @transform_2(%arg0: i32, %arg1: i32) -> (i32, i32, i32, i32) {
    %c0_i32 = arith.constant 0 : i32
    %c0_i32_0 = arith.constant 0 : i32
    %c0_i32_1 = arith.constant 0 : i32
    %c0_i32_2 = arith.constant 0 : i32
    return %arg0, %c0_i32, %c0_i32_0, %c0_i32_1 : i32, i32, i32, i32
  }
  func.func @transform_3(%arg0: i32, %arg1: i32) -> (i32, i32, i32, i32) {
    %c0_i32 = arith.constant 0 : i32
    %c0_i32_0 = arith.constant 0 : i32
    %c0_i32_1 = arith.constant 0 : i32
    %c0_i32_2 = arith.constant 0 : i32
    return %arg0, %c0_i32, %c0_i32_0, %c0_i32_1 : i32, i32, i32, i32
  }
  func.func @transform_4(%arg0: i32, %arg1: i32) -> (i32, i32, i32) {
    %c0_i32 = arith.constant 0 : i32
    %c0_i32_0 = arith.constant 0 : i32
    %c0_i32_1 = arith.constant 0 : i32
    return %c0_i32, %c0_i32_0, %arg1 : i32, i32, i32
  }
  func.func @transform_5(%arg0: i32, %arg1: i32) -> (i32, i32) {
    %c0_i32 = arith.constant 0 : i32
    %c0_i32_0 = arith.constant 0 : i32
    return %c0_i32, %arg1 : i32, i32
  }
  func.func @transform_6(%arg0: i32, %arg1: i32) -> (i32, i32, i32, i32) {
    %c0_i32 = arith.constant 0 : i32
    %c0_i32_0 = arith.constant 0 : i32
    %c0_i32_1 = arith.constant 0 : i32
    return %arg0, %c0_i32, %c0_i32_0, %arg1 : i32, i32, i32, i32
  }
}

module attributes {stable_mosaic.version = 11 : i64} {
  func.func @_conv3x3_kernel(%arg0: i32, %arg1: i32, %arg2: memref<1x6x6x128xbf16, #tpu.memory_space<vmem>>, %arg3: memref<9x128x256xbf16, #tpu.memory_space<vmem>>, %arg4: memref<1x256xf32, #tpu.memory_space<vmem>>, %arg5: memref<1x4x4x256xf32, #tpu.memory_space<vmem>>) attributes {dimension_semantics = [#tpu.dimension_semantics<parallel>, #tpu.dimension_semantics<parallel>], iteration_bounds = array<i64: 2, 4>, scalar_prefetch = 0 : i64, scratch_operands = 0 : i64, tpu.core_type = #tpu.core_type<tc>, window_params = [{transform_indices = @transform_0, window_bounds = array<i64: 1, 6, 6, 128>}, {transform_indices = @transform_1, window_bounds = array<i64: 9, 128, 256>}, {transform_indices = @transform_2, window_bounds = array<i64: 1, 256>}, {transform_indices = @transform_3, window_bounds = array<i64: 1, 4, 4, 256>}]} {
    %c0 = arith.constant 0 : index
    %c0_0 = arith.constant 0 : index
    %0 = vector.load %arg4[%c0, %c0_0] : memref<1x256xf32, #tpu.memory_space<vmem>>, vector<1x256xf32>
    %c0_i32 = arith.constant 0 : i32
    %c4_i32 = arith.constant 4 : i32
    %1 = arith.addi %c0_i32, %c4_i32 : i32
    %c1_i32 = arith.constant 1 : i32
    scf.for %arg6 = %c0_i32 to %1 step %c1_i32  : i32 {
      %cst = arith.constant 0.000000e+00 : f32
      %2 = vector.broadcast %cst : f32 to vector<4x256xf32>
      %c0_i32_2 = arith.constant 0 : i32
      %3 = arith.addi %arg6, %c0_i32_2 : i32
      %c0_3 = arith.constant 0 : index
      %4 = arith.index_cast %3 : i32 to index
      %c0_4 = arith.constant 0 : index
      %c0_5 = arith.constant 0 : index
      %5 = vector.load %arg2[%c0_3, %4, %c0_4, %c0_5] : memref<1x6x6x128xbf16, #tpu.memory_space<vmem>>, vector<1x1x6x128xbf16>
      %6 = vector.shape_cast %5 : vector<1x1x6x128xbf16> to vector<6x128xbf16>
      %7 = vector.extract_strided_slice %6 {offsets = [0, 0], sizes = [4, 128], strides = [1, 1]} : vector<6x128xbf16> to vector<4x128xbf16>
      %c0_6 = arith.constant 0 : index
      %c0_7 = arith.constant 0 : index
      %c0_8 = arith.constant 0 : index
      %8 = vector.load %arg3[%c0_6, %c0_7, %c0_8] : memref<9x128x256xbf16, #tpu.memory_space<vmem>>, vector<1x128x256xbf16>
      %9 = vector.shape_cast %8 : vector<1x128x256xbf16> to vector<128x256xbf16>
      %cst_9 = arith.constant dense<0.000000e+00> : vector<4x256xf32>
      %10 = tpu.matmul %7, %9, %cst_9 {dimension_numbers = #tpu.dot_dimension_numbers<[1], [0], [0], [1], [0, 0, 1, 1], [], []>} : vector<4x128xbf16>, vector<128x256xbf16>, vector<4x256xf32> -> vector<4x256xf32>
      %11 = arith.addf %2, %10 : vector<4x256xf32>
      %c0_i32_10 = arith.constant 0 : i32
      %12 = arith.addi %arg6, %c0_i32_10 : i32
      %c0_11 = arith.constant 0 : index
      %13 = arith.index_cast %12 : i32 to index
      %c0_12 = arith.constant 0 : index
      %c0_13 = arith.constant 0 : index
      %14 = vector.load %arg2[%c0_11, %13, %c0_12, %c0_13] : memref<1x6x6x128xbf16, #tpu.memory_space<vmem>>, vector<1x1x6x128xbf16>
      %15 = vector.shape_cast %14 : vector<1x1x6x128xbf16> to vector<6x128xbf16>
      %16 = vector.extract_strided_slice %15 {offsets = [1, 0], sizes = [4, 128], strides = [1, 1]} : vector<6x128xbf16> to vector<4x128xbf16>
      %c1 = arith.constant 1 : index
      %c0_14 = arith.constant 0 : index
      %c0_15 = arith.constant 0 : index
      %17 = vector.load %arg3[%c1, %c0_14, %c0_15] : memref<9x128x256xbf16, #tpu.memory_space<vmem>>, vector<1x128x256xbf16>
      %18 = vector.shape_cast %17 : vector<1x128x256xbf16> to vector<128x256xbf16>
      %cst_16 = arith.constant dense<0.000000e+00> : vector<4x256xf32>
      %19 = tpu.matmul %16, %18, %cst_16 {dimension_numbers = #tpu.dot_dimension_numbers<[1], [0], [0], [1], [0, 0, 1, 1], [], []>} : vector<4x128xbf16>, vector<128x256xbf16>, vector<4x256xf32> -> vector<4x256xf32>
      %20 = arith.addf %11, %19 : vector<4x256xf32>
      %c0_i32_17 = arith.constant 0 : i32
      %21 = arith.addi %arg6, %c0_i32_17 : i32
      %c0_18 = arith.constant 0 : index
      %22 = arith.index_cast %21 : i32 to index
      %c0_19 = arith.constant 0 : index
      %c0_20 = arith.constant 0 : index
      %23 = vector.load %arg2[%c0_18, %22, %c0_19, %c0_20] : memref<1x6x6x128xbf16, #tpu.memory_space<vmem>>, vector<1x1x6x128xbf16>
      %24 = vector.shape_cast %23 : vector<1x1x6x128xbf16> to vector<6x128xbf16>
      %25 = vector.extract_strided_slice %24 {offsets = [2, 0], sizes = [4, 128], strides = [1, 1]} : vector<6x128xbf16> to vector<4x128xbf16>
      %c2 = arith.constant 2 : index
      %c0_21 = arith.constant 0 : index
      %c0_22 = arith.constant 0 : index
      %26 = vector.load %arg3[%c2, %c0_21, %c0_22] : memref<9x128x256xbf16, #tpu.memory_space<vmem>>, vector<1x128x256xbf16>
      %27 = vector.shape_cast %26 : vector<1x128x256xbf16> to vector<128x256xbf16>
      %cst_23 = arith.constant dense<0.000000e+00> : vector<4x256xf32>
      %28 = tpu.matmul %25, %27, %cst_23 {dimension_numbers = #tpu.dot_dimension_numbers<[1], [0], [0], [1], [0, 0, 1, 1], [], []>} : vector<4x128xbf16>, vector<128x256xbf16>, vector<4x256xf32> -> vector<4x256xf32>
      %29 = arith.addf %20, %28 : vector<4x256xf32>
      %c1_i32_24 = arith.constant 1 : i32
      %30 = arith.addi %arg6, %c1_i32_24 : i32
      %c0_25 = arith.constant 0 : index
      %31 = arith.index_cast %30 : i32 to index
      %c0_26 = arith.constant 0 : index
      %c0_27 = arith.constant 0 : index
      %32 = vector.load %arg2[%c0_25, %31, %c0_26, %c0_27] : memref<1x6x6x128xbf16, #tpu.memory_space<vmem>>, vector<1x1x6x128xbf16>
      %33 = vector.shape_cast %32 : vector<1x1x6x128xbf16> to vector<6x128xbf16>
      %34 = vector.extract_strided_slice %33 {offsets = [0, 0], sizes = [4, 128], strides = [1, 1]} : vector<6x128xbf16> to vector<4x128xbf16>
      %c3 = arith.constant 3 : index
      %c0_28 = arith.constant 0 : index
      %c0_29 = arith.constant 0 : index
      %35 = vector.load %arg3[%c3, %c0_28, %c0_29] : memref<9x128x256xbf16, #tpu.memory_space<vmem>>, vector<1x128x256xbf16>
      %36 = vector.shape_cast %35 : vector<1x128x256xbf16> to vector<128x256xbf16>
      %cst_30 = arith.constant dense<0.000000e+00> : vector<4x256xf32>
      %37 = tpu.matmul %34, %36, %cst_30 {dimension_numbers = #tpu.dot_dimension_numbers<[1], [0], [0], [1], [0, 0, 1, 1], [], []>} : vector<4x128xbf16>, vector<128x256xbf16>, vector<4x256xf32> -> vector<4x256xf32>
      %38 = arith.addf %29, %37 : vector<4x256xf32>
      %c1_i32_31 = arith.constant 1 : i32
      %39 = arith.addi %arg6, %c1_i32_31 : i32
      %c0_32 = arith.constant 0 : index
      %40 = arith.index_cast %39 : i32 to index
      %c0_33 = arith.constant 0 : index
      %c0_34 = arith.constant 0 : index
      %41 = vector.load %arg2[%c0_32, %40, %c0_33, %c0_34] : memref<1x6x6x128xbf16, #tpu.memory_space<vmem>>, vector<1x1x6x128xbf16>
      %42 = vector.shape_cast %41 : vector<1x1x6x128xbf16> to vector<6x128xbf16>
      %43 = vector.extract_strided_slice %42 {offsets = [1, 0], sizes = [4, 128], strides = [1, 1]} : vector<6x128xbf16> to vector<4x128xbf16>
      %c4 = arith.constant 4 : index
      %c0_35 = arith.constant 0 : index
      %c0_36 = arith.constant 0 : index
      %44 = vector.load %arg3[%c4, %c0_35, %c0_36] : memref<9x128x256xbf16, #tpu.memory_space<vmem>>, vector<1x128x256xbf16>
      %45 = vector.shape_cast %44 : vector<1x128x256xbf16> to vector<128x256xbf16>
      %cst_37 = arith.constant dense<0.000000e+00> : vector<4x256xf32>
      %46 = tpu.matmul %43, %45, %cst_37 {dimension_numbers = #tpu.dot_dimension_numbers<[1], [0], [0], [1], [0, 0, 1, 1], [], []>} : vector<4x128xbf16>, vector<128x256xbf16>, vector<4x256xf32> -> vector<4x256xf32>
      %47 = arith.addf %38, %46 : vector<4x256xf32>
      %c1_i32_38 = arith.constant 1 : i32
      %48 = arith.addi %arg6, %c1_i32_38 : i32
      %c0_39 = arith.constant 0 : index
      %49 = arith.index_cast %48 : i32 to index
      %c0_40 = arith.constant 0 : index
      %c0_41 = arith.constant 0 : index
      %50 = vector.load %arg2[%c0_39, %49, %c0_40, %c0_41] : memref<1x6x6x128xbf16, #tpu.memory_space<vmem>>, vector<1x1x6x128xbf16>
      %51 = vector.shape_cast %50 : vector<1x1x6x128xbf16> to vector<6x128xbf16>
      %52 = vector.extract_strided_slice %51 {offsets = [2, 0], sizes = [4, 128], strides = [1, 1]} : vector<6x128xbf16> to vector<4x128xbf16>
      %c5 = arith.constant 5 : index
      %c0_42 = arith.constant 0 : index
      %c0_43 = arith.constant 0 : index
      %53 = vector.load %arg3[%c5, %c0_42, %c0_43] : memref<9x128x256xbf16, #tpu.memory_space<vmem>>, vector<1x128x256xbf16>
      %54 = vector.shape_cast %53 : vector<1x128x256xbf16> to vector<128x256xbf16>
      %cst_44 = arith.constant dense<0.000000e+00> : vector<4x256xf32>
      %55 = tpu.matmul %52, %54, %cst_44 {dimension_numbers = #tpu.dot_dimension_numbers<[1], [0], [0], [1], [0, 0, 1, 1], [], []>} : vector<4x128xbf16>, vector<128x256xbf16>, vector<4x256xf32> -> vector<4x256xf32>
      %56 = arith.addf %47, %55 : vector<4x256xf32>
      %c2_i32 = arith.constant 2 : i32
      %57 = arith.addi %arg6, %c2_i32 : i32
      %c0_45 = arith.constant 0 : index
      %58 = arith.index_cast %57 : i32 to index
      %c0_46 = arith.constant 0 : index
      %c0_47 = arith.constant 0 : index
      %59 = vector.load %arg2[%c0_45, %58, %c0_46, %c0_47] : memref<1x6x6x128xbf16, #tpu.memory_space<vmem>>, vector<1x1x6x128xbf16>
      %60 = vector.shape_cast %59 : vector<1x1x6x128xbf16> to vector<6x128xbf16>
      %61 = vector.extract_strided_slice %60 {offsets = [0, 0], sizes = [4, 128], strides = [1, 1]} : vector<6x128xbf16> to vector<4x128xbf16>
      %c6 = arith.constant 6 : index
      %c0_48 = arith.constant 0 : index
      %c0_49 = arith.constant 0 : index
      %62 = vector.load %arg3[%c6, %c0_48, %c0_49] : memref<9x128x256xbf16, #tpu.memory_space<vmem>>, vector<1x128x256xbf16>
      %63 = vector.shape_cast %62 : vector<1x128x256xbf16> to vector<128x256xbf16>
      %cst_50 = arith.constant dense<0.000000e+00> : vector<4x256xf32>
      %64 = tpu.matmul %61, %63, %cst_50 {dimension_numbers = #tpu.dot_dimension_numbers<[1], [0], [0], [1], [0, 0, 1, 1], [], []>} : vector<4x128xbf16>, vector<128x256xbf16>, vector<4x256xf32> -> vector<4x256xf32>
      %65 = arith.addf %56, %64 : vector<4x256xf32>
      %c2_i32_51 = arith.constant 2 : i32
      %66 = arith.addi %arg6, %c2_i32_51 : i32
      %c0_52 = arith.constant 0 : index
      %67 = arith.index_cast %66 : i32 to index
      %c0_53 = arith.constant 0 : index
      %c0_54 = arith.constant 0 : index
      %68 = vector.load %arg2[%c0_52, %67, %c0_53, %c0_54] : memref<1x6x6x128xbf16, #tpu.memory_space<vmem>>, vector<1x1x6x128xbf16>
      %69 = vector.shape_cast %68 : vector<1x1x6x128xbf16> to vector<6x128xbf16>
      %70 = vector.extract_strided_slice %69 {offsets = [1, 0], sizes = [4, 128], strides = [1, 1]} : vector<6x128xbf16> to vector<4x128xbf16>
      %c7 = arith.constant 7 : index
      %c0_55 = arith.constant 0 : index
      %c0_56 = arith.constant 0 : index
      %71 = vector.load %arg3[%c7, %c0_55, %c0_56] : memref<9x128x256xbf16, #tpu.memory_space<vmem>>, vector<1x128x256xbf16>
      %72 = vector.shape_cast %71 : vector<1x128x256xbf16> to vector<128x256xbf16>
      %cst_57 = arith.constant dense<0.000000e+00> : vector<4x256xf32>
      %73 = tpu.matmul %70, %72, %cst_57 {dimension_numbers = #tpu.dot_dimension_numbers<[1], [0], [0], [1], [0, 0, 1, 1], [], []>} : vector<4x128xbf16>, vector<128x256xbf16>, vector<4x256xf32> -> vector<4x256xf32>
      %74 = arith.addf %65, %73 : vector<4x256xf32>
      %c2_i32_58 = arith.constant 2 : i32
      %75 = arith.addi %arg6, %c2_i32_58 : i32
      %c0_59 = arith.constant 0 : index
      %76 = arith.index_cast %75 : i32 to index
      %c0_60 = arith.constant 0 : index
      %c0_61 = arith.constant 0 : index
      %77 = vector.load %arg2[%c0_59, %76, %c0_60, %c0_61] : memref<1x6x6x128xbf16, #tpu.memory_space<vmem>>, vector<1x1x6x128xbf16>
      %78 = vector.shape_cast %77 : vector<1x1x6x128xbf16> to vector<6x128xbf16>
      %79 = vector.extract_strided_slice %78 {offsets = [2, 0], sizes = [4, 128], strides = [1, 1]} : vector<6x128xbf16> to vector<4x128xbf16>
      %c8 = arith.constant 8 : index
      %c0_62 = arith.constant 0 : index
      %c0_63 = arith.constant 0 : index
      %80 = vector.load %arg3[%c8, %c0_62, %c0_63] : memref<9x128x256xbf16, #tpu.memory_space<vmem>>, vector<1x128x256xbf16>
      %81 = vector.shape_cast %80 : vector<1x128x256xbf16> to vector<128x256xbf16>
      %cst_64 = arith.constant dense<0.000000e+00> : vector<4x256xf32>
      %82 = tpu.matmul %79, %81, %cst_64 {dimension_numbers = #tpu.dot_dimension_numbers<[1], [0], [0], [1], [0, 0, 1, 1], [], []>} : vector<4x128xbf16>, vector<128x256xbf16>, vector<4x256xf32> -> vector<4x256xf32>
      %83 = arith.addf %74, %82 : vector<4x256xf32>
      %84 = vector.broadcast %0 : vector<1x256xf32> to vector<4x256xf32>
      %85 = arith.addf %83, %84 : vector<4x256xf32>
      %cst_65 = arith.constant 0.000000e+00 : f32
      %86 = vector.broadcast %cst_65 : f32 to vector<4x256xf32>
      %87 = arith.maximumf %85, %86 : vector<4x256xf32>
      %c0_66 = arith.constant 0 : index
      %88 = arith.index_cast %arg6 : i32 to index
      %c0_67 = arith.constant 0 : index
      %c0_68 = arith.constant 0 : index
      %89 = vector.load %arg5[%c0_66, %88, %c0_67, %c0_68] : memref<1x4x4x256xf32, #tpu.memory_space<vmem>>, vector<1x1x4x256xf32>
      %90 = vector.shape_cast %89 : vector<1x1x4x256xf32> to vector<4x256xf32>
      %91 = vector.shape_cast %87 : vector<4x256xf32> to vector<1x1x4x256xf32>
      tpu.vector_store %arg5[%c0_66, %88, %c0_67, %c0_68], %91 {strides = array<i32>} : memref<1x4x4x256xf32, #tpu.memory_space<vmem>>, vector<1x1x4x256xf32>,
    }
    %c4_i32_1 = arith.constant 4 : i32
    return
  }
  func.func @transform_0(%arg0: i32, %arg1: i32) -> (i32, i32, i32, i32) {
    %c0_i32 = arith.constant 0 : i32
    %c0_i32_0 = arith.constant 0 : i32
    %c0_i32_1 = arith.constant 0 : i32
    %c0_i32_2 = arith.constant 0 : i32
    return %arg0, %c0_i32, %c0_i32_0, %c0_i32_1 : i32, i32, i32, i32
  }
  func.func @transform_1(%arg0: i32, %arg1: i32) -> (i32, i32, i32) {
    %c0_i32 = arith.constant 0 : i32
    %c0_i32_0 = arith.constant 0 : i32
    %c0_i32_1 = arith.constant 0 : i32
    return %c0_i32, %c0_i32_0, %arg1 : i32, i32, i32
  }
  func.func @transform_2(%arg0: i32, %arg1: i32) -> (i32, i32) {
    %c0_i32 = arith.constant 0 : i32
    %c0_i32_0 = arith.constant 0 : i32
    return %c0_i32, %arg1 : i32, i32
  }
  func.func @transform_3(%arg0: i32, %arg1: i32) -> (i32, i32, i32, i32) {
    %c0_i32 = arith.constant 0 : i32
    %c0_i32_0 = arith.constant 0 : i32
    %c0_i32_1 = arith.constant 0 : i32
    return %arg0, %c0_i32, %c0_i32_0, %arg1 : i32, i32, i32, i32
  }
}

module attributes {stable_mosaic.version = 11 : i64} {
  func.func @_encoder_kernel(%arg0: i32, %arg1: i32, %arg2: memref<1x16x3xbf16, #tpu.memory_space<vmem>>, %arg3: memref<1x16x1024xbf16, #tpu.memory_space<vmem>>, %arg4: memref<3x128xbf16, #tpu.memory_space<vmem>>, %arg5: memref<1024x128xbf16, #tpu.memory_space<vmem>>, %arg6: memref<128x128xbf16, #tpu.memory_space<vmem>>, %arg7: memref<128x256xbf16, #tpu.memory_space<vmem>>, %arg8: memref<256x512xbf16, #tpu.memory_space<vmem>>, %arg9: memref<1x128xf32, #tpu.memory_space<vmem>>, %arg10: memref<1x128xf32, #tpu.memory_space<vmem>>, %arg11: memref<1x256xf32, #tpu.memory_space<vmem>>, %arg12: memref<1x512xf32, #tpu.memory_space<vmem>>, %arg13: memref<1x16x512xf32, #tpu.memory_space<vmem>>, %arg14: memref<1x1x512xf32, #tpu.memory_space<vmem>>, %arg15: memref<1x512xf32, #tpu.memory_space<vmem>>) attributes {dimension_semantics = [#tpu.dimension_semantics<parallel>, #tpu.dimension_semantics<arbitrary>], iteration_bounds = array<i64: 2, 1>, scalar_prefetch = 0 : i64, scratch_operands = 1 : i64, tpu.core_type = #tpu.core_type<tc>, window_params = [{transform_indices = @transform_0, window_bounds = array<i64: 1, 16, 3>}, {transform_indices = @transform_1, window_bounds = array<i64: 1, 16, 1024>}, {pipeline_mode = #tpu.pipeline_mode<synchronous>, transform_indices = @transform_2, window_bounds = array<i64: 3, 128>}, {pipeline_mode = #tpu.pipeline_mode<synchronous>, transform_indices = @transform_3, window_bounds = array<i64: 1024, 128>}, {pipeline_mode = #tpu.pipeline_mode<synchronous>, transform_indices = @transform_4, window_bounds = array<i64: 128, 128>}, {pipeline_mode = #tpu.pipeline_mode<synchronous>, transform_indices = @transform_5, window_bounds = array<i64: 128, 256>}, {pipeline_mode = #tpu.pipeline_mode<synchronous>, transform_indices = @transform_6, window_bounds = array<i64: 256, 512>}, {pipeline_mode = #tpu.pipeline_mode<synchronous>, transform_indices = @transform_7, window_bounds = array<i64: 1, 128>}, {pipeline_mode = #tpu.pipeline_mode<synchronous>, transform_indices = @transform_8, window_bounds = array<i64: 1, 128>}, {pipeline_mode = #tpu.pipeline_mode<synchronous>, transform_indices = @transform_9, window_bounds = array<i64: 1, 256>}, {pipeline_mode = #tpu.pipeline_mode<synchronous>, transform_indices = @transform_10, window_bounds = array<i64: 1, 512>}, {transform_indices = @transform_11, window_bounds = array<i64: 1, 16, 512>}, {transform_indices = @transform_12, window_bounds = array<i64: 1, 1, 512>}]} {
    %c0 = arith.constant 0 : index
    %c0_0 = arith.constant 0 : index
    %c0_1 = arith.constant 0 : index
    %0 = vector.load %arg2[%c0, %c0_0, %c0_1] : memref<1x16x3xbf16, #tpu.memory_space<vmem>>, vector<1x16x3xbf16>
    %1 = vector.shape_cast %0 : vector<1x16x3xbf16> to vector<16x3xbf16>
    %c0_2 = arith.constant 0 : index
    %c0_3 = arith.constant 0 : index
    %2 = vector.load %arg4[%c0_2, %c0_3] : memref<3x128xbf16, #tpu.memory_space<vmem>>, vector<3x128xbf16>
    %cst = arith.constant dense<0.000000e+00> : vector<16x128xf32>
    %3 = tpu.matmul %1, %2, %cst {dimension_numbers = #tpu.dot_dimension_numbers<[1], [0], [0], [1], [0, 0, 1, 1], [], []>} : vector<16x3xbf16>, vector<3x128xbf16>, vector<16x128xf32> -> vector<16x128xf32>
    %c0_4 = arith.constant 0 : index
    %c0_5 = arith.constant 0 : index
    %c0_6 = arith.constant 0 : index
    %4 = vector.load %arg3[%c0_4, %c0_5, %c0_6] : memref<1x16x1024xbf16, #tpu.memory_space<vmem>>, vector<1x16x1024xbf16>
    %5 = vector.shape_cast %4 : vector<1x16x1024xbf16> to vector<16x1024xbf16>
    %c0_7 = arith.constant 0 : index
    %c0_8 = arith.constant 0 : index
    %6 = vector.load %arg5[%c0_7, %c0_8] : memref<1024x128xbf16, #tpu.memory_space<vmem>>, vector<1024x128xbf16>
    %cst_9 = arith.constant dense<0.000000e+00> : vector<16x128xf32>
    %7 = tpu.matmul %5, %6, %cst_9 {dimension_numbers = #tpu.dot_dimension_numbers<[1], [0], [0], [1], [0, 0, 1, 1], [], []>} : vector<16x1024xbf16>, vector<1024x128xbf16>, vector<16x128xf32> -> vector<16x128xf32>
    %8 = arith.addf %3, %7 : vector<16x128xf32>
    %c0_10 = arith.constant 0 : index
    %c0_11 = arith.constant 0 : index
    %9 = vector.load %arg9[%c0_10, %c0_11] : memref<1x128xf32, #tpu.memory_space<vmem>>, vector<1x128xf32>
    %10 = vector.broadcast %9 : vector<1x128xf32> to vector<16x128xf32>
    %11 = arith.addf %8, %10 : vector<16x128xf32>
    %cst_12 = arith.constant 0.000000e+00 : f32
    %12 = vector.broadcast %cst_12 : f32 to vector<16x128xf32>
    %13 = arith.maximumf %11, %12 : vector<16x128xf32>
    %14 = arith.truncf %13 : vector<16x128xf32> to vector<16x128xbf16>
    %c0_13 = arith.constant 0 : index
    %c0_14 = arith.constant 0 : index
    %15 = vector.load %arg6[%c0_13, %c0_14] : memref<128x128xbf16, #tpu.memory_space<vmem>>, vector<128x128xbf16>
    %cst_15 = arith.constant dense<0.000000e+00> : vector<16x128xf32>
    %16 = tpu.matmul %14, %15, %cst_15 {dimension_numbers = #tpu.dot_dimension_numbers<[1], [0], [0], [1], [0, 0, 1, 1], [], []>} : vector<16x128xbf16>, vector<128x128xbf16>, vector<16x128xf32> -> vector<16x128xf32>
    %c0_16 = arith.constant 0 : index
    %c0_17 = arith.constant 0 : index
    %17 = vector.load %arg10[%c0_16, %c0_17] : memref<1x128xf32, #tpu.memory_space<vmem>>, vector<1x128xf32>
    %18 = vector.broadcast %17 : vector<1x128xf32> to vector<16x128xf32>
    %19 = arith.addf %16, %18 : vector<16x128xf32>
    %cst_18 = arith.constant 0.000000e+00 : f32
    %20 = vector.broadcast %cst_18 : f32 to vector<16x128xf32>
    %21 = arith.maximumf %19, %20 : vector<16x128xf32>
    %22 = arith.truncf %21 : vector<16x128xf32> to vector<16x128xbf16>
    %c0_19 = arith.constant 0 : index
    %c0_20 = arith.constant 0 : index
    %23 = vector.load %arg7[%c0_19, %c0_20] : memref<128x256xbf16, #tpu.memory_space<vmem>>, vector<128x256xbf16>
    %cst_21 = arith.constant dense<0.000000e+00> : vector<16x256xf32>
    %24 = tpu.matmul %22, %23, %cst_21 {dimension_numbers = #tpu.dot_dimension_numbers<[1], [0], [0], [1], [0, 0, 1, 1], [], []>} : vector<16x128xbf16>, vector<128x256xbf16>, vector<16x256xf32> -> vector<16x256xf32>
    %c0_22 = arith.constant 0 : index
    %c0_23 = arith.constant 0 : index
    %25 = vector.load %arg11[%c0_22, %c0_23] : memref<1x256xf32, #tpu.memory_space<vmem>>, vector<1x256xf32>
    %26 = vector.broadcast %25 : vector<1x256xf32> to vector<16x256xf32>
    %27 = arith.addf %24, %26 : vector<16x256xf32>
    %cst_24 = arith.constant 0.000000e+00 : f32
    %28 = vector.broadcast %cst_24 : f32 to vector<16x256xf32>
    %29 = arith.maximumf %27, %28 : vector<16x256xf32>
    %30 = arith.truncf %29 : vector<16x256xf32> to vector<16x256xbf16>
    %c0_25 = arith.constant 0 : index
    %c0_26 = arith.constant 0 : index
    %31 = vector.load %arg8[%c0_25, %c0_26] : memref<256x512xbf16, #tpu.memory_space<vmem>>, vector<256x512xbf16>
    %cst_27 = arith.constant dense<0.000000e+00> : vector<16x512xf32>
    %32 = tpu.matmul %30, %31, %cst_27 {dimension_numbers = #tpu.dot_dimension_numbers<[1], [0], [0], [1], [0, 0, 1, 1], [], []>} : vector<16x256xbf16>, vector<256x512xbf16>, vector<16x512xf32> -> vector<16x512xf32>
    %c0_28 = arith.constant 0 : index
    %c0_29 = arith.constant 0 : index
    %33 = vector.load %arg12[%c0_28, %c0_29] : memref<1x512xf32, #tpu.memory_space<vmem>>, vector<1x512xf32>
    %34 = vector.broadcast %33 : vector<1x512xf32> to vector<16x512xf32>
    %35 = arith.addf %32, %34 : vector<16x512xf32>
    %cst_30 = arith.constant 0.000000e+00 : f32
    %36 = vector.broadcast %cst_30 : f32 to vector<16x512xf32>
    %37 = arith.maximumf %35, %36 : vector<16x512xf32>
    %c0_31 = arith.constant 0 : index
    %c0_32 = arith.constant 0 : index
    %c0_33 = arith.constant 0 : index
    %38 = vector.load %arg13[%c0_31, %c0_32, %c0_33] : memref<1x16x512xf32, #tpu.memory_space<vmem>>, vector<1x16x512xf32>
    %39 = vector.shape_cast %38 : vector<1x16x512xf32> to vector<16x512xf32>
    %40 = vector.shape_cast %37 : vector<16x512xf32> to vector<1x16x512xf32>
    tpu.vector_store %arg13[%c0_31, %c0_32, %c0_33], %40 {strides = array<i32>} : memref<1x16x512xf32, #tpu.memory_space<vmem>>, vector<1x16x512xf32>,
    %cst_34 = arith.constant dense<0xFF800000> : vector<512xf32>
    %41 = vector.multi_reduction <maximumf>, %37, %cst_34 [0] : vector<16x512xf32> to vector<512xf32>
    %42 = vector.shape_cast %41 : vector<512xf32> to vector<1x512xf32>
    %c0_i32 = arith.constant 0 : i32
    %43 = arith.cmpi eq, %arg1, %c0_i32 : i32
    %44 = arith.extui %43 : i1 to i32
    %c0_i32_35 = arith.constant 0 : i32
    %45 = arith.cmpi ne, %44, %c0_i32_35 : i32
    scf.if %45 {
      %cst_42 = arith.constant 0xFF800000 : f32
      %52 = vector.broadcast %cst_42 : f32 to vector<1x512xf32>
      %c0_43 = arith.constant 0 : index
      %c0_44 = arith.constant 0 : index
      %53 = vector.load %arg15[%c0_43, %c0_44] : memref<1x512xf32, #tpu.memory_space<vmem>>, vector<1x512xf32>
      tpu.vector_store %arg15[%c0_43, %c0_44], %52 {strides = array<i32>} : memref<1x512xf32, #tpu.memory_space<vmem>>, vector<1x512xf32>,
    } else {
    }
    %c0_36 = arith.constant 0 : index
    %c0_37 = arith.constant 0 : index
    %46 = vector.load %arg15[%c0_36, %c0_37] : memref<1x512xf32, #tpu.memory_space<vmem>>, vector<1x512xf32>
    %47 = arith.maximumf %46, %42 : vector<1x512xf32>
    %c0_38 = arith.constant 0 : index
    %c0_39 = arith.constant 0 : index
    %48 = vector.load %arg15[%c0_38, %c0_39] : memref<1x512xf32, #tpu.memory_space<vmem>>, vector<1x512xf32>
    tpu.vector_store %arg15[%c0_38, %c0_39], %47 {strides = array<i32>} : memref<1x512xf32, #tpu.memory_space<vmem>>, vector<1x512xf32>,
    %c0_i32_40 = arith.constant 0 : i32
    %49 = arith.cmpi eq, %arg1, %c0_i32_40 : i32
    %50 = arith.extui %49 : i1 to i32
    %c0_i32_41 = arith.constant 0 : i32
    %51 = arith.cmpi ne, %50, %c0_i32_41 : i32
    scf.if %51 {
      %c0_42 = arith.constant 0 : index
      %c0_43 = arith.constant 0 : index
      %52 = vector.load %arg15[%c0_42, %c0_43] : memref<1x512xf32, #tpu.memory_space<vmem>>, vector<1x512xf32>
      %c0_44 = arith.constant 0 : index
      %c0_45 = arith.constant 0 : index
      %c0_46 = arith.constant 0 : index
      %53 = vector.load %arg14[%c0_44, %c0_45, %c0_46] : memref<1x1x512xf32, #tpu.memory_space<vmem>>, vector<1x1x512xf32>
      %54 = vector.shape_cast %53 : vector<1x1x512xf32> to vector<1x512xf32>
      %55 = vector.shape_cast %52 : vector<1x512xf32> to vector<1x1x512xf32>
      tpu.vector_store %arg14[%c0_44, %c0_45, %c0_46], %55 {strides = array<i32>} : memref<1x1x512xf32, #tpu.memory_space<vmem>>, vector<1x1x512xf32>,
    } else {
    }
    return
  }
  func.func @transform_0(%arg0: i32, %arg1: i32) -> (i32, i32, i32) {
    %c0_i32 = arith.constant 0 : i32
    %c0_i32_0 = arith.constant 0 : i32
    return %arg0, %arg1, %c0_i32 : i32, i32, i32
  }
  func.func @transform_1(%arg0: i32, %arg1: i32) -> (i32, i32, i32) {
    %c0_i32 = arith.constant 0 : i32
    %c0_i32_0 = arith.constant 0 : i32
    return %arg0, %arg1, %c0_i32 : i32, i32, i32
  }
  func.func @transform_2(%arg0: i32, %arg1: i32) -> (i32, i32) {
    %c0_i32 = arith.constant 0 : i32
    %c0_i32_0 = arith.constant 0 : i32
    %c0_i32_1 = arith.constant 0 : i32
    return %c0_i32, %c0_i32_0 : i32, i32
  }
  func.func @transform_3(%arg0: i32, %arg1: i32) -> (i32, i32) {
    %c0_i32 = arith.constant 0 : i32
    %c0_i32_0 = arith.constant 0 : i32
    %c0_i32_1 = arith.constant 0 : i32
    return %c0_i32, %c0_i32_0 : i32, i32
  }
  func.func @transform_4(%arg0: i32, %arg1: i32) -> (i32, i32) {
    %c0_i32 = arith.constant 0 : i32
    %c0_i32_0 = arith.constant 0 : i32
    %c0_i32_1 = arith.constant 0 : i32
    return %c0_i32, %c0_i32_0 : i32, i32
  }
  func.func @transform_5(%arg0: i32, %arg1: i32) -> (i32, i32) {
    %c0_i32 = arith.constant 0 : i32
    %c0_i32_0 = arith.constant 0 : i32
    %c0_i32_1 = arith.constant 0 : i32
    return %c0_i32, %c0_i32_0 : i32, i32
  }
  func.func @transform_6(%arg0: i32, %arg1: i32) -> (i32, i32) {
    %c0_i32 = arith.constant 0 : i32
    %c0_i32_0 = arith.constant 0 : i32
    %c0_i32_1 = arith.constant 0 : i32
    return %c0_i32, %c0_i32_0 : i32, i32
  }
  func.func @transform_7(%arg0: i32, %arg1: i32) -> (i32, i32) {
    %c0_i32 = arith.constant 0 : i32
    %c0_i32_0 = arith.constant 0 : i32
    %c0_i32_1 = arith.constant 0 : i32
    return %c0_i32, %c0_i32_0 : i32, i32
  }
  func.func @transform_8(%arg0: i32, %arg1: i32) -> (i32, i32) {
    %c0_i32 = arith.constant 0 : i32
    %c0_i32_0 = arith.constant 0 : i32
    %c0_i32_1 = arith.constant 0 : i32
    return %c0_i32, %c0_i32_0 : i32, i32
  }
  func.func @transform_9(%arg0: i32, %arg1: i32) -> (i32, i32) {
    %c0_i32 = arith.constant 0 : i32
    %c0_i32_0 = arith.constant 0 : i32
    %c0_i32_1 = arith.constant 0 : i32
    return %c0_i32, %c0_i32_0 : i32, i32
  }
  func.func @transform_10(%arg0: i32, %arg1: i32) -> (i32, i32) {
    %c0_i32 = arith.constant 0 : i32
    %c0_i32_0 = arith.constant 0 : i32
    %c0_i32_1 = arith.constant 0 : i32
    return %c0_i32, %c0_i32_0 : i32, i32
  }
  func.func @transform_11(%arg0: i32, %arg1: i32) -> (i32, i32, i32) {
    %c0_i32 = arith.constant 0 : i32
    %c0_i32_0 = arith.constant 0 : i32
    return %arg0, %arg1, %c0_i32 : i32, i32, i32
  }
  func.func @transform_12(%arg0: i32, %arg1: i32) -> (i32, i32, i32) {
    %c0_i32 = arith.constant 0 : i32
    %c0_i32_0 = arith.constant 0 : i32
    %c0_i32_1 = arith.constant 0 : i32
    return %arg0, %c0_i32, %c0_i32_0 : i32, i32, i32
  }
}

</mosaic_0001>

<bundles_post_ra>
// kernel: xyznet_forward.4
= control target key start
LH: loop header
LB: loop body
LE: loop exit
PB: predicated region body
PF: predicated region fallthrough
CT: control target
= control target key end

     0   :  { %11 = vsyncpa [#allocation3], 0  ;;  %s1598_s0 = inlined_call_operand.vmem [shape: bf16[2,9,9,6], index: 0, kind: input, shape index: {}]   ;;  %s1599_s1 = inlined_call_operand.vmem [shape: bf16[2,9,9,6], index: 1, kind: input, shape index: {}]   ;;  %s1600_s2 = inlined_call_operand.vmem [shape: bf16[2,9,9,6], index: 2, kind: input, shape index: {}]   ;;  %s1601_s3 = inlined_call_operand.vmem [shape: bf16[2,9,9,6], index: 3, kind: input, shape index: {}]   ;;  %s1602_s4 = inlined_call_operand.hbm [shape: bf16[9,6,64], index: 4, kind: input, shape index: {}]   ;;  %s1603_s5 = inlined_call_operand.hbm [shape: f32[1,64], index: 5, kind: input, shape index: {}]   ;;  %s1604_s6 = inlined_call_operand.vmem [shape: bf16[2,8,8,64], index: 6, kind: output, shape index: {}]  }
   0x1   :  { %12 = vsyncpa [#allocation5], 0  ;;  %s1372_s21 = smov 0   ;;  %s1374_s22 = smov 0  }
   0x2   :  { %s1376_s23 = smov 0  }
   0x3 LB: > { %s1056_s24 = sadd.s32 4294967295, %s1325_s23   ;;  %s30_s25 = sadd.s32 1, %s1321_s22  ;;  %s1325_s23 = sphi %s1376_s23, %s18_s23   ;;  %s1321_s22 = sphi %s1374_s22, %s1614_s22   ;;  %s1317_s21 = sphi %s1372_s21, %s1613_s21  }
   0x4   : > { %p32_p0 = scmp.ge.s32.totalorder %s30_s25, 2  ;;  %p1058_p1 = scmp.ge.s32.totalorder %s1325_s23, 1 }
   0x5   : > { %p219_p2 = scmp.lt.s32.totalorder %s1325_s23, 3  ;;  %p1397_p4 = scmp.eq.s32.totalorder %s1056_s24, 0 }
   0x6   : > { %s1616_s25 = smov (%p32_p0, %s30_s25), 0  ;;  %s1331_s28 = smov [#allocation2]  }
   0x7   : > { %p1393_p3 = pnand %p1058_p1, %p219_p2  ;;  %s233_s29 = sshll.u32 %s1331_s28, 4  ;;  %s234_s29 = int_to_ptr.vmem [resolvable:$true] %s233_s29 }
   0x8   : > { %s1609_s27 = scalar_select %p1397_p4, 1, 0 }
   0x9   : > { %s1608_s26 = scalar_select %p1393_p3, 1, 0 }
   0xa   : > { %p1183_p5 = pneg %p1393_p3  ;;  %s1332_s7 = smov [#allocation4]  }
   0xb   : > { %s249_s8 = sshll.u32 %s1332_s7, 4  ;;  %s1235_s11 = scalar_lea.hbm %s1602_s4, 576  ;;  %s1409_s8 = int_to_ptr.vmem [resolvable:$true] %s249_s8 }
   0xc   : > { %p1405_p6 = pnand %p1397_p4, %p1183_p5  ;;  %p1236_p7 = scmp.ne.s32.totalorder %s1602_s4, %s1235_s11 }
   0xd   : > { %p1242_p11 = scmp.lt.u32.totalorder %s1235_s11, %s1602_s4 }
   0xe   : > { %p1237_p8 = pneg %p1405_p6 }
  0x10   : > { %p1238_p9 = pnand %p1237_p8, %p1236_p7 }
  0x12   : > { %p1239_p10 = pneg %p1238_p9 }
  0x14   : > { %p1244_p12 = pnand %p1242_p11, %p1239_p10 }
  0x16   : > { %1247 = shalt.err (!%p1244_p12)
}
  0x17   : > { %s1248_s16 = scalar_lea.vmem %s234_s29, 576  ;;  %p1256_p2 = scmp.lt.s32.totalorder %s234_s29, %s234_s29 }
  0x18   : > { %p1249_p13 = scmp.ne.s32.totalorder %s234_s29, %s1248_s16  ;;  %p1257_p5 = scmp.lt.s32.totalorder %s1248_s16, %s1248_s16 }
  0x1a   : > { %p1251_p0 = pnand %p1249_p13, %p1237_p8  ;;  %p1258_p4 = por %p1257_p5, %p1256_p2 }
  0x1c   : > { %p1252_p1 = pneg %p1251_p0 }
  0x1e   : > { %p1259_p3 = pnand %p1258_p4, %p1252_p1 }
  0x20   : > { %1262 = shalt.err (!%p1259_p3)
}
  0x21   : > { %s1333_s17 = smov 64   ;;  %s1334_s18 = smov 4  }
  0x22   : > { %1186 = dma.hbm_to_vmem [thread:$0]  (!%p1405_p6), %s1602_s4, 576, %s234_s29, [#allocation3], %s1333_s17, %s1333_s17, %s1334_s18  }
  0x23   : > { %s1263_s7 = scalar_lea.hbm %s1603_s5, 16 }
  0x24   : > { %p1264_p7 = scmp.ne.s32.totalorder %s1603_s5, %s1263_s7  ;;  %p1270_p9 = scmp.lt.u32.totalorder %s1263_s7, %s1603_s5 }
  0x26   : > { %p1266_p3 = pnand %p1264_p7, %p1237_p8 }
  0x28   : > { %p1267_p4 = pneg %p1266_p3 }
  0x2a   : > { %p1272_p10 = pnand %p1270_p9, %p1267_p4 }
  0x2c   : > { %1275 = shalt.err (!%p1272_p10)
}
  0x2d   : > { %s1276_s29 = scalar_lea.vmem %s1409_s8, 16  ;;  %s1283_s13 = scalar_lea.vmem %s1409_s8, 32 }
  0x2e   : > { %p1277_p11 = scmp.ne.s32.totalorder %s1409_s8, %s1276_s29  ;;  %p1284_p0 = scmp.lt.s32.totalorder %s1409_s8, %s1409_s8 }
  0x2f   : > { %p1285_p1 = scmp.lt.s32.totalorder %s1283_s13, %s1276_s29 }
  0x30   : > { %p1279_p12 = pnand %p1277_p11, %p1237_p8 }
  0x31   : > { %p1286_p2 = por %p1285_p1, %p1284_p0 }
  0x32   : > { %p1280_p13 = pneg %p1279_p12 }
  0x34   : > { %p1287_p5 = pnand %p1286_p2, %p1280_p13 }
  0x36   : > { %1290 = shalt.err (!%p1287_p5)
}
  0x37   : > { %1189 = dma.hbm_to_vmem [thread:$0]  (!%p1405_p6), %s1603_s5, 16, %s1409_s8, [#allocation5]  }
  0x38   : > { %p1611_p7 = scmp.ne.s32.totalorder %s1608_s26, 0 }
  0x39   : > { %p1612_p8 = scmp.ne.s32.totalorder (!%p1611_p7), %s1609_s27, 0 }
  0x3a   : > { %294 = sbr.rel (%p1611_p7) target bundleno = 333 (0x14d), region = 44 }
  0x41   : > { %1308 = dma.done.wait (%p1612_p8), [#allocation3], 576  }
  0x42   : > { %1310 = vsyncadd (%p1612_p8), [#allocation3], 4294966720 }
  0x43   : > { %1312 = dma.done.wait (%p1612_p8), [#allocation5], 16  }
  0x44   : > { %1314 = vsyncadd (%p1612_p8), [#allocation5], 4294967280  ;;  %p346_p3 = scmp.lt.s32.totalorder %s1317_s21, 1  ;;  %v1486_v0 = vld [vmem:[#allocation4] ss:$0 sm:$0xff]  ;;  %s1496_s29 = smov 0  }
  0x46   : > { %s1618_s21 = smov (!%p346_p3, %s1317_s21), 1 }
  0x47   : > { %s1471_s30 = smul.u32 72, %s1618_s21  ;;  %s1097_s26 = sshll.u32 %s1618_s21, 5 }
  0x48   : > { %s1476_s17 = scalar_lea.vmem %s1604_s6, %s1097_s26 }
  0x49   : > { %s350_s27 = scalar_lea.vmem %s1598_s0, %s1471_s30  ;;  %s355_s28 = scalar_lea.vmem %s1599_s1, %s1471_s30 }
  0x4a   : > { %s360_s10 = scalar_lea.vmem %s1600_s2, %s1471_s30  ;;  %s365_s12 = scalar_lea.vmem %s1601_s3, %s1471_s30 }
  0x4b LB: >> { %v392_v1 = vld [vmem:[#allocation2 + $0x4] sm:$0x7]  ;;  %vm397_vm0 = vcmask 1042432   ;;  %v387_v2 = vld [vmem:[#allocation2] sm:$0x7]  ;;  %v1335_v3 = vmov 0.0   ;;  %s1329_s29 = sphi %s1496_s29, %s381_s29  }
  0x4c   : >> { %1120 = vmatprep.subr.bf16.mxu0 %v1335_v3  ;;  %v399_v4 = vsel %vm397_vm0, %v392_v1, 0  ;;  %1126 = vmatprep.subr.bf16.mxu1 %v1335_v3  ;;  %v445_v5 = vsel %vm397_vm0, %v387_v2, 0  ;;  %v488_v6 = vld [vmem:[#allocation2 + $0x8] sm:$0x7]  ;;  %s1506_s13 = sshll.u32 %s1329_s29, 3  ;;  %vm393_vm1 = vcmask 48128  }
  0x4d   : >> { %1121 = vmatpush3.bf16.msra.mxu0 %v399_v4  ;;  %1127 = vmatpush3.bf16.msra.mxu1 %v445_v5  ;;  %v553_v7 = vld [vmem:[#allocation2 + $0xc] sm:$0x7]  ;;  %vm1336_vm2 = vmmov 0   ;;  %s1516_s26 = scalar_lea.vmem %s355_s28, %s1506_s13  ;;  %s1526_s18 = scalar_lea.vmem %s350_s27, %s1506_s13  ;;  %v505_v8 = vsel %vm397_vm0, %v488_v6, 0  ;;  %v654_v19 = vld [vmem:[#allocation2 + $0x14] sm:$0x7] }
  0x4e   : >> { %1122 = vmatprep.mubr.msk.bf16.mxu0 %vm1336_vm2, %v1335_v3  ;;  %1128 = vmatprep.mubr.msk.bf16.mxu1 %vm1336_vm2, %v1335_v3  ;;  %v390_v9 = vld [vmem:[%s1516_s26] sm:$0xf]  ;;  %v558_v11 = vsel %vm397_vm0, %v553_v7, 0  ;;  %s549_s24 = scalar_lea.vmem %s360_s10, %s1506_s13  ;;  %v386_v12 = vld [vmem:[%s1526_s18 + $0x4] sm:$0x1]  ;;  %v671_v23 = vsel %vm397_vm0, %v654_v19, 0  ;;  %s602_s21 = scalar_lea.vmem %s365_s12, %s1506_s13 }
  0x4f   : >> { %1132 = vmatprep.subr.bf16.mxu0 %v1335_v3  ;;  %v385_v10 = vld [vmem:[%s1526_s18] sm:$0xf]  ;;  %1138 = vmatprep.subr.bf16.mxu1 %v1335_v3  ;;  %v551_v14 = vld [vmem:[%s549_s24 + $0x4] sm:$0x1]  ;;  %v605_v20 = vld [vmem:[#allocation2 + $0x10] sm:$0x7] }
  0x50   : >> { %1123 = vmatmul.mubr.msk.bf16.vlgmr.msra.gmra.mrb[0].mxu0 %vm393_vm1, %v390_v9  ;;  %1129 = vmatmul.mubr.msk.bf16.vlgmr.msra.gmra.mrb[0].mxu1 %vm393_vm1, %v385_v10  ;;  %v550_v13 = vld [vmem:[%s549_s24] sm:$0xf]  ;;  %v1076_v15 = vcombine.low %v385_v10, %v386_v12  ;;  %v610_v25 = vsel %vm397_vm0, %v605_v20, 0  ;;  %v773_v28 = vld [vmem:[#allocation2 + $0x1c] sm:$0x7]  ;;  %s1094_s11 = sshll.u32 %s1329_s29, 2 }
  0x51   : >> { %1133 = vmatpush3.bf16.msra.mxu0 %v505_v8  ;;  %1134 = vmatprep.mubr.msk.bf16.mxu0 %vm1336_vm2, %v1335_v3  ;;  %v1082_v16 = vcombine.low %v550_v13, %v551_v14  ;;  %v721_v30 = vld [vmem:[#allocation2 + $0x18] sm:$0x7]  ;;  %v603_v31 = vld [vmem:[%s602_s21] sm:$0xf]  ;;  %v778_v32 = vsel %vm397_vm0, %v773_v28, 0  ;;  %s892_s13 = scalar_lea.vmem %s1476_s17, %s1094_s11  ;;  %vm893_vm3 = vcmask 519168  }
  0x52   : >> { %1139 = vmatpush3.bf16.msra.mxu1 %v558_v11  ;;  %1144 = vmatprep.subr.bf16.mxu0 %v1335_v3  ;;  %v495_v17 = vshrl.u32 %v1076_v15, 16  ;;  %v497_v18 = vshll.u32 %v1076_v15, 16  ;;  %v1085_v33 = vld [vmem:[%s1526_s18 + $0x8] sm:$0xf]  ;;  %v1086_v34 = vld [vmem:[%s1526_s18 + $0xc] sm:$0x1] }
  0x53   : >> { %1140 = vmatprep.mubr.msk.bf16.mxu1 %vm1336_vm2, %v1335_v3  ;;  %1150 = vmatprep.subr.bf16.mxu1 %v1335_v3  ;;  %v663_v21 = vshll.u32 %v1082_v16, 16  ;;  %v661_v26 = vshrl.u32 %v1082_v16, 16  ;;  %v726_v35 = vsel %vm397_vm0, %v721_v30, 0  ;;  %v1091_v36 = vcombine.low %v1085_v33, %v1086_v34  ;;  %v822_v37 = vld [vmem:[#allocation2 + $0x20] sm:$0x7]  ;;  %s381_s29 = sadd.s32 1, %s1329_s29  }
  0x54   : >> { %v499_v22 = vrot.slane %v497_v18, 1  ;;  %v1089_v38 = vld [vmem:[%s1516_s26 + $0x8] sm:$0xf]  ;;  %v839_v40 = vsel %vm397_vm0, %v822_v37, 0  ;;  %p378_p6 = scmp.ge.s32.totalorder %s381_s29, 8  }
  0x55   : >> { %v665_v27 = vrot.slane %v663_v21, 1  ;;  %v831_v39 = vshll.u32 %v1091_v36, 16  ;;  %v829_v41 = vshrl.u32 %v1091_v36, 16 }
  0x56   : >> { %v500_v24 = vor.u32 %v499_v22, %v495_v17 }
  0x57   : >> { %v666_v29 = vor.u32 %v665_v27, %v661_v26  ;;  %v833_v42 = vrot.slane %v831_v39, 1 }
  0x58   : >> { %1141 = vmatmul.mubr.msk.bf16.vlgmr.msra.gmra.mrb[4].mxu1 %vm393_vm1, %v550_v13  ;;  %1135 = vmatmul.mubr.msk.bf16.vlgmr.msra.gmra.mrb[4].mxu0 %vm393_vm1, %v500_v24 }
  0x59   : >> { %1151 = vmatpush3.bf16.msra.mxu1 %v671_v23  ;;  %1145 = vmatpush3.bf16.msra.mxu0 %v610_v25  ;;  %v834_v43 = vor.u32 %v833_v42, %v829_v41 }
  0x5a   : >> { %1146 = vmatprep.mubr.msk.bf16.mxu0 %vm1336_vm2, %v1335_v3  ;;  %1156 = vmatprep.subr.bf16.mxu0 %v1335_v3 }
  0x5b   : >> { %1152 = vmatprep.mubr.msk.bf16.mxu1 %vm1336_vm2, %v1335_v3  ;;  %1162 = vmatprep.subr.bf16.mxu1 %v1335_v3 }
  0x60   : >> { %1153 = vmatmul.mubr.msk.bf16.vlgmr.msra.gmra.mrb[8].mxu1 %vm393_vm1, %v666_v29  ;;  %1147 = vmatmul.mubr.msk.bf16.vlgmr.msra.gmra.mrb[8].mxu0 %vm393_vm1, %v603_v31 }
  0x61   : >> { %1163 = vmatpush3.bf16.msra.mxu1 %v778_v32  ;;  %1157 = vmatpush3.bf16.msra.mxu0 %v726_v35 }
  0x62   : >> { %1158 = vmatprep.mubr.msk.bf16.mxu0 %vm1336_vm2, %v1335_v3  ;;  %1168 = vmatprep.subr.bf16.mxu0 %v1335_v3 }
  0x63   : >> { %1164 = vmatprep.mubr.msk.bf16.mxu1 %vm1336_vm2, %v1335_v3 }
  0x68   : >> { %1165 = vmatmul.mubr.msk.bf16.vlgmr.msra.gmra.mrb[12].mxu1 %vm393_vm1, %v1089_v38  ;;  %1159 = vmatmul.mubr.msk.bf16.vlgmr.msra.gmra.mrb[12].mxu0 %vm393_vm1, %v1085_v33 }
  0x69   : >> { %1169 = vmatpush3.bf16.msra.mxu0 %v839_v40  ;;  %1170 = vmatprep.mubr.msk.bf16.mxu0 %vm1336_vm2, %v1335_v3 }
  0x70   : >> { %1171 = vmatmul.mubr.msk.bf16.vlgmr.msra.gmra.mrb[16].mxu0 %vm393_vm1, %v834_v43 }
 0x123   : >> { %v435_v44 = vpop.f32.mrb[0].mxu0  ;;  %v481_v45 = vpop.f32.mrb[0].mxu1 }
 0x124   : >> { %v1124_v46 = vpop.f32.mrb[1].mxu0  ;;  %v482_v47 = vadd.f32 %v481_v45, %v435_v44  ;;  %v1130_v48 = vpop.f32.mrb[1].mxu1 }
 0x125   : >> { %v438_v49 = vpop.f32.mrb[2].mxu0  ;;  %v484_v50 = vpop.f32.mrb[2].mxu1 }
 0x126   : >> { %v1125_v51 = vpop.f32.mrb[3].mxu0  ;;  %v1131_v52 = vpop.f32.mrb[3].mxu1 }
 0x12b   : >> { %v594_v53 = vpop.f32.mrb[4].mxu1  ;;  %v541_v54 = vpop.f32.mrb[4].mxu0 }
 0x12c   : >> { %v1142_v55 = vpop.f32.mrb[5].mxu1  ;;  %v547_v56 = vadd.f32 %v541_v54, %v482_v47  ;;  %v1136_v57 = vpop.f32.mrb[5].mxu0 }
 0x12d   : >> { %v597_v58 = vpop.f32.mrb[6].mxu1  ;;  %v544_v59 = vpop.f32.mrb[6].mxu0 }
 0x12e   : >> { %v1143_v60 = vpop.f32.mrb[7].mxu1  ;;  %v600_v61 = vadd.f32 %v594_v53, %v547_v56  ;;  %v1137_v62 = vpop.f32.mrb[7].mxu0 }
 0x133   : >> { %v707_v63 = vpop.f32.mrb[8].mxu1  ;;  %v646_v1 = vpop.f32.mrb[8].mxu0 }
 0x134   : >> { %v1154_v2 = vpop.f32.mrb[9].mxu1  ;;  %v652_v3 = vadd.f32 %v646_v1, %v600_v61  ;;  %v1148_v4 = vpop.f32.mrb[9].mxu0 }
 0x135   : >> { %v710_v5 = vpop.f32.mrb[10].mxu1  ;;  %v649_v6 = vpop.f32.mrb[10].mxu0 }
 0x136   : >> { %v1155_v7 = vpop.f32.mrb[11].mxu1  ;;  %v713_v8 = vadd.f32 %v707_v63, %v652_v3  ;;  %v1149_v9 = vpop.f32.mrb[11].mxu0 }
 0x13b   : >> { %v814_v10 = vpop.f32.mrb[12].mxu1  ;;  %v762_v11 = vpop.f32.mrb[12].mxu0 }
 0x13c   : >> { %v1166_v12 = vpop.f32.mrb[13].mxu1  ;;  %v768_v13 = vadd.f32 %v762_v11, %v713_v8  ;;  %v1160_v14 = vpop.f32.mrb[13].mxu0 }
 0x13d   : >> { %v817_v15 = vpop.f32.mrb[14].mxu1  ;;  %v765_v16 = vpop.f32.mrb[14].mxu0 }
 0x13e   : >> { %v1167_v17 = vpop.f32.mrb[15].mxu1  ;;  %v820_v18 = vadd.f32 %v814_v10, %v768_v13  ;;  %v1161_v19 = vpop.f32.mrb[15].mxu0 }
 0x143   : >> { %v875_v20 = vpop.f32.mrb[16].mxu0 }
 0x144   : >> { %v881_v21 = vadd.f32 %v875_v20, %v820_v18  ;;  %v1172_v22 = vpop.f32.mrb[17].mxu0 }
 0x145   : >> { %v878_v23 = vpop.f32.mrb[18].mxu0 }
 0x146   : >> { %v888_v24 = vadd.f32 %v1486_v0, %v881_v21  ;;  %v1173_v25 = vpop.f32.mrb[19].mxu0  ;;  %380 = sbr.rel (!%p378_p6) target bundleno = 75 (0x4b), region = 116 }
 0x148   : >> { %v889_v26 = vmax.f32 %v888_v24, 0.0 }
 0x14a   : >> { %v890_v27 = vpack.c.bf16 %v889_v26, %v889_v26 }
 0x14c   : >> { %894 = vst.msk [vmem:[%s892_s13] sm:$0xf] %vm893_vm3, %v890_v27 }
 0x14d PF: > { %s18_s23 = sadd.s32 1, %s1325_s23   ;;  %s1613_s21 = smov %s1321_s22 }
 0x14e   : > { %p15_p4 = scmp.ge.s32.totalorder %s18_s23, 4   ;;  %s1614_s22 = smov %s1616_s25 }
 0x150   :  { %17 = sbr.rel (!%p15_p4) target bundleno = 3 (0x3), region = 127 }
 0x157   :  { %922 = vsyncpa [#allocation3], 1 }
 0x158   :  { %924 = vsyncpa [#allocation3 + $0x1], 1 }
 0x159   :  { %925 = vsyncpa [#allocation5], 1 }

// kernel: xyznet_forward.5
= control target key start
LH: loop header
LB: loop body
LE: loop exit
PB: predicated region body
PF: predicated region fallthrough
CT: control target
= control target key end

     0   :  { %s1719_s21 = smov 0   ;;  %s1721_s22 = smov 0   ;;  %s1991_s0 = inlined_call_operand.vmem [shape: bf16[2,5,5,64], index: 0, kind: input, shape index: {}]   ;;  %s1992_s1 = inlined_call_operand.vmem [shape: bf16[2,5,5,64], index: 1, kind: input, shape index: {}]   ;;  %s1993_s2 = inlined_call_operand.vmem [shape: bf16[2,5,5,64], index: 2, kind: input, shape index: {}]   ;;  %s1994_s3 = inlined_call_operand.vmem [shape: bf16[2,5,5,64], index: 3, kind: input, shape index: {}]   ;;  %s1995_s4 = inlined_call_operand.vmem [shape: bf16[9,64,128], index: 4, kind: input, shape index: {}]   ;;  %s1996_s5 = inlined_call_operand.vmem [shape: f32[1,128], index: 5, kind: input, shape index: {}]   ;;  %s1997_s6 = inlined_call_operand.vmem [shape: bf16[2,4,4,128], index: 6, kind: output, shape index: {}]  }
   0x1   :  { %s1723_s23 = smov 0  }
   0x2 LB: > { %s28_s24 = sadd.s32 1, %s1672_s22  ;;  %p1291_p0 = scmp.ge.s32.totalorder %s1676_s23, 1  ;;  %s1676_s23 = sphi %s1723_s23, %s16_s23   ;;  %s1672_s22 = sphi %s1721_s22, %s1999_s22   ;;  %s1668_s21 = sphi %s1719_s21, %s1998_s21  }
   0x3   : > { %p30_p1 = scmp.ge.s32.totalorder %s28_s24, 2  ;;  %p273_p2 = scmp.lt.s32.totalorder %s1676_s23, 3 }
   0x5   : > { %s2001_s24 = smov (%p30_p1, %s28_s24), 0  ;;  %p274_p3 = pnand %p1291_p0, %p273_p2 }
   0x6   : > { %p328_p4 = scmp.lt.s32.totalorder (!%p274_p3), %s1668_s21, 1  ;;  %v1740_v0 = vld [vmem:[%s1996_s5] ss:$0 sm:$0xff] (!%p274_p3)  ;;  %s1765_s20 = smov (!%p274_p3), 0  }
   0x7   : > { %277 = sbr.rel (%p274_p3) target bundleno = 321 (0x141), region = 44 }
   0xe   : > { %s2003_s21 = smov (!%p328_p4, %s1668_s21), 1 }
   0xf   : > { %s1742_s27 = smul.u32 20, %s2003_s21  ;;  %s1422_s28 = sshll.u32 %s2003_s21, 3 }
  0x10   : > { %s1747_s7 = scalar_lea.vmem %s1997_s6, %s1422_s28 }
  0x11   : > { %s332_s10 = scalar_lea.vmem %s1991_s0, %s1742_s27  ;;  %s337_s13 = scalar_lea.vmem %s1992_s1, %s1742_s27 }
  0x12   : > { %s342_s16 = scalar_lea.vmem %s1993_s2, %s1742_s27  ;;  %s347_s19 = scalar_lea.vmem %s1994_s3, %s1742_s27 }
  0x13 LB: >> { %v1611_v1 = vld [vmem:[%s1995_s4 + $0x20] sm:$0xff]   ;;  %v1682_v2 = vmov 0.0   ;;  %v1613_v4 = vld [vmem:[%s1995_s4 + $0x28] sm:$0xff]   ;;  %vm1683_vm0 = vmmov 0   ;;  %v1615_v6 = vld [vmem:[%s1995_s4 + $0x30] sm:$0xff]   ;;  %s1794_s14 = sshll.u32 %s1680_s20, 2  ;;  %s1680_s20 = sphi %s1765_s20, %s370_s20  }
  0x14   : >> { %1468 = vmatprep.subr.bf16.mxu0 %v1682_v2  ;;  %1480 = vmatprep.subr.bf16.mxu1 %v1682_v2  ;;  %v1612_v3 = vld [vmem:[%s1995_s4] sm:$0xff]   ;;  %v1614_v5 = vld [vmem:[%s1995_s4 + $0x8] sm:$0xff]   ;;  %v1616_v7 = vld [vmem:[%s1995_s4 + $0x10] sm:$0xff]   ;;  %s1807_s25 = scalar_lea.vmem %s337_s13, %s1794_s14  ;;  %s1818_s8 = scalar_lea.vmem %s332_s10, %s1794_s14  ;;  %vm418_vm1 = vcmask 523264  }
  0x15   : >> { %1469 = vmatpush3.bf16.msra.mxu0 %v1611_v1  ;;  %1476 = vmatprep.mubr.msk.bf16.mxu0 %vm1683_vm0, %v1682_v2  ;;  %v1617_v8 = vld [vmem:[%s1995_s4 + $0x38] sm:$0xff]   ;;  %v384_v10 = vld [vmem:[%s1807_s25] sm:$0x7]  ;;  %v1623_v15 = vld [vmem:[%s1995_s4 + $0x48] sm:$0xff]   ;;  %s617_s29 = scalar_lea.vmem %s342_s16, %s1794_s14  ;;  %s697_s21 = scalar_lea.vmem %s347_s19, %s1794_s14 }
  0x16   : >> { %1481 = vmatpush3.bf16.msra.mxu1 %v1612_v3  ;;  %1470 = vmatprep.subr.bf16.mxu0 %v1682_v2  ;;  %v1618_v9 = vld [vmem:[%s1995_s4 + $0x18] sm:$0xff]   ;;  %v373_v11 = vld [vmem:[%s1818_s8] sm:$0x7]  ;;  %v1624_v16 = vld [vmem:[%s1995_s4 + $0x68] sm:$0xff]   ;;  %s1419_s18 = sshll.u32 %s1680_s20, 1  ;;  %s370_s20 = sadd.s32 1, %s1680_s20  }
  0x17   : >> { %1482 = vmatprep.subr.bf16.mxu1 %v1682_v2  ;;  %1488 = vmatprep.mubr.msk.bf16.mxu1 %vm1683_vm0, %v1682_v2  ;;  %v1621_v12 = vld [vmem:[%s1995_s4 + $0x40] sm:$0xff]   ;;  %v1326_v14 = vcombine.low %v373_v11, %v373_v11  ;;  %v1625_v18 = vld [vmem:[%s1995_s4 + $0x50] sm:$0xff]   ;;  %v1627_v22 = vld [vmem:[%s1995_s4 + $0x58] sm:$0xff]   ;;  %p367_p5 = scmp.ge.s32.totalorder %s370_s20, 4  }
  0x18   : >> { %v1622_v13 = vld [vmem:[%s1995_s4 + $0x60] sm:$0xff]   ;;  %v1626_v19 = vld [vmem:[%s1995_s4 + $0x70] sm:$0xff]   ;;  %v1628_v23 = vld [vmem:[%s1995_s4 + $0x78] sm:$0xff]  }
  0x19   : >> { %1471 = vmatpush3.bf16.msra.mxu0 %v1613_v4  ;;  %v544_v17 = vshll.u32 %v1326_v14, 16  ;;  %v542_v20 = vshrl.u32 %v1326_v14, 16  ;;  %v1629_v25 = vld [vmem:[%s1995_s4 + $0x80] sm:$0xff]   ;;  %v1632_v29 = vld [vmem:[%s1995_s4 + $0x88] sm:$0xff]   ;;  %v1634_v32 = vld [vmem:[%s1995_s4 + $0x90] sm:$0xff]  }
  0x1a   : >> { %1483 = vmatpush3.bf16.msra.mxu1 %v1614_v5  ;;  %1472 = vmatprep.subr.bf16.mxu0 %v1682_v2  ;;  %v618_v26 = vld [vmem:[%s617_s29] sm:$0x7]  ;;  %v1633_v30 = vld [vmem:[%s1995_s4 + $0xa8] sm:$0xff]   ;;  %v1635_v33 = vld [vmem:[%s1995_s4 + $0xb0] sm:$0xff]  }
  0x1b   : >> { %1484 = vmatprep.subr.bf16.mxu1 %v1682_v2  ;;  %v546_v21 = vrot.slane %v544_v17, 1  ;;  %v1631_v27 = vld [vmem:[%s1995_s4 + $0xa0] sm:$0xff]   ;;  %v1368_v28 = vcombine.low %v618_v26, %v618_v26  ;;  %v1636_v36 = vld [vmem:[%s1995_s4 + $0x98] sm:$0xff]   ;;  %v1640_v42 = vld [vmem:[%s1995_s4 + $0xc8] sm:$0xff]  }
  0x1c   : >> { %v1637_v37 = vld [vmem:[%s1995_s4 + $0xb8] sm:$0xff]   ;;  %v698_v39 = vld [vmem:[%s697_s21] sm:$0x7]  ;;  %v1641_v43 = vld [vmem:[%s1995_s4 + $0xe8] sm:$0xff]   ;;  %s1121_s21 = scalar_lea.vmem %s1747_s7, %s1419_s18 }
  0x1d   : >> { %1473 = vmatpush3.bf16.msra.mxu0 %v1615_v6  ;;  %v547_v24 = vor.u32 %v546_v21, %v542_v20  ;;  %v791_v31 = vshll.u32 %v1368_v28, 16  ;;  %v789_v34 = vshrl.u32 %v1368_v28, 16  ;;  %v1638_v40 = vld [vmem:[%s1995_s4 + $0xc0] sm:$0xff]   ;;  %v1642_v44 = vld [vmem:[%s1995_s4 + $0xd0] sm:$0xff]   ;;  %v1644_v46 = vld [vmem:[%s1995_s4 + $0xd8] sm:$0xff]  }
  0x1e   : >> { %1485 = vmatpush3.bf16.msra.mxu1 %v1616_v7  ;;  %1474 = vmatprep.subr.bf16.mxu0 %v1682_v2  ;;  %v1639_v41 = vld [vmem:[%s1995_s4 + $0xe0] sm:$0xff]   ;;  %v1643_v45 = vld [vmem:[%s1995_s4 + $0xf0] sm:$0xff]   ;;  %v1645_v47 = vld [vmem:[%s1995_s4 + $0xf8] sm:$0xff]  }
  0x1f   : >> { %1486 = vmatprep.subr.bf16.mxu1 %v1682_v2  ;;  %v793_v35 = vrot.slane %v791_v31, 1  ;;  %v1375_v48 = vld [vmem:[%s1818_s8 + $0x4] sm:$0x7]  ;;  %v1647_v52 = vld [vmem:[%s1995_s4 + $0x108] sm:$0xff]   ;;  %v1648_v54 = vld [vmem:[%s1995_s4 + $0x110] sm:$0xff]  }
  0x20   : >> { %v1646_v49 = vld [vmem:[%s1995_s4 + $0x100] sm:$0xff]   ;;  %v1412_v51 = vcombine.low %v1375_v48, %v1375_v48  ;;  %v1649_v57 = vld [vmem:[%s1995_s4 + $0x118] sm:$0xff]  }
  0x21   : >> { %1475 = vmatpush3.bf16.msra.mxu0 %v1617_v8  ;;  %v794_v38 = vor.u32 %v793_v35, %v789_v34  ;;  %v1390_v50 = vld [vmem:[%s1807_s25 + $0x4] sm:$0x7] }
  0x22   : >> { %1487 = vmatpush3.bf16.msra.mxu1 %v1618_v9  ;;  %1492 = vmatprep.subr.bf16.mxu0 %v1682_v2  ;;  %v1039_v53 = vshll.u32 %v1412_v51, 16  ;;  %v1037_v55 = vshrl.u32 %v1412_v51, 16 }
  0x23   : >> { %1504 = vmatprep.subr.bf16.mxu1 %v1682_v2 }
  0x24   : >> { %1477 = vmatmul.mubr.msk.bf16.vlgmr.msra.gmra.mrb[0].mxu0 %vm418_vm1, %v384_v10  ;;  %v1041_v56 = vrot.slane %v1039_v53, 1 }
  0x25   : >> { %1489 = vmatmul.mubr.msk.bf16.vlgmr.msra.gmra.mrb[0].mxu1 %vm418_vm1, %v373_v11  ;;  %1493 = vmatpush3.bf16.msra.mxu0 %v1621_v12 }
  0x26   : >> { %1505 = vmatpush3.bf16.msra.mxu1 %v1622_v13  ;;  %1494 = vmatprep.subr.bf16.mxu0 %v1682_v2  ;;  %v1042_v58 = vor.u32 %v1041_v56, %v1037_v55 }
  0x27   : >> { %1506 = vmatprep.subr.bf16.mxu1 %v1682_v2  ;;  %1500 = vmatprep.mubr.msk.bf16.mxu0 %vm1683_vm0, %v1682_v2 }
  0x28   : >> { %1512 = vmatprep.mubr.msk.bf16.mxu1 %vm1683_vm0, %v1682_v2 }
  0x29   : >> { %1495 = vmatpush3.bf16.msra.mxu0 %v1623_v15 }
  0x2a   : >> { %1507 = vmatpush3.bf16.msra.mxu1 %v1624_v16  ;;  %1496 = vmatprep.subr.bf16.mxu0 %v1682_v2 }
  0x2b   : >> { %1508 = vmatprep.subr.bf16.mxu1 %v1682_v2 }
  0x2d   : >> { %1497 = vmatpush3.bf16.msra.mxu0 %v1625_v18 }
  0x2e   : >> { %1509 = vmatpush3.bf16.msra.mxu1 %v1626_v19  ;;  %1498 = vmatprep.subr.bf16.mxu0 %v1682_v2 }
  0x2f   : >> { %1510 = vmatprep.subr.bf16.mxu1 %v1682_v2 }
  0x31   : >> { %1499 = vmatpush3.bf16.msra.mxu0 %v1627_v22 }
  0x32   : >> { %1511 = vmatpush3.bf16.msra.mxu1 %v1628_v23  ;;  %1516 = vmatprep.subr.bf16.mxu0 %v1682_v2 }
  0x33   : >> { %1528 = vmatprep.subr.bf16.mxu1 %v1682_v2 }
  0x34   : >> { %1501 = vmatmul.mubr.msk.bf16.vlgmr.msra.gmra.mrb[4].mxu0 %vm418_vm1, %v547_v24 }
  0x35   : >> { %1517 = vmatpush3.bf16.msra.mxu0 %v1629_v25  ;;  %1513 = vmatmul.mubr.msk.bf16.vlgmr.msra.gmra.mrb[4].mxu1 %vm418_vm1, %v618_v26 }
  0x36   : >> { %1529 = vmatpush3.bf16.msra.mxu1 %v1631_v27  ;;  %1518 = vmatprep.subr.bf16.mxu0 %v1682_v2 }
  0x37   : >> { %1530 = vmatprep.subr.bf16.mxu1 %v1682_v2  ;;  %1524 = vmatprep.mubr.msk.bf16.mxu0 %vm1683_vm0, %v1682_v2 }
  0x38   : >> { %1536 = vmatprep.mubr.msk.bf16.mxu1 %vm1683_vm0, %v1682_v2 }
  0x39   : >> { %1519 = vmatpush3.bf16.msra.mxu0 %v1632_v29 }
  0x3a   : >> { %1531 = vmatpush3.bf16.msra.mxu1 %v1633_v30  ;;  %1520 = vmatprep.subr.bf16.mxu0 %v1682_v2 }
  0x3b   : >> { %1532 = vmatprep.subr.bf16.mxu1 %v1682_v2 }
  0x3d   : >> { %1521 = vmatpush3.bf16.msra.mxu0 %v1634_v32 }
  0x3e   : >> { %1533 = vmatpush3.bf16.msra.mxu1 %v1635_v33  ;;  %1522 = vmatprep.subr.bf16.mxu0 %v1682_v2 }
  0x3f   : >> { %1534 = vmatprep.subr.bf16.mxu1 %v1682_v2 }
  0x41   : >> { %1523 = vmatpush3.bf16.msra.mxu0 %v1636_v36 }
  0x42   : >> { %1535 = vmatpush3.bf16.msra.mxu1 %v1637_v37  ;;  %1540 = vmatprep.subr.bf16.mxu0 %v1682_v2 }
  0x43   : >> { %1552 = vmatprep.subr.bf16.mxu1 %v1682_v2 }
  0x44   : >> { %1525 = vmatmul.mubr.msk.bf16.vlgmr.msra.gmra.mrb[8].mxu0 %vm418_vm1, %v698_v39 }
  0x45   : >> { %1541 = vmatpush3.bf16.msra.mxu0 %v1638_v40  ;;  %1537 = vmatmul.mubr.msk.bf16.vlgmr.msra.gmra.mrb[8].mxu1 %vm418_vm1, %v794_v38 }
  0x46   : >> { %1553 = vmatpush3.bf16.msra.mxu1 %v1639_v41  ;;  %1542 = vmatprep.subr.bf16.mxu0 %v1682_v2 }
  0x47   : >> { %1554 = vmatprep.subr.bf16.mxu1 %v1682_v2  ;;  %1548 = vmatprep.mubr.msk.bf16.mxu0 %vm1683_vm0, %v1682_v2 }
  0x48   : >> { %1560 = vmatprep.mubr.msk.bf16.mxu1 %vm1683_vm0, %v1682_v2 }
  0x49   : >> { %1543 = vmatpush3.bf16.msra.mxu0 %v1640_v42 }
  0x4a   : >> { %1555 = vmatpush3.bf16.msra.mxu1 %v1641_v43  ;;  %1544 = vmatprep.subr.bf16.mxu0 %v1682_v2 }
  0x4b   : >> { %1556 = vmatprep.subr.bf16.mxu1 %v1682_v2 }
  0x4d   : >> { %1545 = vmatpush3.bf16.msra.mxu0 %v1642_v44 }
  0x4e   : >> { %1557 = vmatpush3.bf16.msra.mxu1 %v1643_v45  ;;  %1546 = vmatprep.subr.bf16.mxu0 %v1682_v2 }
  0x4f   : >> { %1558 = vmatprep.subr.bf16.mxu1 %v1682_v2 }
  0x51   : >> { %1547 = vmatpush3.bf16.msra.mxu0 %v1644_v46 }
  0x52   : >> { %1559 = vmatpush3.bf16.msra.mxu1 %v1645_v47  ;;  %1564 = vmatprep.subr.bf16.mxu0 %v1682_v2 }
  0x54   : >> { %1549 = vmatmul.mubr.msk.bf16.vlgmr.msra.gmra.mrb[12].mxu0 %vm418_vm1, %v1375_v48 }
  0x55   : >> { %1565 = vmatpush3.bf16.msra.mxu0 %v1646_v49  ;;  %1561 = vmatmul.mubr.msk.bf16.vlgmr.msra.gmra.mrb[12].mxu1 %vm418_vm1, %v1390_v50 }
  0x56   : >> { %1566 = vmatprep.subr.bf16.mxu0 %v1682_v2  ;;  %1572 = vmatprep.mubr.msk.bf16.mxu0 %vm1683_vm0, %v1682_v2 }
  0x59   : >> { %1567 = vmatpush3.bf16.msra.mxu0 %v1647_v52 }
  0x5a   : >> { %1568 = vmatprep.subr.bf16.mxu0 %v1682_v2 }
  0x5d   : >> { %1569 = vmatpush3.bf16.msra.mxu0 %v1648_v54 }
  0x5e   : >> { %1570 = vmatprep.subr.bf16.mxu0 %v1682_v2 }
  0x61   : >> { %1571 = vmatpush3.bf16.msra.mxu0 %v1649_v57 }
  0x64   : >> { %1573 = vmatmul.mubr.msk.bf16.vlgmr.msra.gmra.mrb[16].mxu0 %vm418_vm1, %v1042_v58 }
  0xf7   : >> { %v456_v59 = vpop.f32.mrb[0].mxu0 }
  0xf8   : >> { %v1478_v60 = vpop.f32.mrb[1].mxu0  ;;  %v523_v61 = vpop.f32.mrb[0].mxu1 }
  0xf9   : >> { %v524_v62 = vadd.f32 %v523_v61, %v456_v59  ;;  %v459_v63 = vpop.f32.mrb[2].mxu0  ;;  %v1490_v1 = vpop.f32.mrb[1].mxu1 }
  0xfa   : >> { %v1479_v3 = vpop.f32.mrb[3].mxu0  ;;  %v526_v4 = vpop.f32.mrb[2].mxu1 }
  0xfb   : >> { %v1491_v5 = vpop.f32.mrb[3].mxu1 }
 0x107   : >> { %v609_v6 = vpop.f32.mrb[4].mxu0 }
 0x108   : >> { %v615_v7 = vadd.f32 %v609_v6, %v524_v62  ;;  %v1502_v8 = vpop.f32.mrb[5].mxu0  ;;  %v689_v9 = vpop.f32.mrb[4].mxu1 }
 0x109   : >> { %v612_v10 = vpop.f32.mrb[6].mxu0  ;;  %v1514_v11 = vpop.f32.mrb[5].mxu1 }
 0x10a   : >> { %v695_v2 = vadd.f32 %v689_v9, %v615_v7  ;;  %v1503_v12 = vpop.f32.mrb[7].mxu0  ;;  %v692_v13 = vpop.f32.mrb[6].mxu1 }
 0x10b   : >> { %v1515_v14 = vpop.f32.mrb[7].mxu1 }
 0x117   : >> { %v769_v15 = vpop.f32.mrb[8].mxu0 }
 0x118   : >> { %v775_v16 = vadd.f32 %v769_v15, %v695_v2  ;;  %v1526_v17 = vpop.f32.mrb[9].mxu0  ;;  %v856_v18 = vpop.f32.mrb[8].mxu1 }
 0x119   : >> { %v772_v19 = vpop.f32.mrb[10].mxu0  ;;  %v1538_v20 = vpop.f32.mrb[9].mxu1 }
 0x11a   : >> { %v862_v21 = vadd.f32 %v856_v18, %v775_v16  ;;  %v1527_v22 = vpop.f32.mrb[11].mxu0  ;;  %v859_v23 = vpop.f32.mrb[10].mxu1 }
 0x11b   : >> { %v1539_v24 = vpop.f32.mrb[11].mxu1 }
 0x127   : >> { %v937_v25 = vpop.f32.mrb[12].mxu0 }
 0x128   : >> { %v943_v26 = vadd.f32 %v937_v25, %v862_v21  ;;  %v1550_v27 = vpop.f32.mrb[13].mxu0  ;;  %v1017_v28 = vpop.f32.mrb[12].mxu1 }
 0x129   : >> { %v940_v29 = vpop.f32.mrb[14].mxu0  ;;  %v1562_v30 = vpop.f32.mrb[13].mxu1 }
 0x12a   : >> { %v1023_v31 = vadd.f32 %v1017_v28, %v943_v26  ;;  %v1551_v32 = vpop.f32.mrb[15].mxu0  ;;  %v1020_v33 = vpop.f32.mrb[14].mxu1 }
 0x12b   : >> { %v1563_v34 = vpop.f32.mrb[15].mxu1 }
 0x137   : >> { %v1104_v35 = vpop.f32.mrb[16].mxu0 }
 0x138   : >> { %v1110_v36 = vadd.f32 %v1104_v35, %v1023_v31  ;;  %v1574_v37 = vpop.f32.mrb[17].mxu0 }
 0x139   : >> { %v1107_v38 = vpop.f32.mrb[18].mxu0 }
 0x13a   : >> { %v1117_v39 = vadd.f32 %v1740_v0, %v1110_v36  ;;  %v1575_v40 = vpop.f32.mrb[19].mxu0  ;;  %369 = sbr.rel (!%p367_p5) target bundleno = 19 (0x13), region = 111 }
 0x13c   : >> { %v1118_v41 = vmax.f32 %v1117_v39, 0.0 }
 0x13e   : >> { %v1119_v42 = vpack.c.bf16 %v1118_v41, %v1118_v41 }
 0x140   : >> { %1122 = vst [vmem:[%s1121_s21] sm:$0x3] %v1119_v42 }
 0x141 PF: > { %s16_s23 = sadd.s32 1, %s1676_s23   ;;  %s1998_s21 = smov %s1672_s22 }
 0x142   : > { %p13_p6 = scmp.ge.s32.totalorder %s16_s23, 4   ;;  %s1999_s22 = smov %s2001_s24 }
 0x144   :  { %15 = sbr.rel (!%p13_p6) target bundleno = 2 (0x2), region = 122 }

// kernel: xyznet_forward.6
= control target key start
LH: loop header
LB: loop body
LE: loop exit
PB: predicated region body
PF: predicated region fallthrough
CT: control target
= control target key end

     0   :  { %s3030_s12 = smov 0   ;;  %s3032_s13 = smov 0   ;;  %s3647_s0 = inlined_call_operand.vmem [shape: bf16[2,6,6,128], index: 0, kind: input, shape index: {}]   ;;  %s3648_s1 = inlined_call_operand.vmem [shape: bf16[9,128,1024], index: 1, kind: input, shape index: {}]   ;;  %s3649_s2 = inlined_call_operand.vmem [shape: f32[1,1024], index: 2, kind: input, shape index: {}]   ;;  %s3650_s3 = inlined_call_operand.vmem [shape: f32[2,4,4,1024], index: 3, kind: output, shape index: {}]  }
   0x1   :  { %s3034_s14 = smov 0   ;;  %s3036_s15 = smov 0  }
   0x2   :  { %s3038_s16 = smov 0   ;;  %s3040_s17 = smov 0  }
   0x3   :  { %s3042_s18 = smov 0   ;;  %s3044_s19 = smov 0  }
   0x4   :  { %s3046_s20 = smov 0  }
   0x5 LB: > { %s2326_s21 = sadd.s32 4294967295, %s3003_s20   ;;  %s22_s22 = sadd.s32 1, %s2995_s18  ;;  %s3003_s20 = sphi %s3046_s20, %s13_s20   ;;  %s2999_s19 = sphi %s3044_s19, %s3659_s19   ;;  %s2995_s18 = sphi %s3042_s18, %s3658_s18   ;;  %s2991_s17 = sphi %s3040_s17, %s3657_s17   ;;  %s2987_s16 = sphi %s3038_s16, %s3656_s16   ;;  %s2983_s15 = sphi %s3036_s15, %s3655_s15   ;;  %s2979_s14 = sphi %s3034_s14, %s3654_s14   ;;  %s2975_s13 = sphi %s3032_s13, %s3653_s13   ;;  %s2971_s12 = sphi %s3030_s12, %s3652_s12  }
   0x6   : > { %p23_p0 = scmp.ge.s32.totalorder %s22_s22, 4  ;;  %s25_s23 = sadd.s32 1, %s2999_s19 }
   0x7   : > { %s58_s24 = sadd.s32 1, %s2983_s15  ;;  %p65_p1 = scmp.ne.s32.totalorder %s2983_s15, %s2979_s14 }
   0x8   : > { %s3661_s22 = smov (%p23_p0, %s22_s22), 0  ;;  %s3663_s23 = smov (!%p23_p0, %s25_s23), %s2999_s19 }
   0x9   : > { %s55_s25 = ssub.s32 %s2995_s18, %s3661_s22  ;;  %p66_p2 = scmp.eq.s32.totalorder %s3003_s20, 0 }
   0xa   : > { %p27_p3 = scmp.ge.s32.totalorder %s3663_s23, 2  ;;  %p56_p4 = scmp.eq.s32.totalorder %s55_s25, 0 }
   0xb   : > { %p67_p5 = por %p66_p2, %p65_p1  ;;  %s112_s26 = sadd.s32 1, %s2975_s13 }
   0xc   : > { %s3665_s23 = smov (%p27_p3, %s3663_s23), 0  ;;  %p122_p6 = scmp.ne.s32.totalorder %s2975_s13, %s2971_s12 }
   0xd   : > { %s3091_s27 = scalar_select %p56_p4, %s2983_s15, %s58_s24  }
   0xe   : > { %s107_s28 = ssub.s32 %s2999_s19, %s3665_s23  ;;  %p123_p7 = scmp.eq.s32.totalorder %s2326_s21, 7 }
   0xf   : > { %s109_s29 = sor.u32 %s107_s28, %s55_s25  ;;  %p2329_p10 = scmp.ge.s32.totalorder %s3003_s20, 8 }
  0x10   : > { %p110_p8 = scmp.eq.s32.totalorder %s109_s29, 0  ;;  %p3097_p9 = por %p123_p7, %p122_p6 }
  0x11   : > { %145 = sbr.rel (%p2329_p10) target bundleno = 172 (0xac), region = 16 }
  0x12   : > { %s3102_s4 = scalar_select %p110_p8, %s2975_s13, %s112_s26  }
  0x18   : > { %156 = sbr.rel (!%p67_p5) target bundleno = 172 (0xac), region = 24  ;;  %s158_s5 = sand.u32 (%p67_p5), 1, %s2983_s15  }
  0x19   : > { %s2624_s6 = sshll.u32 (%p67_p5), %s2995_s18, 3  ;;  %s2626_s7 = smul.u32 (%p67_p5), 1152, %s158_s5 }
  0x1a   : > { %s3110_s10 = scalar_lea.vmem (%p67_p5), %s3648_s1, %s2624_s6 }
  0x1b   : > { %v477_v0 = vld [vmem:[%s3110_s10] sm:$0xff] (%p67_p5)  ;;  %s3118_s11 = scalar_lea.vmem (%p67_p5), [#allocation2], %s2626_s7 }
  0x1c   : > { %v479_v1 = vld [vmem:[%s3110_s10 + $0x20] sm:$0xff] (%p67_p5)  ;;  %478 = vst [vmem:[%s3118_s11] sm:$0xff] (%p67_p5), %v477_v0 }
  0x1d   : > { %v481_v2 = vld [vmem:[%s3110_s10 + $0x40] sm:$0xff] (%p67_p5)  ;;  %480 = vst [vmem:[%s3118_s11 + $0x8] sm:$0xff] (%p67_p5), %v479_v1 }
  0x1e   : > { %v483_v3 = vld [vmem:[%s3110_s10 + $0x60] sm:$0xff] (%p67_p5)  ;;  %482 = vst [vmem:[%s3118_s11 + $0x10] sm:$0xff] (%p67_p5), %v481_v2 }
  0x1f   : > { %v485_v4 = vld [vmem:[%s3110_s10 + $0x80] sm:$0xff]  ;;  %484 = vst [vmem:[%s3118_s11 + $0x18] sm:$0xff] %v483_v3 }
  0x20   : > { %v487_v5 = vld [vmem:[%s3110_s10 + $0xa0] sm:$0xff]  ;;  %486 = vst [vmem:[%s3118_s11 + $0x20] sm:$0xff] %v485_v4 }
  0x21   : > { %488 = vst [vmem:[%s3118_s11 + $0x28] sm:$0xff] %v487_v5  ;;  %v489_v6 = vld [vmem:[%s3110_s10 + $0xc0] sm:$0xff] }
  0x22   : > { %v491_v7 = vld [vmem:[%s3110_s10 + $0xe0] sm:$0xff]  ;;  %490 = vst [vmem:[%s3118_s11 + $0x30] sm:$0xff] %v489_v6 }
  0x23   : > { %v493_v8 = vld [vmem:[%s3110_s10 + $0x100] sm:$0xff]  ;;  %492 = vst [vmem:[%s3118_s11 + $0x38] sm:$0xff] %v491_v7 }
  0x24   : > { %494 = vst [vmem:[%s3118_s11 + $0x40] sm:$0xff] %v493_v8  ;;  %v495_v9 = vld [vmem:[%s3110_s10 + $0x120] sm:$0xff] }
  0x25   : > { %v497_v10 = vld [vmem:[%s3110_s10 + $0x140] sm:$0xff]  ;;  %496 = vst [vmem:[%s3118_s11 + $0x48] sm:$0xff] %v495_v9 }
  0x26   : > { %v499_v11 = vld [vmem:[%s3110_s10 + $0x160] sm:$0xff]  ;;  %498 = vst [vmem:[%s3118_s11 + $0x50] sm:$0xff] %v497_v10 }
  0x27   : > { %500 = vst [vmem:[%s3118_s11 + $0x58] sm:$0xff] %v499_v11  ;;  %v501_v12 = vld [vmem:[%s3110_s10 + $0x180] sm:$0xff] }
  0x28   : > { %v503_v13 = vld [vmem:[%s3110_s10 + $0x1a0] sm:$0xff]  ;;  %502 = vst [vmem:[%s3118_s11 + $0x60] sm:$0xff] %v501_v12 }
  0x29   : > { %v505_v14 = vld [vmem:[%s3110_s10 + $0x1c0] sm:$0xff]  ;;  %504 = vst [vmem:[%s3118_s11 + $0x68] sm:$0xff] %v503_v13 }
  0x2a   : > { %506 = vst [vmem:[%s3118_s11 + $0x70] sm:$0xff] %v505_v14  ;;  %v507_v15 = vld [vmem:[%s3110_s10 + $0x1e0] sm:$0xff] }
  0x2b   : > { %v509_v16 = vld [vmem:[%s3110_s10 + $0x200] sm:$0xff]  ;;  %508 = vst [vmem:[%s3118_s11 + $0x78] sm:$0xff] %v507_v15 }
  0x2c   : > { %v511_v17 = vld [vmem:[%s3110_s10 + $0x220] sm:$0xff]  ;;  %510 = vst [vmem:[%s3118_s11 + $0x80] sm:$0xff] %v509_v16 }
  0x2d   : > { %512 = vst [vmem:[%s3118_s11 + $0x88] sm:$0xff] %v511_v17  ;;  %v513_v18 = vld [vmem:[%s3110_s10 + $0x240] sm:$0xff] }
  0x2e   : > { %v515_v19 = vld [vmem:[%s3110_s10 + $0x260] sm:$0xff]  ;;  %514 = vst [vmem:[%s3118_s11 + $0x90] sm:$0xff] %v513_v18 }
  0x2f   : > { %v517_v20 = vld [vmem:[%s3110_s10 + $0x280] sm:$0xff]  ;;  %516 = vst [vmem:[%s3118_s11 + $0x98] sm:$0xff] %v515_v19 }
  0x30   : > { %518 = vst [vmem:[%s3118_s11 + $0xa0] sm:$0xff] %v517_v20  ;;  %v519_v21 = vld [vmem:[%s3110_s10 + $0x2a0] sm:$0xff] }
  0x31   : > { %v521_v22 = vld [vmem:[%s3110_s10 + $0x2c0] sm:$0xff]  ;;  %520 = vst [vmem:[%s3118_s11 + $0xa8] sm:$0xff] %v519_v21 }
  0x32   : > { %v523_v23 = vld [vmem:[%s3110_s10 + $0x2e0] sm:$0xff]  ;;  %522 = vst [vmem:[%s3118_s11 + $0xb0] sm:$0xff] %v521_v22 }
  0x33   : > { %524 = vst [vmem:[%s3118_s11 + $0xb8] sm:$0xff] %v523_v23  ;;  %v525_v24 = vld [vmem:[%s3110_s10 + $0x300] sm:$0xff] }
  0x34   : > { %v527_v25 = vld [vmem:[%s3110_s10 + $0x320] sm:$0xff]  ;;  %526 = vst [vmem:[%s3118_s11 + $0xc0] sm:$0xff] %v525_v24 }
  0x35   : > { %v529_v26 = vld [vmem:[%s3110_s10 + $0x340] sm:$0xff]  ;;  %528 = vst [vmem:[%s3118_s11 + $0xc8] sm:$0xff] %v527_v25 }
  0x36   : > { %530 = vst [vmem:[%s3118_s11 + $0xd0] sm:$0xff] %v529_v26  ;;  %v531_v27 = vld [vmem:[%s3110_s10 + $0x360] sm:$0xff] }
  0x37   : > { %v533_v28 = vld [vmem:[%s3110_s10 + $0x380] sm:$0xff]  ;;  %532 = vst [vmem:[%s3118_s11 + $0xd8] sm:$0xff] %v531_v27 }
  0x38   : > { %v535_v29 = vld [vmem:[%s3110_s10 + $0x3a0] sm:$0xff]  ;;  %534 = vst [vmem:[%s3118_s11 + $0xe0] sm:$0xff] %v533_v28 }
  0x39   : > { %536 = vst [vmem:[%s3118_s11 + $0xe8] sm:$0xff] %v535_v29  ;;  %v537_v30 = vld [vmem:[%s3110_s10 + $0x3c0] sm:$0xff] }
  0x3a   : > { %v539_v31 = vld [vmem:[%s3110_s10 + $0x3e0] sm:$0xff]  ;;  %538 = vst [vmem:[%s3118_s11 + $0xf0] sm:$0xff] %v537_v30 }
  0x3b   : > { %v541_v32 = vld [vmem:[%s3110_s10 + $0x400] sm:$0xff]  ;;  %540 = vst [vmem:[%s3118_s11 + $0xf8] sm:$0xff] %v539_v31 }
  0x3c   : > { %542 = vst [vmem:[%s3118_s11 + $0x100] sm:$0xff] %v541_v32  ;;  %v543_v33 = vld [vmem:[%s3110_s10 + $0x420] sm:$0xff] }
  0x3d   : > { %v545_v34 = vld [vmem:[%s3110_s10 + $0x440] sm:$0xff]  ;;  %544 = vst [vmem:[%s3118_s11 + $0x108] sm:$0xff] %v543_v33 }
  0x3e   : > { %v547_v35 = vld [vmem:[%s3110_s10 + $0x460] sm:$0xff]  ;;  %546 = vst [vmem:[%s3118_s11 + $0x110] sm:$0xff] %v545_v34 }
  0x3f   : > { %548 = vst [vmem:[%s3118_s11 + $0x118] sm:$0xff] %v547_v35  ;;  %v549_v36 = vld [vmem:[%s3110_s10 + $0x480] sm:$0xff] }
  0x40   : > { %v551_v37 = vld [vmem:[%s3110_s10 + $0x4a0] sm:$0xff]  ;;  %550 = vst [vmem:[%s3118_s11 + $0x120] sm:$0xff] %v549_v36 }
  0x41   : > { %v553_v38 = vld [vmem:[%s3110_s10 + $0x4c0] sm:$0xff]  ;;  %552 = vst [vmem:[%s3118_s11 + $0x128] sm:$0xff] %v551_v37 }
  0x42   : > { %554 = vst [vmem:[%s3118_s11 + $0x130] sm:$0xff] %v553_v38  ;;  %v555_v39 = vld [vmem:[%s3110_s10 + $0x4e0] sm:$0xff] }
  0x43   : > { %v557_v40 = vld [vmem:[%s3110_s10 + $0x500] sm:$0xff]  ;;  %556 = vst [vmem:[%s3118_s11 + $0x138] sm:$0xff] %v555_v39 }
  0x44   : > { %v559_v41 = vld [vmem:[%s3110_s10 + $0x520] sm:$0xff]  ;;  %558 = vst [vmem:[%s3118_s11 + $0x140] sm:$0xff] %v557_v40 }
  0x45   : > { %560 = vst [vmem:[%s3118_s11 + $0x148] sm:$0xff] %v559_v41  ;;  %v561_v42 = vld [vmem:[%s3110_s10 + $0x540] sm:$0xff] }
  0x46   : > { %v563_v43 = vld [vmem:[%s3110_s10 + $0x560] sm:$0xff]  ;;  %562 = vst [vmem:[%s3118_s11 + $0x150] sm:$0xff] %v561_v42 }
  0x47   : > { %v565_v44 = vld [vmem:[%s3110_s10 + $0x580] sm:$0xff]  ;;  %564 = vst [vmem:[%s3118_s11 + $0x158] sm:$0xff] %v563_v43 }
  0x48   : > { %566 = vst [vmem:[%s3118_s11 + $0x160] sm:$0xff] %v565_v44  ;;  %v567_v45 = vld [vmem:[%s3110_s10 + $0x5a0] sm:$0xff] }
  0x49   : > { %v569_v46 = vld [vmem:[%s3110_s10 + $0x5c0] sm:$0xff]  ;;  %568 = vst [vmem:[%s3118_s11 + $0x168] sm:$0xff] %v567_v45 }
  0x4a   : > { %v571_v47 = vld [vmem:[%s3110_s10 + $0x5e0] sm:$0xff]  ;;  %570 = vst [vmem:[%s3118_s11 + $0x170] sm:$0xff] %v569_v46 }
  0x4b   : > { %572 = vst [vmem:[%s3118_s11 + $0x178] sm:$0xff] %v571_v47  ;;  %v573_v48 = vld [vmem:[%s3110_s10 + $0x600] sm:$0xff] }
  0x4c   : > { %v575_v49 = vld [vmem:[%s3110_s10 + $0x620] sm:$0xff]  ;;  %574 = vst [vmem:[%s3118_s11 + $0x180] sm:$0xff] %v573_v48 }
  0x4d   : > { %v577_v50 = vld [vmem:[%s3110_s10 + $0x640] sm:$0xff]  ;;  %576 = vst [vmem:[%s3118_s11 + $0x188] sm:$0xff] %v575_v49 }
  0x4e   : > { %578 = vst [vmem:[%s3118_s11 + $0x190] sm:$0xff] %v577_v50  ;;  %v579_v51 = vld [vmem:[%s3110_s10 + $0x660] sm:$0xff] }
  0x4f   : > { %v581_v52 = vld [vmem:[%s3110_s10 + $0x680] sm:$0xff]  ;;  %580 = vst [vmem:[%s3118_s11 + $0x198] sm:$0xff] %v579_v51 }
  0x50   : > { %v583_v53 = vld [vmem:[%s3110_s10 + $0x6a0] sm:$0xff]  ;;  %582 = vst [vmem:[%s3118_s11 + $0x1a0] sm:$0xff] %v581_v52 }
  0x51   : > { %584 = vst [vmem:[%s3118_s11 + $0x1a8] sm:$0xff] %v583_v53  ;;  %v585_v54 = vld [vmem:[%s3110_s10 + $0x6c0] sm:$0xff] }
  0x52   : > { %v587_v55 = vld [vmem:[%s3110_s10 + $0x6e0] sm:$0xff]  ;;  %586 = vst [vmem:[%s3118_s11 + $0x1b0] sm:$0xff] %v585_v54 }
  0x53   : > { %v589_v56 = vld [vmem:[%s3110_s10 + $0x700] sm:$0xff]  ;;  %588 = vst [vmem:[%s3118_s11 + $0x1b8] sm:$0xff] %v587_v55 }
  0x54   : > { %590 = vst [vmem:[%s3118_s11 + $0x1c0] sm:$0xff] %v589_v56  ;;  %v591_v57 = vld [vmem:[%s3110_s10 + $0x720] sm:$0xff] }
  0x55   : > { %v593_v58 = vld [vmem:[%s3110_s10 + $0x740] sm:$0xff]  ;;  %592 = vst [vmem:[%s3118_s11 + $0x1c8] sm:$0xff] %v591_v57 }
  0x56   : > { %v595_v59 = vld [vmem:[%s3110_s10 + $0x760] sm:$0xff]  ;;  %594 = vst [vmem:[%s3118_s11 + $0x1d0] sm:$0xff] %v593_v58 }
  0x57   : > { %596 = vst [vmem:[%s3118_s11 + $0x1d8] sm:$0xff] %v595_v59  ;;  %v597_v60 = vld [vmem:[%s3110_s10 + $0x780] sm:$0xff] }
  0x58   : > { %v599_v61 = vld [vmem:[%s3110_s10 + $0x7a0] sm:$0xff]  ;;  %598 = vst [vmem:[%s3118_s11 + $0x1e0] sm:$0xff] %v597_v60 }
  0x59   : > { %v601_v62 = vld [vmem:[%s3110_s10 + $0x7c0] sm:$0xff]  ;;  %600 = vst [vmem:[%s3118_s11 + $0x1e8] sm:$0xff] %v599_v61 }
  0x5a   : > { %602 = vst [vmem:[%s3118_s11 + $0x1f0] sm:$0xff] %v601_v62  ;;  %v603_v63 = vld [vmem:[%s3110_s10 + $0x7e0] sm:$0xff] }
  0x5b   : > { %v605_v0 = vld [vmem:[%s3110_s10 + $0x800] sm:$0xff]  ;;  %604 = vst [vmem:[%s3118_s11 + $0x1f8] sm:$0xff] %v603_v63 }
  0x5c   : > { %v607_v1 = vld [vmem:[%s3110_s10 + $0x820] sm:$0xff]  ;;  %606 = vst [vmem:[%s3118_s11 + $0x200] sm:$0xff] %v605_v0 }
  0x5d   : > { %608 = vst [vmem:[%s3118_s11 + $0x208] sm:$0xff] %v607_v1  ;;  %v609_v2 = vld [vmem:[%s3110_s10 + $0x840] sm:$0xff] }
  0x5e   : > { %v611_v3 = vld [vmem:[%s3110_s10 + $0x860] sm:$0xff]  ;;  %610 = vst [vmem:[%s3118_s11 + $0x210] sm:$0xff] %v609_v2 }
  0x5f   : > { %v613_v4 = vld [vmem:[%s3110_s10 + $0x880] sm:$0xff]  ;;  %612 = vst [vmem:[%s3118_s11 + $0x218] sm:$0xff] %v611_v3 }
  0x60   : > { %614 = vst [vmem:[%s3118_s11 + $0x220] sm:$0xff] %v613_v4  ;;  %v615_v5 = vld [vmem:[%s3110_s10 + $0x8a0] sm:$0xff] }
  0x61   : > { %v617_v6 = vld [vmem:[%s3110_s10 + $0x8c0] sm:$0xff]  ;;  %616 = vst [vmem:[%s3118_s11 + $0x228] sm:$0xff] %v615_v5 }
  0x62   : > { %v619_v7 = vld [vmem:[%s3110_s10 + $0x8e0] sm:$0xff]  ;;  %618 = vst [vmem:[%s3118_s11 + $0x230] sm:$0xff] %v617_v6 }
  0x63   : > { %620 = vst [vmem:[%s3118_s11 + $0x238] sm:$0xff] %v619_v7  ;;  %v621_v8 = vld [vmem:[%s3110_s10 + $0x900] sm:$0xff] }
  0x64   : > { %v623_v9 = vld [vmem:[%s3110_s10 + $0x920] sm:$0xff]  ;;  %622 = vst [vmem:[%s3118_s11 + $0x240] sm:$0xff] %v621_v8 }
  0x65   : > { %v625_v10 = vld [vmem:[%s3110_s10 + $0x940] sm:$0xff]  ;;  %624 = vst [vmem:[%s3118_s11 + $0x248] sm:$0xff] %v623_v9 }
  0x66   : > { %626 = vst [vmem:[%s3118_s11 + $0x250] sm:$0xff] %v625_v10  ;;  %v627_v11 = vld [vmem:[%s3110_s10 + $0x960] sm:$0xff] }
  0x67   : > { %v629_v12 = vld [vmem:[%s3110_s10 + $0x980] sm:$0xff]  ;;  %628 = vst [vmem:[%s3118_s11 + $0x258] sm:$0xff] %v627_v11 }
  0x68   : > { %v631_v13 = vld [vmem:[%s3110_s10 + $0x9a0] sm:$0xff]  ;;  %630 = vst [vmem:[%s3118_s11 + $0x260] sm:$0xff] %v629_v12 }
  0x69   : > { %632 = vst [vmem:[%s3118_s11 + $0x268] sm:$0xff] %v631_v13  ;;  %v633_v14 = vld [vmem:[%s3110_s10 + $0x9c0] sm:$0xff] }
  0x6a   : > { %v635_v15 = vld [vmem:[%s3110_s10 + $0x9e0] sm:$0xff]  ;;  %634 = vst [vmem:[%s3118_s11 + $0x270] sm:$0xff] %v633_v14 }
  0x6b   : > { %v637_v16 = vld [vmem:[%s3110_s10 + $0xa00] sm:$0xff]  ;;  %636 = vst [vmem:[%s3118_s11 + $0x278] sm:$0xff] %v635_v15 }
  0x6c   : > { %638 = vst [vmem:[%s3118_s11 + $0x280] sm:$0xff] %v637_v16  ;;  %v639_v17 = vld [vmem:[%s3110_s10 + $0xa20] sm:$0xff] }
  0x6d   : > { %v641_v18 = vld [vmem:[%s3110_s10 + $0xa40] sm:$0xff]  ;;  %640 = vst [vmem:[%s3118_s11 + $0x288] sm:$0xff] %v639_v17 }
  0x6e   : > { %v643_v19 = vld [vmem:[%s3110_s10 + $0xa60] sm:$0xff]  ;;  %642 = vst [vmem:[%s3118_s11 + $0x290] sm:$0xff] %v641_v18 }
  0x6f   : > { %644 = vst [vmem:[%s3118_s11 + $0x298] sm:$0xff] %v643_v19  ;;  %v645_v20 = vld [vmem:[%s3110_s10 + $0xa80] sm:$0xff] }
  0x70   : > { %v647_v21 = vld [vmem:[%s3110_s10 + $0xaa0] sm:$0xff]  ;;  %646 = vst [vmem:[%s3118_s11 + $0x2a0] sm:$0xff] %v645_v20 }
  0x71   : > { %v649_v22 = vld [vmem:[%s3110_s10 + $0xac0] sm:$0xff]  ;;  %648 = vst [vmem:[%s3118_s11 + $0x2a8] sm:$0xff] %v647_v21 }
  0x72   : > { %650 = vst [vmem:[%s3118_s11 + $0x2b0] sm:$0xff] %v649_v22  ;;  %v651_v23 = vld [vmem:[%s3110_s10 + $0xae0] sm:$0xff] }
  0x73   : > { %v653_v24 = vld [vmem:[%s3110_s10 + $0xb00] sm:$0xff]  ;;  %652 = vst [vmem:[%s3118_s11 + $0x2b8] sm:$0xff] %v651_v23 }
  0x74   : > { %v655_v25 = vld [vmem:[%s3110_s10 + $0xb20] sm:$0xff]  ;;  %654 = vst [vmem:[%s3118_s11 + $0x2c0] sm:$0xff] %v653_v24 }
  0x75   : > { %656 = vst [vmem:[%s3118_s11 + $0x2c8] sm:$0xff] %v655_v25  ;;  %v657_v26 = vld [vmem:[%s3110_s10 + $0xb40] sm:$0xff] }
  0x76   : > { %v659_v27 = vld [vmem:[%s3110_s10 + $0xb60] sm:$0xff]  ;;  %658 = vst [vmem:[%s3118_s11 + $0x2d0] sm:$0xff] %v657_v26 }
  0x77   : > { %v661_v28 = vld [vmem:[%s3110_s10 + $0xb80] sm:$0xff]  ;;  %660 = vst [vmem:[%s3118_s11 + $0x2d8] sm:$0xff] %v659_v27 }
  0x78   : > { %662 = vst [vmem:[%s3118_s11 + $0x2e0] sm:$0xff] %v661_v28  ;;  %v663_v29 = vld [vmem:[%s3110_s10 + $0xba0] sm:$0xff] }
  0x79   : > { %v665_v30 = vld [vmem:[%s3110_s10 + $0xbc0] sm:$0xff]  ;;  %664 = vst [vmem:[%s3118_s11 + $0x2e8] sm:$0xff] %v663_v29 }
  0x7a   : > { %v667_v31 = vld [vmem:[%s3110_s10 + $0xbe0] sm:$0xff]  ;;  %666 = vst [vmem:[%s3118_s11 + $0x2f0] sm:$0xff] %v665_v30 }
  0x7b   : > { %668 = vst [vmem:[%s3118_s11 + $0x2f8] sm:$0xff] %v667_v31  ;;  %v669_v32 = vld [vmem:[%s3110_s10 + $0xc00] sm:$0xff] }
  0x7c   : > { %v671_v33 = vld [vmem:[%s3110_s10 + $0xc20] sm:$0xff]  ;;  %670 = vst [vmem:[%s3118_s11 + $0x300] sm:$0xff] %v669_v32 }
  0x7d   : > { %v673_v34 = vld [vmem:[%s3110_s10 + $0xc40] sm:$0xff]  ;;  %672 = vst [vmem:[%s3118_s11 + $0x308] sm:$0xff] %v671_v33 }
  0x7e   : > { %674 = vst [vmem:[%s3118_s11 + $0x310] sm:$0xff] %v673_v34  ;;  %v675_v35 = vld [vmem:[%s3110_s10 + $0xc60] sm:$0xff] }
  0x7f   : > { %v677_v36 = vld [vmem:[%s3110_s10 + $0xc80] sm:$0xff]  ;;  %676 = vst [vmem:[%s3118_s11 + $0x318] sm:$0xff] %v675_v35 }
  0x80   : > { %v679_v37 = vld [vmem:[%s3110_s10 + $0xca0] sm:$0xff]  ;;  %678 = vst [vmem:[%s3118_s11 + $0x320] sm:$0xff] %v677_v36 }
  0x81   : > { %680 = vst [vmem:[%s3118_s11 + $0x328] sm:$0xff] %v679_v37  ;;  %v681_v38 = vld [vmem:[%s3110_s10 + $0xcc0] sm:$0xff] }
  0x82   : > { %v683_v39 = vld [vmem:[%s3110_s10 + $0xce0] sm:$0xff]  ;;  %682 = vst [vmem:[%s3118_s11 + $0x330] sm:$0xff] %v681_v38 }
  0x83   : > { %v685_v40 = vld [vmem:[%s3110_s10 + $0xd00] sm:$0xff]  ;;  %684 = vst [vmem:[%s3118_s11 + $0x338] sm:$0xff] %v683_v39 }
  0x84   : > { %686 = vst [vmem:[%s3118_s11 + $0x340] sm:$0xff] %v685_v40  ;;  %v687_v41 = vld [vmem:[%s3110_s10 + $0xd20] sm:$0xff] }
  0x85   : > { %v689_v42 = vld [vmem:[%s3110_s10 + $0xd40] sm:$0xff]  ;;  %688 = vst [vmem:[%s3118_s11 + $0x348] sm:$0xff] %v687_v41 }
  0x86   : > { %v691_v43 = vld [vmem:[%s3110_s10 + $0xd60] sm:$0xff]  ;;  %690 = vst [vmem:[%s3118_s11 + $0x350] sm:$0xff] %v689_v42 }
  0x87   : > { %692 = vst [vmem:[%s3118_s11 + $0x358] sm:$0xff] %v691_v43  ;;  %v693_v44 = vld [vmem:[%s3110_s10 + $0xd80] sm:$0xff] }
  0x88   : > { %v695_v45 = vld [vmem:[%s3110_s10 + $0xda0] sm:$0xff]  ;;  %694 = vst [vmem:[%s3118_s11 + $0x360] sm:$0xff] %v693_v44 }
  0x89   : > { %v697_v46 = vld [vmem:[%s3110_s10 + $0xdc0] sm:$0xff]  ;;  %696 = vst [vmem:[%s3118_s11 + $0x368] sm:$0xff] %v695_v45 }
  0x8a   : > { %698 = vst [vmem:[%s3118_s11 + $0x370] sm:$0xff] %v697_v46  ;;  %v699_v47 = vld [vmem:[%s3110_s10 + $0xde0] sm:$0xff] }
  0x8b   : > { %v701_v48 = vld [vmem:[%s3110_s10 + $0xe00] sm:$0xff]  ;;  %700 = vst [vmem:[%s3118_s11 + $0x378] sm:$0xff] %v699_v47 }
  0x8c   : > { %v703_v49 = vld [vmem:[%s3110_s10 + $0xe20] sm:$0xff]  ;;  %702 = vst [vmem:[%s3118_s11 + $0x380] sm:$0xff] %v701_v48 }
  0x8d   : > { %704 = vst [vmem:[%s3118_s11 + $0x388] sm:$0xff] %v703_v49  ;;  %v705_v50 = vld [vmem:[%s3110_s10 + $0xe40] sm:$0xff] }
  0x8e   : > { %v707_v51 = vld [vmem:[%s3110_s10 + $0xe60] sm:$0xff]  ;;  %706 = vst [vmem:[%s3118_s11 + $0x390] sm:$0xff] %v705_v50 }
  0x8f   : > { %v709_v52 = vld [vmem:[%s3110_s10 + $0xe80] sm:$0xff]  ;;  %708 = vst [vmem:[%s3118_s11 + $0x398] sm:$0xff] %v707_v51 }
  0x90   : > { %710 = vst [vmem:[%s3118_s11 + $0x3a0] sm:$0xff] %v709_v52  ;;  %v711_v53 = vld [vmem:[%s3110_s10 + $0xea0] sm:$0xff] }
  0x91   : > { %v713_v54 = vld [vmem:[%s3110_s10 + $0xec0] sm:$0xff]  ;;  %712 = vst [vmem:[%s3118_s11 + $0x3a8] sm:$0xff] %v711_v53 }
  0x92   : > { %v715_v55 = vld [vmem:[%s3110_s10 + $0xee0] sm:$0xff]  ;;  %714 = vst [vmem:[%s3118_s11 + $0x3b0] sm:$0xff] %v713_v54 }
  0x93   : > { %716 = vst [vmem:[%s3118_s11 + $0x3b8] sm:$0xff] %v715_v55  ;;  %v717_v56 = vld [vmem:[%s3110_s10 + $0xf00] sm:$0xff] }
  0x94   : > { %v719_v57 = vld [vmem:[%s3110_s10 + $0xf20] sm:$0xff]  ;;  %718 = vst [vmem:[%s3118_s11 + $0x3c0] sm:$0xff] %v717_v56 }
  0x95   : > { %v721_v58 = vld [vmem:[%s3110_s10 + $0xf40] sm:$0xff]  ;;  %720 = vst [vmem:[%s3118_s11 + $0x3c8] sm:$0xff] %v719_v57 }
  0x96   : > { %722 = vst [vmem:[%s3118_s11 + $0x3d0] sm:$0xff] %v721_v58  ;;  %v723_v59 = vld [vmem:[%s3110_s10 + $0xf60] sm:$0xff] }
  0x97   : > { %v725_v60 = vld [vmem:[%s3110_s10 + $0xf80] sm:$0xff]  ;;  %724 = vst [vmem:[%s3118_s11 + $0x3d8] sm:$0xff] %v723_v59 }
  0x98   : > { %v727_v61 = vld [vmem:[%s3110_s10 + $0xfa0] sm:$0xff]  ;;  %726 = vst [vmem:[%s3118_s11 + $0x3e0] sm:$0xff] %v725_v60 }
  0x99   : > { %728 = vst [vmem:[%s3118_s11 + $0x3e8] sm:$0xff] %v727_v61  ;;  %v729_v62 = vld [vmem:[%s3110_s10 + $0xfc0] sm:$0xff] }
  0x9a   : > { %v731_v63 = vld [vmem:[%s3110_s10 + $0xfe0] sm:$0xff]  ;;  %730 = vst [vmem:[%s3118_s11 + $0x3f0] sm:$0xff] %v729_v62 }
  0x9b   : > { %v733_v0 = vld [vmem:[%s3110_s10 + $0x1000] sm:$0xff]  ;;  %732 = vst [vmem:[%s3118_s11 + $0x3f8] sm:$0xff] %v731_v63 }
  0x9c   : > { %734 = vst [vmem:[%s3118_s11 + $0x400] sm:$0xff] %v733_v0  ;;  %v735_v1 = vld [vmem:[%s3110_s10 + $0x1020] sm:$0xff] }
  0x9d   : > { %v737_v2 = vld [vmem:[%s3110_s10 + $0x1040] sm:$0xff]  ;;  %736 = vst [vmem:[%s3118_s11 + $0x408] sm:$0xff] %v735_v1 }
  0x9e   : > { %v739_v3 = vld [vmem:[%s3110_s10 + $0x1060] sm:$0xff]  ;;  %738 = vst [vmem:[%s3118_s11 + $0x410] sm:$0xff] %v737_v2 }
  0x9f   : > { %740 = vst [vmem:[%s3118_s11 + $0x418] sm:$0xff] %v739_v3  ;;  %v741_v4 = vld [vmem:[%s3110_s10 + $0x1080] sm:$0xff] }
  0xa0   : > { %v743_v5 = vld [vmem:[%s3110_s10 + $0x10a0] sm:$0xff]  ;;  %742 = vst [vmem:[%s3118_s11 + $0x420] sm:$0xff] %v741_v4 }
  0xa1   : > { %v745_v6 = vld [vmem:[%s3110_s10 + $0x10c0] sm:$0xff]  ;;  %744 = vst [vmem:[%s3118_s11 + $0x428] sm:$0xff] %v743_v5 }
  0xa2   : > { %746 = vst [vmem:[%s3118_s11 + $0x430] sm:$0xff] %v745_v6  ;;  %v747_v7 = vld [vmem:[%s3110_s10 + $0x10e0] sm:$0xff] }
  0xa3   : > { %v749_v8 = vld [vmem:[%s3110_s10 + $0x1100] sm:$0xff]  ;;  %748 = vst [vmem:[%s3118_s11 + $0x438] sm:$0xff] %v747_v7 }
  0xa4   : > { %v751_v9 = vld [vmem:[%s3110_s10 + $0x1120] sm:$0xff]  ;;  %750 = vst [vmem:[%s3118_s11 + $0x440] sm:$0xff] %v749_v8 }
  0xa5   : > { %752 = vst [vmem:[%s3118_s11 + $0x448] sm:$0xff] %v751_v9  ;;  %v753_v10 = vld [vmem:[%s3110_s10 + $0x1140] sm:$0xff] }
  0xa6   : > { %v755_v11 = vld [vmem:[%s3110_s10 + $0x1160] sm:$0xff]  ;;  %754 = vst [vmem:[%s3118_s11 + $0x450] sm:$0xff] %v753_v10 }
  0xa7   : > { %v757_v12 = vld [vmem:[%s3110_s10 + $0x1180] sm:$0xff]  ;;  %756 = vst [vmem:[%s3118_s11 + $0x458] sm:$0xff] %v755_v11 }
  0xa8   : > { %758 = vst [vmem:[%s3118_s11 + $0x460] sm:$0xff] %v757_v12  ;;  %v759_v13 = vld [vmem:[%s3110_s10 + $0x11a0] sm:$0xff] }
  0xa9   : > { %v761_v14 = vld [vmem:[%s3110_s10 + $0x11c0] sm:$0xff]  ;;  %760 = vst [vmem:[%s3118_s11 + $0x468] sm:$0xff] %v759_v13 }
  0xaa   : > { %v763_v15 = vld [vmem:[%s3110_s10 + $0x11e0] sm:$0xff]  ;;  %762 = vst [vmem:[%s3118_s11 + $0x470] sm:$0xff] %v761_v14 }
  0xab   : > { %764 = vst [vmem:[%s3118_s11 + $0x478] sm:$0xff] %v763_v15 }
  0xac PF: > { %p2332_p11 = scmp.ge.s32.totalorder %s3003_s20, 1  ;;  %p777_p12 = scmp.lt.s32.totalorder %s3003_s20, 9 }
  0xae   : > { %p778_p13 = pnand %p2332_p11, %p777_p12 }
  0xaf   : > { %s784_s21 = sand.u32 (!%p778_p13), 1, %s2979_s14   ;;  %s812_s24 = sand.u32 (!%p778_p13), 1, %s2971_s12  }
  0xb0   : > { %781 = sbr.rel (%p778_p13) target bundleno = 581 (0x245), region = 66  ;;  %s2333_s26 = sshll.u32 (!%p778_p13), %s812_s24, 5 }
  0xb1   : > { %s2627_s25 = smul.u32 (!%p778_p13), 1152, %s784_s21  ;;  %p815_p0 = scmp.lt.s32.totalorder (!%p778_p13), %s2991_s17, 1 }
  0xb2   : > { %s3408_s28 = sshll.u32 (!%p778_p13), %s2987_s16, 1  ;;  %s3425_s16 = scalar_lea.vmem (!%p778_p13), [#allocation3], %s2333_s26 }
  0xb3   : > { %p822_p1 = scmp.lt.s32.totalorder (!%p778_p13), %s3408_s28, 7  ;;  %s3423_s14 = scalar_lea.vmem (!%p778_p13), [#allocation2], %s2627_s25 }
  0xb4   : > { %s3427_s21 = smov (!%p778_p13), 0  }
  0xb7   : > { %s816_s29 = scalar_select %p815_p0, %s2991_s17, 1 }
  0xb8   : > { %s823_s6 = scalar_select %p822_p1, %s3408_s28, 7 }
  0xb9   : > { %s2628_s5 = smul.u32 24, %s816_s29 }
  0xba   : > { %s824_s12 = scalar_lea.vmem %s3649_s2, %s823_s6 }
  0xbb   : > { %s3416_s9 = scalar_lea.vmem %s3647_s0, %s2628_s5  ;;  %v3421_v16 = vld [vmem:[%s824_s12] sm:$0x3] }
  0xbc LB: >> { %v2710_v17 = vld [vmem:[%s3423_s14 + $0x84] ss:$8 sps:$4 sm:$0xff]   ;;  %v3009_v19 = vmov 0   ;;  %v2714_v20 = vld [vmem:[%s3423_s14 + $0x80] ss:$8 sps:$4 sm:$0xff]   ;;  %s2336_s24 = sshll.u32 %s3007_s21, 2  ;;  %s3007_s21 = sphi %s3427_s21, %s834_s21  }
  0xbd   : >> { %v2712_v18 = vld [vmem:[%s3423_s14 + $0x4] ss:$8 sps:$4 sm:$0xff]   ;;  %994 = vmatprep.mubr.bf16.mxu0 %v3009_v19  ;;  %1115 = vmatprep.mubr.bf16.mxu1 %v3009_v19  ;;  %v2715_v21 = vld [vmem:[%s3423_s14] ss:$8 sps:$4 sm:$0xff]   ;;  %v2716_v22 = vld [vmem:[%s3423_s14 + $0x94] ss:$8 sps:$4 sm:$0xff]   ;;  %s3458_s25 = scalar_lea.vmem %s3416_s9, %s2336_s24 }
  0xbe   : >> { %962 = vmatprep.subr.bf16.mxu0 %v2710_v17  ;;  %1083 = vmatprep.subr.bf16.mxu1 %v2712_v18  ;;  %v2718_v23 = vld [vmem:[%s3423_s14 + $0x14] ss:$8 sps:$4 sm:$0xff]   ;;  %v2720_v24 = vld [vmem:[%s3423_s14 + $0x90] ss:$8 sps:$4 sm:$0xff]   ;;  %v2722_v26 = vld [vmem:[%s3423_s14 + $0xa4] ss:$8 sps:$4 sm:$0xff]  }
  0xbf   : >> { %963 = vmatpush1.bf16.msra.mxu0 %v2714_v20  ;;  %1084 = vmatpush1.bf16.msra.mxu1 %v2715_v21  ;;  %v2721_v25 = vld [vmem:[%s3423_s14 + $0x10] ss:$8 sps:$4 sm:$0xff]   ;;  %v2724_v27 = vld [vmem:[%s3423_s14 + $0x24] ss:$8 sps:$4 sm:$0xff]   ;;  %v2726_v28 = vld [vmem:[%s3423_s14 + $0xa0] ss:$8 sps:$4 sm:$0xff]  }
  0xc0   : >> { %964 = vmatprep.subr.bf16.mxu0 %v2716_v22  ;;  %1085 = vmatprep.subr.bf16.mxu1 %v2718_v23  ;;  %v2727_v29 = vld [vmem:[%s3423_s14 + $0x20] ss:$8 sps:$4 sm:$0xff]   ;;  %v2728_v30 = vld [vmem:[%s3423_s14 + $0xb4] ss:$8 sps:$4 sm:$0xff]   ;;  %v2732_v32 = vld [vmem:[%s3423_s14 + $0xb0] ss:$8 sps:$4 sm:$0xff]  }
  0xc1   : >> { %v2730_v31 = vld [vmem:[%s3423_s14 + $0x34] ss:$8 sps:$4 sm:$0xff]   ;;  %v2733_v33 = vld [vmem:[%s3423_s14 + $0x30] ss:$8 sps:$4 sm:$0xff]   ;;  %v2734_v34 = vld [vmem:[%s3423_s14 + $0xc4] ss:$8 sps:$4 sm:$0xff]  }
  0xc2   : >> { %v2736_v35 = vld [vmem:[%s3423_s14 + $0x44] ss:$8 sps:$4 sm:$0xff]   ;;  %v2738_v36 = vld [vmem:[%s3423_s14 + $0xc0] ss:$8 sps:$4 sm:$0xff]   ;;  %v2740_v38 = vld [vmem:[%s3423_s14 + $0xd4] ss:$8 sps:$4 sm:$0xff]  }
  0xc3   : >> { %965 = vmatpush1.bf16.msra.mxu0 %v2720_v24  ;;  %1086 = vmatpush1.bf16.msra.mxu1 %v2721_v25  ;;  %v2739_v37 = vld [vmem:[%s3423_s14 + $0x40] ss:$8 sps:$4 sm:$0xff]   ;;  %v2742_v39 = vld [vmem:[%s3423_s14 + $0x54] ss:$8 sps:$4 sm:$0xff]   ;;  %v2744_v40 = vld [vmem:[%s3423_s14 + $0xd0] ss:$8 sps:$4 sm:$0xff]  }
  0xc4   : >> { %966 = vmatprep.subr.bf16.mxu0 %v2722_v26  ;;  %1087 = vmatprep.subr.bf16.mxu1 %v2724_v27  ;;  %v2745_v41 = vld [vmem:[%s3423_s14 + $0x50] ss:$8 sps:$4 sm:$0xff]   ;;  %v2746_v42 = vld [vmem:[%s3423_s14 + $0xe4] ss:$8 sps:$4 sm:$0xff]   ;;  %v837_v44 = vld [vmem:[%s3458_s25] sm:$0x7] }
  0xc5   : >> { %v2748_v43 = vld [vmem:[%s3423_s14 + $0x64] ss:$8 sps:$4 sm:$0xff]   ;;  %v3465_v45 = vcombine.low %v837_v44, %v837_v44  ;;  %v2750_v46 = vld [vmem:[%s3423_s14 + $0xe0] ss:$8 sps:$4 sm:$0xff]   ;;  %v2752_v49 = vld [vmem:[%s3423_s14 + $0xf4] ss:$8 sps:$4 sm:$0xff]  }
  0xc6   : >> { %v2751_v47 = vld [vmem:[%s3423_s14 + $0x60] ss:$8 sps:$4 sm:$0xff]   ;;  %v2754_v50 = vld [vmem:[%s3423_s14 + $0x74] ss:$8 sps:$4 sm:$0xff]   ;;  %v2756_v51 = vld [vmem:[%s3423_s14 + $0xf0] ss:$8 sps:$4 sm:$0xff]  }
  0xc7   : >> { %967 = vmatpush1.bf16.msra.mxu0 %v2726_v28  ;;  %1088 = vmatpush1.bf16.msra.mxu1 %v2727_v29  ;;  %v877_v48 = vshll.u32 %v3465_v45, 16  ;;  %v875_v52 = vshrl.u32 %v3465_v45, 16  ;;  %v2757_v54 = vld [vmem:[%s3423_s14 + $0x70] ss:$8 sps:$4 sm:$0xff]   ;;  %v2761_v55 = vld [vmem:[%s3423_s14 + $0x104] ss:$8 sps:$4 sm:$0xff]  }
  0xc8   : >> { %968 = vmatprep.subr.bf16.mxu0 %v2728_v30  ;;  %1089 = vmatprep.subr.bf16.mxu1 %v2730_v31  ;;  %v2764_v56 = vld [vmem:[%s3423_s14 + $0x184] ss:$8 sps:$4 sm:$0xff]   ;;  %v2759_v58 = vld [vmem:[%s3423_s14 + $0x100] ss:$8 sps:$4 sm:$0xff]   ;;  %v2767_v60 = vld [vmem:[%s3423_s14 + $0x114] ss:$8 sps:$4 sm:$0xff]  }
  0xc9   : >> { %v879_v53 = vrot.slane %v877_v48, 1  ;;  %v2762_v59 = vld [vmem:[%s3423_s14 + $0x180] ss:$8 sps:$4 sm:$0xff]   ;;  %v2770_v61 = vld [vmem:[%s3423_s14 + $0x194] ss:$8 sps:$4 sm:$0xff]   ;;  %v1141_v28 = vrot.slane %v3465_v45, 1 }
  0xca   : >> { %v2765_v62 = vld [vmem:[%s3423_s14 + $0x110] ss:$8 sps:$4 sm:$0xff]   ;;  %v2773_v0 = vld [vmem:[%s3423_s14 + $0x124] ss:$8 sps:$4 sm:$0xff]   ;;  %v2771_v2 = vld [vmem:[%s3423_s14 + $0x120] ss:$8 sps:$4 sm:$0xff]  }
  0xcb   : >> { %969 = vmatpush1.bf16.msra.mxu0 %v2732_v32  ;;  %1090 = vmatpush1.bf16.msra.mxu1 %v2733_v33  ;;  %v880_v57 = vor.u32 %v879_v53, %v875_v52  ;;  %v2768_v63 = vld [vmem:[%s3423_s14 + $0x190] ss:$8 sps:$4 sm:$0xff]   ;;  %v2776_v1 = vld [vmem:[%s3423_s14 + $0x1a4] ss:$8 sps:$4 sm:$0xff]   ;;  %v2774_v3 = vld [vmem:[%s3423_s14 + $0x1a0] ss:$8 sps:$4 sm:$0xff]  }
  0xcc   : >> { %970 = vmatprep.subr.bf16.mxu0 %v2734_v34  ;;  %1091 = vmatprep.subr.bf16.mxu1 %v2736_v35  ;;  %v2779_v4 = vld [vmem:[%s3423_s14 + $0x134] ss:$8 sps:$4 sm:$0xff]   ;;  %v2777_v6 = vld [vmem:[%s3423_s14 + $0x130] ss:$8 sps:$4 sm:$0xff]   ;;  %v2785_v8 = vld [vmem:[%s3423_s14 + $0x144] ss:$8 sps:$4 sm:$0xff]  }
  0xcd   : >> { %v2782_v5 = vld [vmem:[%s3423_s14 + $0x1b4] ss:$8 sps:$4 sm:$0xff]   ;;  %v2780_v7 = vld [vmem:[%s3423_s14 + $0x1b0] ss:$8 sps:$4 sm:$0xff]   ;;  %v2788_v9 = vld [vmem:[%s3423_s14 + $0x1c4] ss:$8 sps:$4 sm:$0xff]  }
  0xce   : >> { %v2783_v10 = vld [vmem:[%s3423_s14 + $0x140] ss:$8 sps:$4 sm:$0xff]   ;;  %v2791_v12 = vld [vmem:[%s3423_s14 + $0x154] ss:$8 sps:$4 sm:$0xff]   ;;  %v2789_v14 = vld [vmem:[%s3423_s14 + $0x150] ss:$8 sps:$4 sm:$0xff]  }
  0xcf   : >> { %971 = vmatpush1.bf16.msra.mxu0 %v2738_v36  ;;  %1092 = vmatpush1.bf16.msra.mxu1 %v2739_v37  ;;  %v2786_v11 = vld [vmem:[%s3423_s14 + $0x1c0] ss:$8 sps:$4 sm:$0xff]   ;;  %v2794_v13 = vld [vmem:[%s3423_s14 + $0x1d4] ss:$8 sps:$4 sm:$0xff]   ;;  %v2792_v15 = vld [vmem:[%s3423_s14 + $0x1d0] ss:$8 sps:$4 sm:$0xff]  }
  0xd0   : >> { %972 = vmatprep.subr.bf16.mxu0 %v2740_v38  ;;  %1093 = vmatprep.subr.bf16.mxu1 %v2742_v39  ;;  %v2797_v17 = vld [vmem:[%s3423_s14 + $0x164] ss:$8 sps:$4 sm:$0xff]   ;;  %v2795_v20 = vld [vmem:[%s3423_s14 + $0x160] ss:$8 sps:$4 sm:$0xff]   ;;  %v2803_v22 = vld [vmem:[%s3423_s14 + $0x174] ss:$8 sps:$4 sm:$0xff]  }
  0xd1   : >> { %v2800_v18 = vld [vmem:[%s3423_s14 + $0x1e4] ss:$8 sps:$4 sm:$0xff]   ;;  %v2798_v21 = vld [vmem:[%s3423_s14 + $0x1e0] ss:$8 sps:$4 sm:$0xff]   ;;  %v2806_v23 = vld [vmem:[%s3423_s14 + $0x1f4] ss:$8 sps:$4 sm:$0xff]  }
  0xd2   : >> { %v2801_v24 = vld [vmem:[%s3423_s14 + $0x170] ss:$8 sps:$4 sm:$0xff]   ;;  %v2809_v26 = vld [vmem:[%s3423_s14 + $0x204] ss:$8 sps:$4 sm:$0xff]   ;;  %v2807_v29 = vld [vmem:[%s3423_s14 + $0x200] ss:$8 sps:$4 sm:$0xff]  }
  0xd3   : >> { %973 = vmatpush1.bf16.msra.mxu0 %v2744_v40  ;;  %1094 = vmatpush1.bf16.msra.mxu1 %v2745_v41  ;;  %v2804_v25 = vld [vmem:[%s3423_s14 + $0x1f0] ss:$8 sps:$4 sm:$0xff]   ;;  %v2813_v27 = vld [vmem:[%s3423_s14 + $0x284] ss:$8 sps:$4 sm:$0xff]   ;;  %v2811_v31 = vld [vmem:[%s3423_s14 + $0x280] ss:$8 sps:$4 sm:$0xff]  }
  0xd4   : >> { %974 = vmatprep.subr.bf16.mxu0 %v2746_v42  ;;  %1095 = vmatprep.subr.bf16.mxu1 %v2748_v43  ;;  %v2419_v30 = vld [vmem:[%s3458_s25 + $0x4] sm:$0x7]  ;;  %v2816_v32 = vld [vmem:[%s3423_s14 + $0x214] ss:$8 sps:$4 sm:$0xff]   ;;  %v2814_v34 = vld [vmem:[%s3423_s14 + $0x210] ss:$8 sps:$4 sm:$0xff]  }
  0xd5   : >> { %v2819_v33 = vld [vmem:[%s3423_s14 + $0x294] ss:$8 sps:$4 sm:$0xff]   ;;  %v2817_v35 = vld [vmem:[%s3423_s14 + $0x290] ss:$8 sps:$4 sm:$0xff]   ;;  %v2822_v36 = vld [vmem:[%s3423_s14 + $0x224] ss:$8 sps:$4 sm:$0xff]  }
  0xd6   : >> { %v2825_v37 = vld [vmem:[%s3423_s14 + $0x2a4] ss:$8 sps:$4 sm:$0xff]   ;;  %v2820_v38 = vld [vmem:[%s3423_s14 + $0x220] ss:$8 sps:$4 sm:$0xff]   ;;  %v2828_v40 = vld [vmem:[%s3423_s14 + $0x234] ss:$8 sps:$4 sm:$0xff]  }
  0xd7   : >> { %975 = vmatpush1.bf16.msra.mxu0 %v2750_v46  ;;  %1096 = vmatpush1.bf16.msra.mxu1 %v2751_v47  ;;  %v2823_v39 = vld [vmem:[%s3423_s14 + $0x2a0] ss:$8 sps:$4 sm:$0xff]   ;;  %v2831_v41 = vld [vmem:[%s3423_s14 + $0x2b4] ss:$8 sps:$4 sm:$0xff]   ;;  %v2826_v42 = vld [vmem:[%s3423_s14 + $0x230] ss:$8 sps:$4 sm:$0xff]  }
  0xd8   : >> { %976 = vmatprep.subr.bf16.mxu0 %v2752_v49  ;;  %1097 = vmatprep.subr.bf16.mxu1 %v2754_v50  ;;  %v2829_v43 = vld [vmem:[%s3423_s14 + $0x2b0] ss:$8 sps:$4 sm:$0xff]   ;;  %v2837_v45 = vld [vmem:[%s3423_s14 + $0x2c4] ss:$8 sps:$4 sm:$0xff]   ;;  %v2832_v46 = vld [vmem:[%s3423_s14 + $0x240] ss:$8 sps:$4 sm:$0xff]   ;;  %v2468_v50 = vcombine.low %v2419_v30, %v2419_v30 }
  0xd9   : >> { %v2835_v47 = vld [vmem:[%s3423_s14 + $0x2c0] ss:$8 sps:$4 sm:$0xff]   ;;  %v2840_v48 = vld [vmem:[%s3423_s14 + $0x254] ss:$8 sps:$4 sm:$0xff]   ;;  %v2841_v52 = vld [vmem:[%s3423_s14 + $0x2d0] ss:$8 sps:$4 sm:$0xff]  }
  0xda   : >> { %v2843_v49 = vld [vmem:[%s3423_s14 + $0x2d4] ss:$8 sps:$4 sm:$0xff]   ;;  %v2846_v53 = vld [vmem:[%s3423_s14 + $0x264] ss:$8 sps:$4 sm:$0xff]   ;;  %s2625_s26 = sshll.u32 %s3007_s21, 3  ;;  %s834_s21 = sadd.s32 1, %s3007_s21  }
  0xdb   : >> { %977 = vmatpush1.bf16.msra.mxu0 %v2756_v51  ;;  %1098 = vmatpush1.bf16.msra.mxu1 %v2757_v54  ;;  %v2838_v51 = vld [vmem:[%s3423_s14 + $0x250] ss:$8 sps:$4 sm:$0xff]   ;;  %v2849_v54 = vld [vmem:[%s3423_s14 + $0x2e4] ss:$8 sps:$4 sm:$0xff]   ;;  %s2161_s29 = scalar_lea.vmem %s3425_s16, %s2625_s26 [#allocation3]  ;;  %p831_p2 = scmp.ge.s32.totalorder %s834_s21, 4  }
  0xdc   : >> { %1223 = vmatprep.subr.bf16.mxu0 %v2761_v55  ;;  %1367 = vmatprep.subr.bf16.mxu1 %v2764_v56  ;;  %v1433_v55 = vshll.u32 %v2468_v50, 16  ;;  %v2844_v56 = vld [vmem:[%s3423_s14 + $0x260] ss:$8 sps:$4 sm:$0xff]  }
  0xde   : >> { %995 = vmatmul.mubr.bf16.vlgmr.msra.gmra.mrb[0].mxu0 %v880_v57  ;;  %1116 = vmatmul.mubr.bf16.vlgmr.msra.gmra.mrb[0].mxu1 %v837_v44  ;;  %v2834_v44 = vld [vmem:[%s3423_s14 + $0x244] ss:$8 sps:$4 sm:$0xff]   ;;  %v2847_v57 = vld [vmem:[%s3423_s14 + $0x2e0] ss:$8 sps:$4 sm:$0xff]  }
  0xdf   : >> { %1224 = vmatpush1.bf16.msra.mxu0 %v2759_v58  ;;  %1368 = vmatpush1.bf16.msra.mxu1 %v2762_v59  ;;  %v2852_v58 = vld [vmem:[%s3423_s14 + $0x274] ss:$8 sps:$4 sm:$0xff]  }
  0xe0   : >> { %1225 = vmatprep.subr.bf16.mxu0 %v2767_v60  ;;  %1369 = vmatprep.subr.bf16.mxu1 %v2770_v61  ;;  %v2855_v59 = vld [vmem:[%s3423_s14 + $0x2f4] ss:$8 sps:$4 sm:$0xff]   ;;  %v1431_v60 = vshrl.u32 %v2468_v50, 16  ;;  %v2850_v61 = vld [vmem:[%s3423_s14 + $0x270] ss:$8 sps:$4 sm:$0xff]  }
  0xe1   : >> { %1255 = vmatprep.mubr.bf16.mxu0 %v3009_v19  ;;  %1399 = vmatprep.mubr.bf16.mxu1 %v3009_v19 }
  0xe3   : >> { %1226 = vmatpush1.bf16.msra.mxu0 %v2765_v62  ;;  %1370 = vmatpush1.bf16.msra.mxu1 %v2768_v63  ;;  %v1435_v62 = vrot.slane %v1433_v55, 1  ;;  %v2853_v63 = vld [vmem:[%s3423_s14 + $0x2f0] ss:$8 sps:$4 sm:$0xff]   ;;  %v2928_v55 = vld [vmem:[%s3423_s14 + $0x474] ss:$8 sps:$4 sm:$0xff]  }
  0xe4   : >> { %1227 = vmatprep.subr.bf16.mxu0 %v2773_v0  ;;  %1371 = vmatprep.subr.bf16.mxu1 %v2776_v1  ;;  %v2858_v0 = vld [vmem:[%s3423_s14 + $0x304] ss:$8 sps:$4 sm:$0xff]  }
  0xe5   : >> { %v2861_v1 = vld [vmem:[%s3423_s14 + $0x384] ss:$8 sps:$4 sm:$0xff]  }
  0xe7   : >> { %1228 = vmatpush1.bf16.msra.mxu0 %v2771_v2  ;;  %1372 = vmatpush1.bf16.msra.mxu1 %v2774_v3  ;;  %v1436_v2 = vor.u32 %v1435_v62, %v1431_v60  ;;  %v1578_v3 = vrot.slane %v2468_v50, 1  ;;  %v2919_v50 = vld [vmem:[%s3423_s14 + $0x444] ss:$8 sps:$4 sm:$0xff]  }
  0xe8   : >> { %1229 = vmatprep.subr.bf16.mxu0 %v2779_v4  ;;  %1373 = vmatprep.subr.bf16.mxu1 %v2782_v5  ;;  %v2856_v4 = vld [vmem:[%s3423_s14 + $0x300] ss:$8 sps:$4 sm:$0xff]  }
  0xe9   : >> { %v2859_v5 = vld [vmem:[%s3423_s14 + $0x380] ss:$8 sps:$4 sm:$0xff]  }
  0xeb   : >> { %1230 = vmatpush1.bf16.msra.mxu0 %v2777_v6  ;;  %1374 = vmatpush1.bf16.msra.mxu1 %v2780_v7  ;;  %v2864_v6 = vld [vmem:[%s3423_s14 + $0x314] ss:$8 sps:$4 sm:$0xff]  }
  0xec   : >> { %1231 = vmatprep.subr.bf16.mxu0 %v2785_v8  ;;  %1375 = vmatprep.subr.bf16.mxu1 %v2788_v9  ;;  %v2867_v7 = vld [vmem:[%s3423_s14 + $0x394] ss:$8 sps:$4 sm:$0xff]   ;;  %v2862_v8 = vld [vmem:[%s3423_s14 + $0x310] ss:$8 sps:$4 sm:$0xff]  }
  0xed   : >> { %v2865_v9 = vld [vmem:[%s3423_s14 + $0x390] ss:$8 sps:$4 sm:$0xff]  }
  0xef   : >> { %1232 = vmatpush1.bf16.msra.mxu0 %v2783_v10  ;;  %1376 = vmatpush1.bf16.msra.mxu1 %v2786_v11  ;;  %v2870_v10 = vld [vmem:[%s3423_s14 + $0x324] ss:$8 sps:$4 sm:$0xff]  }
  0xf0   : >> { %1233 = vmatprep.subr.bf16.mxu0 %v2791_v12  ;;  %1377 = vmatprep.subr.bf16.mxu1 %v2794_v13  ;;  %v2873_v11 = vld [vmem:[%s3423_s14 + $0x3a4] ss:$8 sps:$4 sm:$0xff]   ;;  %v2868_v12 = vld [vmem:[%s3423_s14 + $0x320] ss:$8 sps:$4 sm:$0xff]  }
  0xf1   : >> { %v2871_v13 = vld [vmem:[%s3423_s14 + $0x3a0] ss:$8 sps:$4 sm:$0xff]  }
  0xf3   : >> { %1234 = vmatpush1.bf16.msra.mxu0 %v2789_v14  ;;  %1378 = vmatpush1.bf16.msra.mxu1 %v2792_v15  ;;  %v2876_v14 = vld [vmem:[%s3423_s14 + $0x334] ss:$8 sps:$4 sm:$0xff]  }
  0xf4   : >> { %1235 = vmatprep.subr.bf16.mxu0 %v2797_v17  ;;  %1379 = vmatprep.subr.bf16.mxu1 %v2800_v18  ;;  %v2879_v15 = vld [vmem:[%s3423_s14 + $0x3b4] ss:$8 sps:$4 sm:$0xff]   ;;  %v2874_v17 = vld [vmem:[%s3423_s14 + $0x330] ss:$8 sps:$4 sm:$0xff]  }
  0xf5   : >> { %v2877_v18 = vld [vmem:[%s3423_s14 + $0x3b0] ss:$8 sps:$4 sm:$0xff]  }
  0xf7   : >> { %1236 = vmatpush1.bf16.msra.mxu0 %v2795_v20  ;;  %1380 = vmatpush1.bf16.msra.mxu1 %v2798_v21  ;;  %v2882_v20 = vld [vmem:[%s3423_s14 + $0x344] ss:$8 sps:$4 sm:$0xff]  }
  0xf8   : >> { %1237 = vmatprep.subr.bf16.mxu0 %v2803_v22  ;;  %1381 = vmatprep.subr.bf16.mxu1 %v2806_v23  ;;  %v2885_v21 = vld [vmem:[%s3423_s14 + $0x3c4] ss:$8 sps:$4 sm:$0xff]   ;;  %v2880_v22 = vld [vmem:[%s3423_s14 + $0x340] ss:$8 sps:$4 sm:$0xff]  }
  0xf9   : >> { %v2883_v23 = vld [vmem:[%s3423_s14 + $0x3c0] ss:$8 sps:$4 sm:$0xff]  }
  0xfb   : >> { %1238 = vmatpush1.bf16.msra.mxu0 %v2801_v24  ;;  %1382 = vmatpush1.bf16.msra.mxu1 %v2804_v25  ;;  %v2518_v24 = vld [vmem:[%s3458_s25 + $0x8] sm:$0x7]  ;;  %v2888_v25 = vld [vmem:[%s3423_s14 + $0x354] ss:$8 sps:$4 sm:$0xff]  }
  0xfc   : >> { %1518 = vmatprep.subr.bf16.mxu0 %v2809_v26  ;;  %1660 = vmatprep.subr.bf16.mxu1 %v2813_v27  ;;  %v2891_v26 = vld [vmem:[%s3423_s14 + $0x3d4] ss:$8 sps:$4 sm:$0xff]   ;;  %v3570_v27 = vcombine.low %v2518_v24, %v2518_v24 }
  0xfe   : >> { %1256 = vmatmul.mubr.bf16.vlgmr.msra.gmra.mrb[4].mxu0 %v1141_v28  ;;  %1400 = vmatmul.mubr.bf16.vlgmr.msra.gmra.mrb[4].mxu1 %v2419_v30  ;;  %v2886_v28 = vld [vmem:[%s3423_s14 + $0x350] ss:$8 sps:$4 sm:$0xff]   ;;  %v2894_v30 = vld [vmem:[%s3423_s14 + $0x364] ss:$8 sps:$4 sm:$0xff]  }
  0xff   : >> { %1519 = vmatpush1.bf16.msra.mxu0 %v2807_v29  ;;  %1661 = vmatpush1.bf16.msra.mxu1 %v2811_v31  ;;  %v2889_v29 = vld [vmem:[%s3423_s14 + $0x3d0] ss:$8 sps:$4 sm:$0xff]   ;;  %v2897_v31 = vld [vmem:[%s3423_s14 + $0x3e4] ss:$8 sps:$4 sm:$0xff]  }
 0x100   : >> { %1520 = vmatprep.subr.bf16.mxu0 %v2816_v32  ;;  %1662 = vmatprep.subr.bf16.mxu1 %v2819_v33  ;;  %v1870_v32 = vshll.u32 %v3570_v27, 16  ;;  %v2892_v33 = vld [vmem:[%s3423_s14 + $0x360] ss:$8 sps:$4 sm:$0xff]  }
 0x101   : >> { %1550 = vmatprep.mubr.bf16.mxu0 %v3009_v19  ;;  %1692 = vmatprep.mubr.bf16.mxu1 %v3009_v19 }
 0x103   : >> { %1521 = vmatpush1.bf16.msra.mxu0 %v2814_v34  ;;  %1663 = vmatpush1.bf16.msra.mxu1 %v2817_v35  ;;  %v2895_v34 = vld [vmem:[%s3423_s14 + $0x3e0] ss:$8 sps:$4 sm:$0xff]   ;;  %v2900_v35 = vld [vmem:[%s3423_s14 + $0x374] ss:$8 sps:$4 sm:$0xff]  }
 0x104   : >> { %1522 = vmatprep.subr.bf16.mxu0 %v2822_v36  ;;  %1664 = vmatprep.subr.bf16.mxu1 %v2825_v37  ;;  %v2903_v36 = vld [vmem:[%s3423_s14 + $0x3f4] ss:$8 sps:$4 sm:$0xff]   ;;  %v1868_v37 = vshrl.u32 %v3570_v27, 16 }
 0x107   : >> { %1523 = vmatpush1.bf16.msra.mxu0 %v2820_v38  ;;  %1665 = vmatpush1.bf16.msra.mxu1 %v2823_v39  ;;  %v1872_v38 = vrot.slane %v1870_v32, 1  ;;  %v2898_v39 = vld [vmem:[%s3423_s14 + $0x370] ss:$8 sps:$4 sm:$0xff]  }
 0x108   : >> { %1524 = vmatprep.subr.bf16.mxu0 %v2828_v40  ;;  %1666 = vmatprep.subr.bf16.mxu1 %v2831_v41  ;;  %v2901_v40 = vld [vmem:[%s3423_s14 + $0x3f0] ss:$8 sps:$4 sm:$0xff]   ;;  %v2907_v41 = vld [vmem:[%s3423_s14 + $0x404] ss:$8 sps:$4 sm:$0xff]  }
 0x10b   : >> { %1525 = vmatpush1.bf16.msra.mxu0 %v2826_v42  ;;  %1667 = vmatpush1.bf16.msra.mxu1 %v2829_v43  ;;  %v1873_v42 = vor.u32 %v1872_v38, %v1868_v37  ;;  %v2905_v43 = vld [vmem:[%s3423_s14 + $0x400] ss:$8 sps:$4 sm:$0xff]  }
 0x10c   : >> { %1526 = vmatprep.subr.bf16.mxu0 %v2834_v44  ;;  %1668 = vmatprep.subr.bf16.mxu1 %v2837_v45  ;;  %v2910_v44 = vld [vmem:[%s3423_s14 + $0x414] ss:$8 sps:$4 sm:$0xff]   ;;  %v2908_v45 = vld [vmem:[%s3423_s14 + $0x410] ss:$8 sps:$4 sm:$0xff]  }
 0x10f   : >> { %1527 = vmatpush1.bf16.msra.mxu0 %v2832_v46  ;;  %1669 = vmatpush1.bf16.msra.mxu1 %v2835_v47  ;;  %v2913_v46 = vld [vmem:[%s3423_s14 + $0x424] ss:$8 sps:$4 sm:$0xff]   ;;  %v2911_v47 = vld [vmem:[%s3423_s14 + $0x420] ss:$8 sps:$4 sm:$0xff]  }
 0x110   : >> { %1528 = vmatprep.subr.bf16.mxu0 %v2840_v48  ;;  %1670 = vmatprep.subr.bf16.mxu1 %v2843_v49  ;;  %v2916_v48 = vld [vmem:[%s3423_s14 + $0x434] ss:$8 sps:$4 sm:$0xff]   ;;  %v2914_v49 = vld [vmem:[%s3423_s14 + $0x430] ss:$8 sps:$4 sm:$0xff]  }
 0x113   : >> { %1529 = vmatpush1.bf16.msra.mxu0 %v2838_v51  ;;  %1671 = vmatpush1.bf16.msra.mxu1 %v2841_v52  ;;  %v2917_v51 = vld [vmem:[%s3423_s14 + $0x440] ss:$8 sps:$4 sm:$0xff]   ;;  %v2922_v52 = vld [vmem:[%s3423_s14 + $0x454] ss:$8 sps:$4 sm:$0xff]  }
 0x114   : >> { %1530 = vmatprep.subr.bf16.mxu0 %v2846_v53  ;;  %1672 = vmatprep.subr.bf16.mxu1 %v2849_v54  ;;  %v2925_v53 = vld [vmem:[%s3423_s14 + $0x464] ss:$8 sps:$4 sm:$0xff]   ;;  %v2923_v54 = vld [vmem:[%s3423_s14 + $0x460] ss:$8 sps:$4 sm:$0xff]  }
 0x117   : >> { %1531 = vmatpush1.bf16.msra.mxu0 %v2844_v56  ;;  %1673 = vmatpush1.bf16.msra.mxu1 %v2847_v57  ;;  %v2926_v56 = vld [vmem:[%s3423_s14 + $0x470] ss:$8 sps:$4 sm:$0xff]   ;;  %v2015_v57 = vrot.slane %v3570_v27, 1 }
 0x118   : >> { %1532 = vmatprep.subr.bf16.mxu0 %v2852_v58  ;;  %1674 = vmatprep.subr.bf16.mxu1 %v2855_v59 }
 0x11b   : >> { %1533 = vmatpush1.bf16.msra.mxu0 %v2850_v61  ;;  %1675 = vmatpush1.bf16.msra.mxu1 %v2853_v63 }
 0x11c   : >> { %1804 = vmatprep.subr.bf16.mxu0 %v2858_v0  ;;  %1955 = vmatprep.subr.bf16.mxu1 %v2861_v1 }
 0x11e   : >> { %1551 = vmatmul.mubr.bf16.vlgmr.msra.gmra.mrb[8].mxu0 %v1436_v2  ;;  %1693 = vmatmul.mubr.bf16.vlgmr.msra.gmra.mrb[8].mxu1 %v1578_v3 }
 0x11f   : >> { %1805 = vmatpush1.bf16.msra.mxu0 %v2856_v4  ;;  %1956 = vmatpush1.bf16.msra.mxu1 %v2859_v5 }
 0x120   : >> { %1806 = vmatprep.subr.bf16.mxu0 %v2864_v6  ;;  %1957 = vmatprep.subr.bf16.mxu1 %v2867_v7 }
 0x121   : >> { %1836 = vmatprep.mubr.bf16.mxu0 %v3009_v19  ;;  %1987 = vmatprep.mubr.bf16.mxu1 %v3009_v19 }
 0x123   : >> { %1807 = vmatpush1.bf16.msra.mxu0 %v2862_v8  ;;  %1958 = vmatpush1.bf16.msra.mxu1 %v2865_v9 }
 0x124   : >> { %1808 = vmatprep.subr.bf16.mxu0 %v2870_v10  ;;  %1959 = vmatprep.subr.bf16.mxu1 %v2873_v11 }
 0x127   : >> { %1809 = vmatpush1.bf16.msra.mxu0 %v2868_v12  ;;  %1960 = vmatpush1.bf16.msra.mxu1 %v2871_v13 }
 0x128   : >> { %1810 = vmatprep.subr.bf16.mxu0 %v2876_v14  ;;  %1961 = vmatprep.subr.bf16.mxu1 %v2879_v15 }
 0x12b   : >> { %1811 = vmatpush1.bf16.msra.mxu0 %v2874_v17  ;;  %1962 = vmatpush1.bf16.msra.mxu1 %v2877_v18 }
 0x12c   : >> { %1812 = vmatprep.subr.bf16.mxu0 %v2882_v20  ;;  %1963 = vmatprep.subr.bf16.mxu1 %v2885_v21 }
 0x12f   : >> { %1813 = vmatpush1.bf16.msra.mxu0 %v2880_v22  ;;  %1964 = vmatpush1.bf16.msra.mxu1 %v2883_v23 }
 0x130   : >> { %1814 = vmatprep.subr.bf16.mxu0 %v2888_v25  ;;  %1965 = vmatprep.subr.bf16.mxu1 %v2891_v26 }
 0x133   : >> { %1815 = vmatpush1.bf16.msra.mxu0 %v2886_v28  ;;  %1966 = vmatpush1.bf16.msra.mxu1 %v2889_v29 }
 0x134   : >> { %1816 = vmatprep.subr.bf16.mxu0 %v2894_v30  ;;  %1967 = vmatprep.subr.bf16.mxu1 %v2897_v31 }
 0x137   : >> { %1817 = vmatpush1.bf16.msra.mxu0 %v2892_v33  ;;  %1968 = vmatpush1.bf16.msra.mxu1 %v2895_v34 }
 0x138   : >> { %1818 = vmatprep.subr.bf16.mxu0 %v2900_v35  ;;  %1969 = vmatprep.subr.bf16.mxu1 %v2903_v36 }
 0x13b   : >> { %1819 = vmatpush1.bf16.msra.mxu0 %v2898_v39  ;;  %1970 = vmatpush1.bf16.msra.mxu1 %v2901_v40 }
 0x13c   : >> { %2097 = vmatprep.subr.bf16.mxu0 %v2907_v41 }
 0x13e   : >> { %1837 = vmatmul.mubr.bf16.vlgmr.msra.gmra.mrb[12].mxu0 %v2518_v24  ;;  %1988 = vmatmul.mubr.bf16.vlgmr.msra.gmra.mrb[12].mxu1 %v1873_v42  ;;  %v2141_v42 = vlaneseq }
 0x13f   : >> { %2098 = vmatpush1.bf16.msra.mxu0 %v2905_v43  ;;  %2129 = vmatprep.mubr.bf16.mxu0 %v3009_v19  ;;  %v2920_v19 = vld [vmem:[%s3423_s14 + $0x450] ss:$8 sps:$4 sm:$0xff]  }
 0x140   : >> { %2099 = vmatprep.subr.bf16.mxu0 %v2910_v44  ;;  %v2142_v43 = vshrl.u32 %v2141_v42, 7 }
 0x142   : >> { %v2143_v44 = vsub.s32 0, %v2142_v43 }
 0x143   : >> { %2100 = vmatpush1.bf16.msra.mxu0 %v2908_v45  ;;  %v2147_v45 = vsub.s32 1, %v2142_v43 }
 0x144   : >> { %2101 = vmatprep.subr.bf16.mxu0 %v2913_v46  ;;  %v2144_v46 = vrot.slane %v3421_v16, %v2143_v44 }
 0x147   : >> { %2102 = vmatpush1.bf16.msra.mxu0 %v2911_v47 }
 0x148   : >> { %2103 = vmatprep.subr.bf16.mxu0 %v2916_v48  ;;  %v2148_v48 = vrot.slane %v3421_v16, %v2147_v45 }
 0x14b   : >> { %2104 = vmatpush1.bf16.msra.mxu0 %v2914_v49 }
 0x14c   : >> { %2105 = vmatprep.subr.bf16.mxu0 %v2919_v50 }
 0x14f   : >> { %2106 = vmatpush1.bf16.msra.mxu0 %v2917_v51 }
 0x150   : >> { %2107 = vmatprep.subr.bf16.mxu0 %v2922_v52 }
 0x153   : >> { %2108 = vmatpush1.bf16.msra.mxu0 %v2920_v19 }
 0x154   : >> { %2109 = vmatprep.subr.bf16.mxu0 %v2925_v53 }
 0x157   : >> { %2110 = vmatpush1.bf16.msra.mxu0 %v2923_v54 }
 0x158   : >> { %2111 = vmatprep.subr.bf16.mxu0 %v2928_v55 }
 0x15b   : >> { %2112 = vmatpush1.bf16.msra.mxu0 %v2926_v56 }
 0x15e   : >> { %2130 = vmatmul.mubr.bf16.vlgmr.msra.gmra.mrb[16].mxu0 %v2015_v57 }
 0x1b1   : >> { %v996_v58 = vpop.f32.mrb[0].mxu0  ;;  %v1117_v59 = vpop.f32.mrb[0].mxu1 }
 0x1b2   : >> { %v1118_v60 = vadd.f32 %v1117_v59, %v996_v58  ;;  %v998_v61 = vpop.f32.mrb[1].mxu0  ;;  %v1119_v62 = vpop.f32.mrb[1].mxu1 }
 0x1b3   : >> { %v1120_v63 = vadd.f32 %v1119_v62, %v998_v61  ;;  %v1000_v0 = vpop.f32.mrb[2].mxu0  ;;  %v1121_v1 = vpop.f32.mrb[2].mxu1 }
 0x1b4   : >> { %v1001_v2 = vpop.f32.mrb[3].mxu0  ;;  %v1122_v3 = vpop.f32.mrb[3].mxu1 }
 0x1d1   : >> { %v1257_v4 = vpop.f32.mrb[4].mxu0  ;;  %v1401_v5 = vpop.f32.mrb[4].mxu1 }
 0x1d2   : >> { %v1264_v6 = vadd.f32 %v1257_v4, %v1118_v60  ;;  %v1259_v7 = vpop.f32.mrb[5].mxu0  ;;  %v1403_v8 = vpop.f32.mrb[5].mxu1 }
 0x1d3   : >> { %v1265_v9 = vadd.f32 %v1259_v7, %v1120_v63  ;;  %v1261_v10 = vpop.f32.mrb[6].mxu0  ;;  %v1405_v11 = vpop.f32.mrb[6].mxu1 }
 0x1d4   : >> { %v1408_v12 = vadd.f32 %v1401_v5, %v1264_v6  ;;  %v1262_v13 = vpop.f32.mrb[7].mxu0  ;;  %v1406_v14 = vpop.f32.mrb[7].mxu1 }
 0x1d5   : >> { %v1409_v15 = vadd.f32 %v1403_v8, %v1265_v9 }
 0x1f1   : >> { %v1552_v17 = vpop.f32.mrb[8].mxu0  ;;  %v1694_v18 = vpop.f32.mrb[8].mxu1 }
 0x1f2   : >> { %v1559_v20 = vadd.f32 %v1552_v17, %v1408_v12  ;;  %v1554_v21 = vpop.f32.mrb[9].mxu0  ;;  %v1696_v22 = vpop.f32.mrb[9].mxu1 }
 0x1f3   : >> { %v1560_v23 = vadd.f32 %v1554_v21, %v1409_v15  ;;  %v1556_v24 = vpop.f32.mrb[10].mxu0  ;;  %v1698_v25 = vpop.f32.mrb[10].mxu1 }
 0x1f4   : >> { %v1701_v26 = vadd.f32 %v1694_v18, %v1559_v20  ;;  %v1557_v27 = vpop.f32.mrb[11].mxu0  ;;  %v1699_v28 = vpop.f32.mrb[11].mxu1 }
 0x1f5   : >> { %v1702_v29 = vadd.f32 %v1696_v22, %v1560_v23 }
 0x211   : >> { %v1838_v30 = vpop.f32.mrb[12].mxu0  ;;  %v1989_v31 = vpop.f32.mrb[12].mxu1 }
 0x212   : >> { %v1845_v32 = vadd.f32 %v1838_v30, %v1701_v26  ;;  %v1840_v33 = vpop.f32.mrb[13].mxu0  ;;  %v1991_v34 = vpop.f32.mrb[13].mxu1 }
 0x213   : >> { %v1846_v35 = vadd.f32 %v1840_v33, %v1702_v29  ;;  %v1842_v36 = vpop.f32.mrb[14].mxu0  ;;  %v1993_v37 = vpop.f32.mrb[14].mxu1 }
 0x214   : >> { %v1996_v38 = vadd.f32 %v1989_v31, %v1845_v32  ;;  %v1843_v39 = vpop.f32.mrb[15].mxu0  ;;  %v1994_v40 = vpop.f32.mrb[15].mxu1 }
 0x215   : >> { %v1997_v41 = vadd.f32 %v1991_v34, %v1846_v35 }
 0x231   : >> { %v2131_v47 = vpop.f32.mrb[16].mxu0 }
 0x232   : >> { %v2138_v49 = vadd.f32 %v2131_v47, %v1996_v38  ;;  %v2133_v50 = vpop.f32.mrb[17].mxu0 }
 0x233   : >> { %v2139_v51 = vadd.f32 %v2133_v50, %v1997_v41  ;;  %v2135_v52 = vpop.f32.mrb[18].mxu0 }
 0x234   : >> { %v2151_v19 = vadd.f32 %v2144_v46, %v2138_v49  ;;  %v2136_v53 = vpop.f32.mrb[19].mxu0 }
 0x235   : >> { %v2152_v54 = vadd.f32 %v2148_v48, %v2139_v51  ;;  %833 = sbr.rel (!%p831_p2) target bundleno = 188 (0xbc), region = 168 }
 0x236   : >> { %v2153_v55 = vmax.f32 %v2151_v19, 0.0 }
 0x237   : >> { %v2154_v56 = vmax.f32 %v2152_v54, 0.0 }
 0x239   : >> { %v2157_v57 = vcombine.low %v2153_v55, %v2154_v56 }
 0x23b   : >> { %2162 = vst [vmem:[%s2161_s29] sm:$0xff] %v2157_v57 }
 0x23c   : > { %2169 = sbr.rel (!%p3097_p9) target bundleno = 581 (0x245), region = 81  ;;  %s2620_s5 = sshll.u32 (%p3097_p9), %s2991_s17, 5 }
 0x23d   : > { %s2172_s6 = sadd.s32 (%p3097_p9), %s2620_s5, %s3408_s28 }
 0x23e   : > { %s2621_s7 = sshll.u32 (%p3097_p9), %s2172_s6, 2 }
 0x23f   : > { %s2174_s11 = scalar_lea.vmem (%p3097_p9), %s3650_s3, %s2621_s7 }
 0x242   : > { %v2208_v58 = vld [vmem:[%s3425_s16] sm:$0xff] (%p3097_p9)  ;;  %v2210_v59 = vld [vmem:[%s3425_s16 + $0x8] sm:$0xff] (%p3097_p9)  ;;  %v2212_v60 = vld [vmem:[%s3425_s16 + $0x10] sm:$0xff] (%p3097_p9) }
 0x243   : > { %v2214_v61 = vld [vmem:[%s3425_s16 + $0x18] sm:$0xff]  ;;  %2209 = vst [vmem:[%s2174_s11] sm:$0xff] %v2208_v58  ;;  %2211 = vst [vmem:[%s2174_s11 + $0x20] sm:$0xff] %v2210_v59 }
 0x244   : > { %2213 = vst [vmem:[%s2174_s11 + $0x40] sm:$0xff] %v2212_v60  ;;  %2215 = vst [vmem:[%s2174_s11 + $0x60] sm:$0xff] %v2214_v61 }
 0x245 PF: > { %s13_s20 = sadd.s32 1, %s3003_s20   ;;  %s3652_s12 = smov %s2975_s13 }
 0x246   : > { %p10_p3 = scmp.ge.s32.totalorder %s13_s20, 10   ;;  %s3653_s13 = smov %s3102_s4 }
 0x247   : > { %s3654_s14 = smov %s2983_s15  ;;  %s3655_s15 = smov %s3091_s27 }
 0x248   : > { %s3656_s16 = smov %s2995_s18  ;;  %s3657_s17 = smov %s2999_s19 }
 0x249   : > { %s3658_s18 = smov %s3661_s22  ;;  %s3659_s19 = smov %s3665_s23 }
 0x24a   :  { %12 = sbr.rel (!%p10_p3) target bundleno = 5 (0x5), region = 179 }

// kernel: xyznet_forward.7
= control target key start
LH: loop header
LB: loop body
LE: loop exit
PB: predicated region body
PF: predicated region fallthrough
CT: control target
= control target key end

     0   :  { %s2929_s21 = smov 0   ;;  %s2931_s22 = smov 0   ;;  %s3479_s0 = inlined_call_operand.vmem [shape: bf16[2,16,3], index: 0, kind: input, shape index: {}]   ;;  %s3480_s1 = inlined_call_operand.vmem [shape: bf16[2,16,1024], index: 1, kind: input, shape index: {}]   ;;  %s3481_s2 = inlined_call_operand.vmem [shape: bf16[3,128], index: 2, kind: input, shape index: {}]   ;;  %s3482_s3 = inlined_call_operand.vmem [shape: bf16[1024,128], index: 3, kind: input, shape index: {}]   ;;  %s3483_s4 = inlined_call_operand.vmem [shape: bf16[128,128], index: 4, kind: input, shape index: {}]   ;;  %s3484_s5 = inlined_call_operand.vmem [shape: bf16[128,256], index: 5, kind: input, shape index: {}]   ;;  %s3485_s6 = inlined_call_operand.vmem [shape: bf16[256,512], index: 6, kind: input, shape index: {}]   ;;  %s3486_s7 = inlined_call_operand.vmem [shape: f32[1,128], index: 7, kind: input, shape index: {}]   ;;  %s3487_s8 = inlined_call_operand.vmem [shape: f32[1,128], index: 8, kind: input, shape index: {}]   ;;  %s3488_s9 = inlined_call_operand.vmem [shape: f32[1,256], index: 9, kind: input, shape index: {}]   ;;  %s3489_s10 = inlined_call_operand.vmem [shape: f32[1,512], index: 10, kind: input, shape index: {}]   ;;  %s3490_s11 = inlined_call_operand.vmem [shape: f32[2,16,512], index: 11, kind: output, shape index: {0}]   ;;  %s3491_s12 = inlined_call_operand.vmem [shape: f32[2,1,512], index: 12, kind: output, shape index: {1}]  }
   0x1   :  { %s2933_s23 = smov 0  }
   0x2 LB: > { %s35_s24 = sadd.s32 1, %s2852_s22  ;;  %p2309_p0 = scmp.ge.s32.totalorder %s2856_s23, 1  ;;  %s2856_s23 = sphi %s2933_s23, %s23_s23   ;;  %s2852_s22 = sphi %s2931_s22, %s3495_s22   ;;  %s2848_s21 = sphi %s2929_s21, %s3494_s21  }
   0x3   : > { %p37_p1 = scmp.ge.s32.totalorder %s35_s24, 2  ;;  %p404_p2 = scmp.lt.s32.totalorder %s2856_s23, 3 }
   0x5   : > { %s3497_s24 = smov (%p37_p1, %s35_s24), 0  ;;  %p405_p3 = pnand %p2309_p0, %p404_p2 }
   0x6   : > { %v2641_v0 = vld [vmem:[%s3482_s3 + $0x40] sm:$0xff] (!%p405_p3)   ;;  %v2645_v4 = vld [vmem:[%s3482_s3 + $0x48] sm:$0xff] (!%p405_p3)   ;;  %v2649_v8 = vld [vmem:[%s3482_s3 + $0x50] sm:$0xff] (!%p405_p3)   ;;  %p470_p4 = scmp.lt.s32.totalorder (!%p405_p3), %s2848_s21, 1  ;;  %vm1242_vm0 = vcmask (!%p405_p3), 1040384   ;;  %vm1243_vm1 = vcmask (!%p405_p3), 1041408  }
   0x7   : > { %408 = sbr.rel (%p405_p3) target bundleno = 996 (0x3e4), region = 64  ;;  %v2642_v1 = vld [vmem:[%s3482_s3 + $0xc0] sm:$0xff] (!%p405_p3)   ;;  %2486 = vmatprep.subr.bf16.mxu0 (!%p405_p3), %v2641_v0  ;;  %v2646_v5 = vld [vmem:[%s3482_s3 + $0xc8] sm:$0xff] (!%p405_p3)   ;;  %v2650_v9 = vld [vmem:[%s3482_s3 + $0xd0] sm:$0xff] (!%p405_p3)   ;;  %vm2860_vm2 = vmmov (!%p405_p3), 0   ;;  %vm1238_vm3 = vcmask (!%p405_p3), 23552  }
   0x8   : > { %v2643_v2 = vld [vmem:[%s3482_s3] sm:$0xff] (!%p405_p3)   ;;  %2508 = vmatprep.subr.bf16.mxu1 (!%p405_p3), %v2642_v1  ;;  %v2647_v6 = vld [vmem:[%s3482_s3 + $0x8] sm:$0xff] (!%p405_p3)   ;;  %v2651_v10 = vld [vmem:[%s3482_s3 + $0x10] sm:$0xff] (!%p405_p3)  }
   0x9   : > { %v2644_v3 = vld [vmem:[%s3482_s3 + $0x80] sm:$0xff] (!%p405_p3)   ;;  %2487 = vmatpush3.bf16.msra.mxu0 (!%p405_p3), %v2643_v2  ;;  %v2648_v7 = vld [vmem:[%s3482_s3 + $0x88] sm:$0xff] (!%p405_p3)   ;;  %v2652_v11 = vld [vmem:[%s3482_s3 + $0x90] sm:$0xff] (!%p405_p3)  }
   0xa   : > { %2509 = vmatpush3.bf16.msra.mxu1 (!%p405_p3), %v2644_v3  ;;  %2488 = vmatprep.subr.bf16.mxu0 (!%p405_p3), %v2645_v4  ;;  %v2653_v12 = vld [vmem:[%s3482_s3 + $0x58] sm:$0xff] (!%p405_p3)   ;;  %v2657_v16 = vld [vmem:[%s3482_s3 + $0x60] sm:$0xff] (!%p405_p3)   ;;  %v2661_v20 = vld [vmem:[%s3482_s3 + $0x68] sm:$0xff] (!%p405_p3)   ;;  %v2858_v4 = vmov (!%p405_p3), 65535  }
   0xb   : > { %2510 = vmatprep.subr.bf16.mxu1 (!%p405_p3), %v2646_v5  ;;  %v2654_v13 = vld [vmem:[%s3482_s3 + $0xd8] sm:$0xff] (!%p405_p3)   ;;  %v2658_v17 = vld [vmem:[%s3482_s3 + $0xe0] sm:$0xff] (!%p405_p3)   ;;  %v2662_v21 = vld [vmem:[%s3482_s3 + $0xe8] sm:$0xff] (!%p405_p3)   ;;  %v1244_v5 = vsel (!%p405_p3), %vm1242_vm0, 4294967295, %v2858_v4 }
   0xc   : > { %v2655_v14 = vld [vmem:[%s3482_s3 + $0x18] sm:$0xff] (!%p405_p3)   ;;  %v2659_v18 = vld [vmem:[%s3482_s3 + $0x20] sm:$0xff] (!%p405_p3)   ;;  %v2663_v22 = vld [vmem:[%s3482_s3 + $0x28] sm:$0xff] (!%p405_p3)  }
   0xd   : > { %2489 = vmatpush3.bf16.msra.mxu0 (!%p405_p3), %v2647_v6  ;;  %v2656_v15 = vld [vmem:[%s3482_s3 + $0x98] sm:$0xff] (!%p405_p3)   ;;  %v2660_v19 = vld [vmem:[%s3482_s3 + $0xa0] sm:$0xff] (!%p405_p3)   ;;  %v2664_v23 = vld [vmem:[%s3482_s3 + $0xa8] sm:$0xff] (!%p405_p3)  }
   0xe   : > { %2511 = vmatpush3.bf16.msra.mxu1 %v2648_v7  ;;  %2490 = vmatprep.subr.bf16.mxu0 %v2649_v8  ;;  %s3499_s21 = smov (!%p470_p4, %s2848_s21), 1  ;;  %v2665_v24 = vld [vmem:[%s3482_s3 + $0x70] sm:$0xff]   ;;  %v2669_v28 = vld [vmem:[%s3482_s3 + $0x78] sm:$0xff]   ;;  %v2673_v40 = vld [vmem:[%s3482_s3 + $0x140] sm:$0xff]  }
   0xf   : > { %2512 = vmatprep.subr.bf16.mxu1 %v2650_v9  ;;  %v2666_v25 = vld [vmem:[%s3482_s3 + $0xf0] sm:$0xff]   ;;  %s2484_s19 = sshll.u32 %s3499_s21, 6  ;;  %v2670_v29 = vld [vmem:[%s3482_s3 + $0xf8] sm:$0xff]   ;;  %v2674_v41 = vld [vmem:[%s3482_s3 + $0x100] sm:$0xff]   ;;  %s2483_s20 = sshll.u32 %s3499_s21, 3  ;;  %v1245_v9 = vsel %vm1243_vm1, %v1244_v5, 0 }
  0x10   : > { %v2667_v26 = vld [vmem:[%s3482_s3 + $0x30] sm:$0xff]   ;;  %s3049_s14 = scalar_lea.vmem %s3480_s1, %s2484_s19  ;;  %v2671_v30 = vld [vmem:[%s3482_s3 + $0x38] sm:$0xff]   ;;  %v2675_v42 = vld [vmem:[%s3482_s3 + $0x1c0] sm:$0xff]   ;;  %s477_s16 = scalar_lea.vmem %s3479_s0, %s2483_s20 }
  0x11   : > { %2491 = vmatpush3.bf16.msra.mxu0 %v2651_v10  ;;  %v2668_v27 = vld [vmem:[%s3482_s3 + $0xb0] sm:$0xff]   ;;  %v2672_v31 = vld [vmem:[%s3482_s3 + $0xb8] sm:$0xff]   ;;  %v509_v32 = vld [vmem:[%s3049_s14] sm:$0xff]  ;;  %s499_s25 = scalar_lea.vmem %s3490_s11, %s2484_s19  ;;  %s2316_s19 = sshll.u32 %s3499_s21, 2 }
  0x12   : > { %2513 = vmatpush3.bf16.msra.mxu1 %v2652_v11  ;;  %2492 = vmatprep.subr.bf16.mxu0 %v2653_v12  ;;  %v513_v33 = vld [vmem:[%s3049_s14 + $0x20] sm:$0xff]  ;;  %v510_v34 = vld [vmem:[%s3049_s14 + $0x8] sm:$0xff]  ;;  %v2681_v48 = vld [vmem:[%s3482_s3 + $0x150] sm:$0xff]   ;;  %s504_s28 = scalar_lea.vmem %s3491_s12, %s2316_s19 }
  0x13   : > { %2514 = vmatprep.subr.bf16.mxu1 %v2654_v13  ;;  %v2317_v35 = vcombine.low %v509_v32, %v513_v33  ;;  %v2318_v36 = vcombine.high %v509_v32, %v513_v33  ;;  %v514_v37 = vld [vmem:[%s3049_s14 + $0x28] sm:$0xff]  ;;  %v2676_v43 = vld [vmem:[%s3482_s3 + $0x180] sm:$0xff]   ;;  %v2682_v49 = vld [vmem:[%s3482_s3 + $0x110] sm:$0xff]  }
  0x14   : > { %v2319_v38 = vcombine.low %v510_v34, %v514_v37  ;;  %v2320_v39 = vcombine.high %v510_v34, %v514_v37  ;;  %v2677_v44 = vld [vmem:[%s3482_s3 + $0x148] sm:$0xff]   ;;  %v2683_v50 = vld [vmem:[%s3482_s3 + $0x1d0] sm:$0xff]   ;;  %v2685_v52 = vld [vmem:[%s3482_s3 + $0x158] sm:$0xff]  }
  0x15   : > { %2493 = vmatpush3.bf16.msra.mxu0 %v2655_v14  ;;  %1101 = vmatprep.mubr.bf16.mxu0 %v2318_v36  ;;  %v2678_v45 = vld [vmem:[%s3482_s3 + $0x108] sm:$0xff]   ;;  %v2684_v51 = vld [vmem:[%s3482_s3 + $0x190] sm:$0xff]   ;;  %v2686_v53 = vld [vmem:[%s3482_s3 + $0x118] sm:$0xff]  }
  0x16   : > { %2515 = vmatpush3.bf16.msra.mxu1 %v2656_v15  ;;  %2494 = vmatprep.subr.bf16.mxu0 %v2657_v16  ;;  %v2679_v46 = vld [vmem:[%s3482_s3 + $0x1c8] sm:$0xff]   ;;  %v2687_v54 = vld [vmem:[%s3482_s3 + $0x1d8] sm:$0xff]   ;;  %v2689_v56 = vld [vmem:[%s3482_s3 + $0x160] sm:$0xff]  }
  0x17   : > { %2516 = vmatprep.subr.bf16.mxu1 %v2658_v17  ;;  %1142 = vmatprep.mubr.bf16.mxu1 %v2320_v39  ;;  %v2680_v47 = vld [vmem:[%s3482_s3 + $0x188] sm:$0xff]   ;;  %v2688_v55 = vld [vmem:[%s3482_s3 + $0x198] sm:$0xff]   ;;  %v2690_v57 = vld [vmem:[%s3482_s3 + $0x120] sm:$0xff]  }
  0x18   : > { %v2691_v58 = vld [vmem:[%s3482_s3 + $0x1e0] sm:$0xff]   ;;  %v2693_v60 = vld [vmem:[%s3482_s3 + $0x168] sm:$0xff]   ;;  %v2697_v0 = vld [vmem:[%s3482_s3 + $0x170] sm:$0xff]  }
  0x19   : > { %2495 = vmatpush3.bf16.msra.mxu0 %v2659_v18  ;;  %v2692_v59 = vld [vmem:[%s3482_s3 + $0x1a0] sm:$0xff]   ;;  %v2694_v61 = vld [vmem:[%s3482_s3 + $0x128] sm:$0xff]   ;;  %v2698_v1 = vld [vmem:[%s3482_s3 + $0x130] sm:$0xff]  }
  0x1a   : > { %2517 = vmatpush3.bf16.msra.mxu1 %v2660_v19  ;;  %2496 = vmatprep.subr.bf16.mxu0 %v2661_v20  ;;  %v2695_v62 = vld [vmem:[%s3482_s3 + $0x1e8] sm:$0xff]   ;;  %v2699_v2 = vld [vmem:[%s3482_s3 + $0x1f0] sm:$0xff]   ;;  %v2701_v6 = vld [vmem:[%s3482_s3 + $0x178] sm:$0xff]   ;;  %v2859_v20 = vmov 0.0  }
  0x1b   : > { %2518 = vmatprep.subr.bf16.mxu1 %v2662_v21  ;;  %v2696_v63 = vld [vmem:[%s3482_s3 + $0x1a8] sm:$0xff]   ;;  %v2700_v3 = vld [vmem:[%s3482_s3 + $0x1b0] sm:$0xff]   ;;  %v2702_v7 = vld [vmem:[%s3482_s3 + $0x138] sm:$0xff]  }
  0x1c   : > { %v2703_v8 = vld [vmem:[%s3482_s3 + $0x1f8] sm:$0xff]   ;;  %v511_v11 = vld [vmem:[%s3049_s14 + $0x10] sm:$0xff]  ;;  %v508_v17 = vld [vmem:[%s3481_s2] sm:$0x3] }
  0x1d   : > { %2497 = vmatpush3.bf16.msra.mxu0 %v2663_v22  ;;  %v2704_v10 = vld [vmem:[%s3482_s3 + $0x1b8] sm:$0xff]   ;;  %v515_v12 = vld [vmem:[%s3049_s14 + $0x30] sm:$0xff]  ;;  %v1247_v21 = vand.u32 %v1245_v9, %v508_v17  ;;  %v2705_v22 = vld [vmem:[%s477_s16] sm:$0xff]  }
  0x1e   : > { %2519 = vmatpush3.bf16.msra.mxu1 %v2664_v23  ;;  %2498 = vmatprep.subr.bf16.mxu0 %v2665_v24  ;;  %v2321_v13 = vcombine.low %v511_v11, %v515_v12  ;;  %v2322_v14 = vcombine.high %v511_v11, %v515_v12  ;;  %v512_v15 = vld [vmem:[%s3049_s14 + $0x18] sm:$0xff]  ;;  %v2706_v23 = vld [vmem:[%s3483_s4] sm:$0xff]   ;;  %v2707_v24 = vld [vmem:[%s3483_s4 + $0x8] sm:$0xff]  }
  0x1f   : > { %2520 = vmatprep.subr.bf16.mxu1 %v2666_v25  ;;  %v516_v16 = vld [vmem:[%s3049_s14 + $0x38] sm:$0xff]  ;;  %v2708_v25 = vld [vmem:[%s3483_s4 + $0x10] sm:$0xff]   ;;  %v2716_v32 = vld [vmem:[%s3484_s5 + $0x4] ss:$8 sps:$4 sm:$0xff]  }
  0x20   : > { %v2323_v18 = vcombine.low %v512_v15, %v516_v16  ;;  %v2324_v19 = vcombine.high %v512_v15, %v516_v16  ;;  %v2719_v33 = vld [vmem:[%s3484_s5 + $0x14] ss:$8 sps:$4 sm:$0xff]   ;;  %v2717_v34 = vld [vmem:[%s3484_s5 + $0x10] ss:$8 sps:$4 sm:$0xff]   ;;  %v2720_v36 = vld [vmem:[%s3484_s5 + $0x20] ss:$8 sps:$4 sm:$0xff]  }
  0x21   : > { %2499 = vmatpush3.bf16.msra.mxu0 %v2667_v26  ;;  %v2709_v26 = vld [vmem:[%s3483_s4 + $0x18] sm:$0xff]   ;;  %v2728_v39 = vld [vmem:[%s3484_s5 + $0x44] ss:$8 sps:$4 sm:$0xff]   ;;  %v2391_v9 = vld [vmem:[%s3486_s7] ss:$0 sm:$0xff] }
  0x22   : > { %2521 = vmatpush3.bf16.msra.mxu1 %v2668_v27  ;;  %2500 = vmatprep.subr.bf16.mxu0 %v2669_v28  ;;  %v2710_v27 = vld [vmem:[%s3483_s4 + $0x20] sm:$0xff]   ;;  %v2711_v28 = vld [vmem:[%s3483_s4 + $0x28] sm:$0xff]   ;;  %v2725_v37 = vld [vmem:[%s3484_s5 + $0x34] ss:$8 sps:$4 sm:$0xff]  }
  0x23   : > { %2522 = vmatprep.subr.bf16.mxu1 %v2670_v29  ;;  %v2712_v29 = vld [vmem:[%s3483_s4 + $0x30] sm:$0xff]  }
  0x25   : > { %2501 = vmatpush3.bf16.msra.mxu0 %v2671_v30  ;;  %v2713_v30 = vld [vmem:[%s3483_s4 + $0x38] sm:$0xff]  }
  0x26   : > { %2523 = vmatpush3.bf16.msra.mxu1 %v2672_v31  ;;  %2530 = vmatprep.subr.bf16.mxu0 %v2673_v40  ;;  %v2714_v31 = vld [vmem:[%s3484_s5] ss:$8 sps:$4 sm:$0xff]  }
  0x27   : > { %2552 = vmatprep.subr.bf16.mxu1 %v2675_v42  ;;  %v2726_v40 = vld [vmem:[%s3484_s5 + $0x40] ss:$8 sps:$4 sm:$0xff]   ;;  %v2729_v42 = vld [vmem:[%s3484_s5 + $0x50] ss:$8 sps:$4 sm:$0xff]  }
  0x28   : > { %1102 = vmatmul.mubr.bf16.vlgmr.msra.gmra.mrb[0].mxu0 %v2317_v35  ;;  %v2722_v35 = vld [vmem:[%s3484_s5 + $0x24] ss:$8 sps:$4 sm:$0xff]  }
  0x29   : > { %1143 = vmatmul.mubr.bf16.vlgmr.msra.gmra.mrb[0].mxu1 %v2319_v38  ;;  %2531 = vmatpush3.bf16.msra.mxu0 %v2674_v41  ;;  %v2723_v38 = vld [vmem:[%s3484_s5 + $0x30] ss:$8 sps:$4 sm:$0xff]   ;;  %v2731_v41 = vld [vmem:[%s3484_s5 + $0x54] ss:$8 sps:$4 sm:$0xff]  }
  0x2a   : > { %2553 = vmatpush3.bf16.msra.mxu1 %v2676_v43  ;;  %2532 = vmatprep.subr.bf16.mxu0 %v2677_v44 }
  0x2b   : > { %2554 = vmatprep.subr.bf16.mxu1 %v2679_v46  ;;  %1183 = vmatprep.mubr.bf16.mxu0 %v2322_v14 }
  0x2c   : > { %1224 = vmatprep.mubr.bf16.mxu1 %v2324_v19 }
  0x2d   : > { %2533 = vmatpush3.bf16.msra.mxu0 %v2678_v45 }
  0x2e   : > { %2555 = vmatpush3.bf16.msra.mxu1 %v2680_v47  ;;  %2534 = vmatprep.subr.bf16.mxu0 %v2681_v48 }
  0x2f   : > { %2556 = vmatprep.subr.bf16.mxu1 %v2683_v50 }
  0x31   : > { %2535 = vmatpush3.bf16.msra.mxu0 %v2682_v49 }
  0x32   : > { %2557 = vmatpush3.bf16.msra.mxu1 %v2684_v51  ;;  %2536 = vmatprep.subr.bf16.mxu0 %v2685_v52 }
  0x33   : > { %2558 = vmatprep.subr.bf16.mxu1 %v2687_v54 }
  0x35   : > { %2537 = vmatpush3.bf16.msra.mxu0 %v2686_v53 }
  0x36   : > { %2559 = vmatpush3.bf16.msra.mxu1 %v2688_v55  ;;  %2538 = vmatprep.subr.bf16.mxu0 %v2689_v56 }
  0x37   : > { %2560 = vmatprep.subr.bf16.mxu1 %v2691_v58 }
  0x39   : > { %2539 = vmatpush3.bf16.msra.mxu0 %v2690_v57 }
  0x3a   : > { %2561 = vmatpush3.bf16.msra.mxu1 %v2692_v59  ;;  %2540 = vmatprep.subr.bf16.mxu0 %v2693_v60 }
  0x3b   : > { %2562 = vmatprep.subr.bf16.mxu1 %v2695_v62 }
  0x3d   : > { %2541 = vmatpush3.bf16.msra.mxu0 %v2694_v61 }
  0x3e   : > { %2563 = vmatpush3.bf16.msra.mxu1 %v2696_v63  ;;  %2542 = vmatprep.subr.bf16.mxu0 %v2697_v0 }
  0x3f   : > { %2564 = vmatprep.subr.bf16.mxu1 %v2699_v2 }
  0x41   : > { %2543 = vmatpush3.bf16.msra.mxu0 %v2698_v1 }
  0x42   : > { %2565 = vmatpush3.bf16.msra.mxu1 %v2700_v3  ;;  %2544 = vmatprep.subr.bf16.mxu0 %v2701_v6 }
  0x43   : > { %2566 = vmatprep.subr.bf16.mxu1 %v2703_v8 }
  0x45   : > { %2545 = vmatpush3.bf16.msra.mxu0 %v2702_v7 }
  0x46   : > { %2567 = vmatpush3.bf16.msra.mxu1 %v2704_v10  ;;  %2585 = vmatprep.subr.bf16.mxu0 %v2859_v20 }
  0x47   : > { %2591 = vmatprep.subr.bf16.mxu1 %v2859_v20 }
  0x48   : > { %1184 = vmatmul.mubr.bf16.vlgmr.msra.gmra.mrb[4].mxu0 %v2321_v13 }
  0x49   : > { %1225 = vmatmul.mubr.bf16.vlgmr.msra.gmra.mrb[4].mxu1 %v2323_v18  ;;  %2586 = vmatpush3.bf16.msra.mxu0 %v1247_v21  ;;  %v2734_v21 = vld [vmem:[%s3484_s5 + $0x64] ss:$8 sps:$4 sm:$0xff]  }
  0x4a   : > { %2587 = vmatprep.mubr.msk.bf16.mxu0 %vm2860_vm2, %v2859_v20  ;;  %2607 = vmatprep.mubr.msk.bf16.mxu1 %vm2860_vm2, %v2859_v20 }
  0x4b   : > { %2592 = vmatpush3.bf16.msra.mxu1 %v2706_v23  ;;  %1525 = vmatprep.subr.bf16.mxu0 %v2716_v32  ;;  %v2737_v23 = vld [vmem:[%s3484_s5 + $0x74] ss:$8 sps:$4 sm:$0xff]   ;;  %v2750_v32 = vld [vmem:[%s3485_s6 + $0x40] ss:$16 sps:$4 sm:$0xff]  }
  0x4c   : > { %2593 = vmatprep.subr.bf16.mxu1 %v2859_v20 }
  0x4f   : > { %2594 = vmatpush3.bf16.msra.mxu1 %v2707_v24  ;;  %v2735_v24 = vld [vmem:[%s3484_s5 + $0x70] ss:$8 sps:$4 sm:$0xff]  }
  0x50   : > { %2588 = vmatmul.mubr.msk.bf16.vlgmr.msra.gmra.mrb[8].mxu0 %vm1238_vm3, %v2705_v22  ;;  %2595 = vmatprep.subr.bf16.mxu1 %v2859_v20  ;;  %v2732_v22 = vld [vmem:[%s3484_s5 + $0x60] ss:$8 sps:$4 sm:$0xff]  }
  0x51   : > { %1526 = vmatpush1.bf16.msra.mxu0 %v2714_v31  ;;  %v2752_v31 = vld [vmem:[%s3485_s6 + $0x44] ss:$16 sps:$4 sm:$0xff]  }
  0x52   : > { %1527 = vmatprep.subr.bf16.mxu0 %v2719_v33  ;;  %v2758_v33 = vld [vmem:[%s3485_s6 + $0x64] ss:$16 sps:$4 sm:$0xff]  }
  0x53   : > { %2596 = vmatpush3.bf16.msra.mxu1 %v2708_v25  ;;  %v2861_v25 = vmov 0  }
  0x54   : > { %2597 = vmatprep.subr.bf16.mxu1 %v2859_v20  ;;  %1557 = vmatprep.mubr.bf16.mxu0 %v2861_v25  ;;  %v2813_v25 = vld [vmem:[%s3485_s6 + $0x188] ss:$16 sps:$4 sm:$0xff]  }
  0x55   : > { %1528 = vmatpush1.bf16.msra.mxu0 %v2717_v34  ;;  %v2756_v34 = vld [vmem:[%s3485_s6 + $0x60] ss:$16 sps:$4 sm:$0xff]  }
  0x56   : > { %1529 = vmatprep.subr.bf16.mxu0 %v2722_v35  ;;  %v2764_v35 = vld [vmem:[%s3485_s6 + $0x84] ss:$16 sps:$4 sm:$0xff]  }
  0x57   : > { %2598 = vmatpush3.bf16.msra.mxu1 %v2709_v26  ;;  %v2738_v26 = vld [vmem:[%s3485_s6] ss:$16 sps:$4 sm:$0xff]  }
  0x58   : > { %2599 = vmatprep.subr.bf16.mxu1 %v2859_v20 }
  0x59   : > { %1530 = vmatpush1.bf16.msra.mxu0 %v2720_v36  ;;  %v2762_v36 = vld [vmem:[%s3485_s6 + $0x80] ss:$16 sps:$4 sm:$0xff]  }
  0x5a   : > { %1531 = vmatprep.subr.bf16.mxu0 %v2725_v37  ;;  %v2770_v37 = vld [vmem:[%s3485_s6 + $0xa4] ss:$16 sps:$4 sm:$0xff]  }
  0x5b   : > { %2600 = vmatpush3.bf16.msra.mxu1 %v2710_v27  ;;  %v2740_v27 = vld [vmem:[%s3485_s6 + $0x4] ss:$16 sps:$4 sm:$0xff]  }
  0x5c   : > { %2601 = vmatprep.subr.bf16.mxu1 %v2859_v20 }
  0x5d   : > { %1532 = vmatpush1.bf16.msra.mxu0 %v2723_v38  ;;  %v2768_v38 = vld [vmem:[%s3485_s6 + $0xa0] ss:$16 sps:$4 sm:$0xff]  }
  0x5e   : > { %1533 = vmatprep.subr.bf16.mxu0 %v2728_v39  ;;  %v2776_v39 = vld [vmem:[%s3485_s6 + $0xc4] ss:$16 sps:$4 sm:$0xff]  }
  0x5f   : > { %2602 = vmatpush3.bf16.msra.mxu1 %v2711_v28  ;;  %v2743_v28 = vld [vmem:[%s3485_s6 + $0xc] ss:$16 sps:$4 sm:$0xff]  }
  0x60   : > { %2603 = vmatprep.subr.bf16.mxu1 %v2859_v20 }
  0x61   : > { %1534 = vmatpush1.bf16.msra.mxu0 %v2726_v40  ;;  %v2774_v40 = vld [vmem:[%s3485_s6 + $0xc0] ss:$16 sps:$4 sm:$0xff]  }
  0x62   : > { %1535 = vmatprep.subr.bf16.mxu0 %v2731_v41  ;;  %v2782_v41 = vld [vmem:[%s3485_s6 + $0xe4] ss:$16 sps:$4 sm:$0xff]  }
  0x63   : > { %2604 = vmatpush3.bf16.msra.mxu1 %v2712_v29  ;;  %v2746_v29 = vld [vmem:[%s3485_s6 + $0x24] ss:$16 sps:$4 sm:$0xff]  }
  0x64   : > { %2605 = vmatprep.subr.bf16.mxu1 %v2859_v20 }
  0x65   : > { %1536 = vmatpush1.bf16.msra.mxu0 %v2729_v42  ;;  %v2780_v42 = vld [vmem:[%s3485_s6 + $0xe0] ss:$16 sps:$4 sm:$0xff]  }
  0x66   : > { %1537 = vmatprep.subr.bf16.mxu0 %v2734_v21  ;;  %v2801_v21 = vld [vmem:[%s3485_s6 + $0x148] ss:$16 sps:$4 sm:$0xff]  }
  0x67   : > { %2606 = vmatpush3.bf16.msra.mxu1 %v2713_v30  ;;  %v2744_v30 = vld [vmem:[%s3485_s6 + $0x20] ss:$16 sps:$4 sm:$0xff]  }
  0x68   : > { %1980 = vmatprep.subr.bf16.mxu1 %v2740_v27  ;;  %v2819_v27 = vld [vmem:[%s3485_s6 + $0x1a8] ss:$16 sps:$4 sm:$0xff]  }
  0x69   : > { %1538 = vmatpush1.bf16.msra.mxu0 %v2732_v22  ;;  %v2809_v22 = vld [vmem:[%s3485_s6 + $0x16c] ss:$16 sps:$4 sm:$0xff]  }
  0x6a   : > { %1539 = vmatprep.subr.bf16.mxu0 %v2737_v23  ;;  %v2807_v23 = vld [vmem:[%s3485_s6 + $0x168] ss:$16 sps:$4 sm:$0xff]  }
  0x6d   : > { %1540 = vmatpush1.bf16.msra.mxu0 %v2735_v24  ;;  %v2815_v24 = vld [vmem:[%s3485_s6 + $0x18c] ss:$16 sps:$4 sm:$0xff]  }
  0x6e   : > { %2023 = vmatprep.subr.bf16.mxu0 %v2743_v28  ;;  %v1435_v28 = vlaneseq }
  0x70   : > { %vm3420_vm4 = vcmp.lt.s32.totalorder %v1435_v28, 512 }
  0xfb   : > { %v2502_v43 = vpop.f32.mrb[0].mxu0 }
  0xfc   : > { %v2524_v44 = vpop.f32.mrb[0].mxu1  ;;  %v2503_v45 = vpop.f32.mrb[1].mxu0 }
  0xfd   : > { %v2504_v46 = vadd.f32 %v2503_v45, %v2502_v43  ;;  %v2525_v47 = vpop.f32.mrb[1].mxu1  ;;  %v2505_v48 = vpop.f32.mrb[2].mxu0  ;;  %v2788_v43 = vld [vmem:[%s3485_s6 + $0x104] ss:$16 sps:$4 sm:$0xff]  }
  0xfe   : > { %v2526_v49 = vadd.f32 %v2525_v47, %v2524_v44  ;;  %v2527_v50 = vpop.f32.mrb[2].mxu1  ;;  %v2506_v51 = vpop.f32.mrb[3].mxu0  ;;  %v2786_v44 = vld [vmem:[%s3485_s6 + $0x100] ss:$16 sps:$4 sm:$0xff]   ;;  %v2794_v45 = vld [vmem:[%s3485_s6 + $0x124] ss:$16 sps:$4 sm:$0xff]  }
  0xff   : > { %v2507_v52 = vadd.f32 %v2506_v51, %v2505_v48  ;;  %v2528_v53 = vpop.f32.mrb[3].mxu1  ;;  %v2800_v47 = vld [vmem:[%s3485_s6 + $0x144] ss:$16 sps:$4 sm:$0xff]   ;;  %v2798_v48 = vld [vmem:[%s3485_s6 + $0x140] ss:$16 sps:$4 sm:$0xff]  }
 0x100   : > { %v1145_v54 = vadd.f32 %v2526_v49, %v2504_v46  ;;  %v2529_v55 = vadd.f32 %v2528_v53, %v2527_v50  ;;  %v2792_v46 = vld [vmem:[%s3485_s6 + $0x120] ss:$16 sps:$4 sm:$0xff]   ;;  %v2806_v49 = vld [vmem:[%s3485_s6 + $0x164] ss:$16 sps:$4 sm:$0xff]  }
 0x101   : > { %v2804_v50 = vld [vmem:[%s3485_s6 + $0x160] ss:$16 sps:$4 sm:$0xff]   ;;  %v2812_v51 = vld [vmem:[%s3485_s6 + $0x184] ss:$16 sps:$4 sm:$0xff]  }
 0x102   : > { %v1148_v56 = vadd.f32 %v2529_v55, %v2507_v52  ;;  %v2810_v52 = vld [vmem:[%s3485_s6 + $0x180] ss:$16 sps:$4 sm:$0xff]   ;;  %v2818_v53 = vld [vmem:[%s3485_s6 + $0x1a4] ss:$16 sps:$4 sm:$0xff]  }
 0x103   : > { %v2392_v55 = vld [vmem:[%s3487_s8] ss:$0 sm:$0xff] }
 0x11b   : > { %v2546_v57 = vpop.f32.mrb[4].mxu0 }
 0x11c   : > { %v2547_v58 = vpop.f32.mrb[5].mxu0  ;;  %v2568_v59 = vpop.f32.mrb[4].mxu1 }
 0x11d   : > { %v2548_v60 = vadd.f32 %v2547_v58, %v2546_v57  ;;  %v2549_v61 = vpop.f32.mrb[6].mxu0  ;;  %v2569_v62 = vpop.f32.mrb[5].mxu1 }
 0x11e   : > { %v2570_v63 = vadd.f32 %v2569_v62, %v2568_v59  ;;  %v2550_v0 = vpop.f32.mrb[7].mxu0  ;;  %v2571_v1 = vpop.f32.mrb[6].mxu1 }
 0x11f   : > { %v1186_v2 = vadd.f32 %v2548_v60, %v1145_v54  ;;  %v2551_v3 = vadd.f32 %v2550_v0, %v2549_v61  ;;  %v2572_v4 = vpop.f32.mrb[7].mxu1  ;;  %v2816_v54 = vld [vmem:[%s3485_s6 + $0x1a0] ss:$16 sps:$4 sm:$0xff]   ;;  %v2741_v0 = vld [vmem:[%s3485_s6 + $0x8] ss:$16 sps:$4 sm:$0xff]  }
 0x120   : > { %v2573_v5 = vadd.f32 %v2572_v4, %v2571_v1  ;;  %v2755_v4 = vld [vmem:[%s3485_s6 + $0x4c] ss:$16 sps:$4 sm:$0xff]  }
 0x121   : > { %v1189_v6 = vadd.f32 %v2551_v3, %v1148_v56  ;;  %v1227_v7 = vadd.f32 %v2570_v63, %v1186_v2  ;;  %v2749_v2 = vld [vmem:[%s3485_s6 + $0x2c] ss:$16 sps:$4 sm:$0xff]   ;;  %v2747_v3 = vld [vmem:[%s3485_s6 + $0x28] ss:$16 sps:$4 sm:$0xff]  }
 0x123   : > { %v1283_v8 = vpop.f32.mrb[8].mxu0  ;;  %v1230_v10 = vadd.f32 %v2573_v5, %v1189_v6  ;;  %v2753_v5 = vld [vmem:[%s3485_s6 + $0x48] ss:$16 sps:$4 sm:$0xff]   ;;  %v2761_v6 = vld [vmem:[%s3485_s6 + $0x6c] ss:$16 sps:$4 sm:$0xff]  }
 0x124   : > { %v1284_v11 = vadd.f32 %v1283_v8, %v1227_v7  ;;  %v2589_v12 = vpop.f32.mrb[9].mxu0  ;;  %v2759_v7 = vld [vmem:[%s3485_s6 + $0x68] ss:$16 sps:$4 sm:$0xff]   ;;  %v2767_v8 = vld [vmem:[%s3485_s6 + $0x8c] ss:$16 sps:$4 sm:$0xff]  }
 0x125   : > { %v1286_v13 = vpop.f32.mrb[10].mxu0  ;;  %v2779_v12 = vld [vmem:[%s3485_s6 + $0xcc] ss:$16 sps:$4 sm:$0xff]  }
 0x126   : > { %v1297_v14 = vadd.f32 %v2391_v9, %v1284_v11  ;;  %v1287_v15 = vadd.f32 %v1286_v13, %v1230_v10  ;;  %v2590_v16 = vpop.f32.mrb[11].mxu0  ;;  %v2773_v10 = vld [vmem:[%s3485_s6 + $0xac] ss:$16 sps:$4 sm:$0xff]   ;;  %v2771_v11 = vld [vmem:[%s3485_s6 + $0xa8] ss:$16 sps:$4 sm:$0xff]  }
 0x127   : > { %v2777_v13 = vld [vmem:[%s3485_s6 + $0xc8] ss:$16 sps:$4 sm:$0xff]   ;;  %v2791_v16 = vld [vmem:[%s3485_s6 + $0x10c] ss:$16 sps:$4 sm:$0xff]  }
 0x128   : > { %v1298_v17 = vadd.f32 %v2391_v9, %v1287_v15  ;;  %v1299_v18 = vmax.f32 %v1297_v14, 0.0  ;;  %v2765_v9 = vld [vmem:[%s3485_s6 + $0x88] ss:$16 sps:$4 sm:$0xff]   ;;  %v2785_v14 = vld [vmem:[%s3485_s6 + $0xec] ss:$16 sps:$4 sm:$0xff]  }
 0x129   : > { %v2783_v15 = vld [vmem:[%s3485_s6 + $0xe8] ss:$16 sps:$4 sm:$0xff]  }
 0x12a   : > { %v1300_v19 = vmax.f32 %v1298_v17, 0.0  ;;  %v2789_v17 = vld [vmem:[%s3485_s6 + $0x108] ss:$16 sps:$4 sm:$0xff]  }
 0x12c   : > { %v1301_v20 = vpack.c.bf16 %v1300_v19, %v1299_v18  ;;  %v2797_v18 = vld [vmem:[%s3485_s6 + $0x12c] ss:$16 sps:$4 sm:$0xff]   ;;  %v2795_v19 = vld [vmem:[%s3485_s6 + $0x128] ss:$16 sps:$4 sm:$0xff]  }
 0x12e   : > { %2608 = vmatmul.mubr.bf16.vlgmr.msra.gmra.mrb[8].mxu1 %v1301_v20  ;;  %v2803_v20 = vld [vmem:[%s3485_s6 + $0x14c] ss:$16 sps:$4 sm:$0xff]  }
 0x12f   : > { %1981 = vmatpush1.bf16.msra.mxu1 %v2738_v26  ;;  %v2821_v26 = vld [vmem:[%s3485_s6 + $0x1ac] ss:$16 sps:$4 sm:$0xff]  }
 0x130   : > { %1982 = vmatprep.subr.bf16.mxu1 %v2746_v29  ;;  %v2824_v29 = vld [vmem:[%s3485_s6 + $0x1c4] ss:$16 sps:$4 sm:$0xff]  }
 0x133   : > { %1983 = vmatpush1.bf16.msra.mxu1 %v2744_v30  ;;  %v2827_v30 = vld [vmem:[%s3485_s6 + $0x1cc] ss:$16 sps:$4 sm:$0xff]  }
 0x134   : > { %1984 = vmatprep.subr.bf16.mxu1 %v2752_v31 }
 0x137   : > { %1985 = vmatpush1.bf16.msra.mxu1 %v2750_v32  ;;  %v2822_v32 = vld [vmem:[%s3485_s6 + $0x1c0] ss:$16 sps:$4 sm:$0xff]  }
 0x138   : > { %1986 = vmatprep.subr.bf16.mxu1 %v2758_v33  ;;  %v2825_v33 = vld [vmem:[%s3485_s6 + $0x1c8] ss:$16 sps:$4 sm:$0xff]  }
 0x13b   : > { %1987 = vmatpush1.bf16.msra.mxu1 %v2756_v34  ;;  %v2862_v34 = vmov -inf  }
 0x13c   : > { %1988 = vmatprep.subr.bf16.mxu1 %v2764_v35  ;;  %2118 = vst.msk [vmem:[#allocation2] sm:$0xf] %vm3420_vm4, %v2862_v34  ;;  %v2830_v35 = vld [vmem:[%s3485_s6 + $0x1e4] ss:$16 sps:$4 sm:$0xff]  }
 0x13f   : > { %1989 = vmatpush1.bf16.msra.mxu1 %v2762_v36  ;;  %v2833_v36 = vld [vmem:[%s3485_s6 + $0x1ec] ss:$16 sps:$4 sm:$0xff]  }
 0x140   : > { %1990 = vmatprep.subr.bf16.mxu1 %v2770_v37  ;;  %v2828_v37 = vld [vmem:[%s3485_s6 + $0x1e0] ss:$16 sps:$4 sm:$0xff]  }
 0x143   : > { %1991 = vmatpush1.bf16.msra.mxu1 %v2768_v38  ;;  %v2831_v38 = vld [vmem:[%s3485_s6 + $0x1e8] ss:$16 sps:$4 sm:$0xff]  }
 0x144   : > { %1992 = vmatprep.subr.bf16.mxu1 %v2776_v39  ;;  %v3444_v39 = vshrl.u32 %v1435_v28, 7 }
 0x147   : > { %1993 = vmatpush1.bf16.msra.mxu1 %v2774_v40  ;;  %v1437_v40 = vsub.s32 0, %v3444_v39 }
 0x148   : > { %1994 = vmatprep.subr.bf16.mxu1 %v2782_v41  ;;  %v1433_v41 = vld [vmem:[%s3488_s9] sm:$0x3] }
 0x14b   : > { %1995 = vmatpush1.bf16.msra.mxu1 %v2780_v42  ;;  %v1441_v42 = vsub.s32 1, %v3444_v39 }
 0x14c   : > { %1996 = vmatprep.subr.bf16.mxu1 %v2788_v43  ;;  %v1438_v43 = vrot.slane %v1433_v41, %v1437_v40 }
 0x14f   : > { %1997 = vmatpush1.bf16.msra.mxu1 %v2786_v44  ;;  %v1442_v44 = vrot.slane %v1433_v41, %v1441_v42 }
 0x150   : > { %1998 = vmatprep.subr.bf16.mxu1 %v2794_v45 }
 0x153   : > { %1999 = vmatpush1.bf16.msra.mxu1 %v2792_v46 }
 0x154   : > { %2000 = vmatprep.subr.bf16.mxu1 %v2800_v47 }
 0x157   : > { %2001 = vmatpush1.bf16.msra.mxu1 %v2798_v48 }
 0x158   : > { %2002 = vmatprep.subr.bf16.mxu1 %v2806_v49 }
 0x15b   : > { %2003 = vmatpush1.bf16.msra.mxu1 %v2804_v50 }
 0x15c   : > { %2004 = vmatprep.subr.bf16.mxu1 %v2812_v51 }
 0x15f   : > { %2005 = vmatpush1.bf16.msra.mxu1 %v2810_v52 }
 0x160   : > { %2006 = vmatprep.subr.bf16.mxu1 %v2818_v53 }
 0x163   : > { %2007 = vmatpush1.bf16.msra.mxu1 %v2816_v54 }
 0x164   : > { %2008 = vmatprep.subr.bf16.mxu1 %v2824_v29 }
 0x167   : > { %2009 = vmatpush1.bf16.msra.mxu1 %v2822_v32 }
 0x168   : > { %2010 = vmatprep.subr.bf16.mxu1 %v2830_v35 }
 0x16b   : > { %2011 = vmatpush1.bf16.msra.mxu1 %v2828_v37 }
 0x201   : > { %v1407_v56 = vpop.f32.mrb[8].mxu1 }
 0x202   : > { %v1408_v57 = vadd.f32 %v2392_v55, %v1407_v56  ;;  %v2609_v58 = vpop.f32.mrb[9].mxu1 }
 0x203   : > { %v1410_v59 = vpop.f32.mrb[10].mxu1 }
 0x204   : > { %v1411_v60 = vadd.f32 %v2392_v55, %v1410_v59  ;;  %v2610_v61 = vpop.f32.mrb[11].mxu1  ;;  %v1414_v62 = vmax.f32 %v1408_v57, 0.0  ;;  %v1650_v59 = vsub.s32 2, %v3444_v39 }
 0x205   : > { %v1654_v61 = vsub.s32 3, %v3444_v39 }
 0x206   : > { %v1415_v63 = vmax.f32 %v1411_v60, 0.0  ;;  %v1638_v60 = vld [vmem:[%s3489_s10] sm:$0xf] }
 0x208   : > { %v1416_v1 = vpack.c.bf16 %v1415_v63, %v1414_v62  ;;  %v1643_v62 = vrot.slane %v1638_v60, %v1437_v40  ;;  %v1651_v63 = vrot.slane %v1638_v60, %v1650_v59 }
 0x20a   : > { %1558 = vmatmul.mubr.bf16.vlgmr.msra.gmra.mrb[12].mxu0 %v1416_v1  ;;  %v1655_v1 = vrot.slane %v1638_v60, %v1654_v61 }
 0x20b   : > { %2024 = vmatpush1.bf16.msra.mxu0 %v2741_v0  ;;  %v1647_v0 = vrot.slane %v1638_v60, %v1441_v42 }
 0x20c   : > { %2025 = vmatprep.subr.bf16.mxu0 %v2749_v2 }
 0x20f   : > { %2026 = vmatpush1.bf16.msra.mxu0 %v2747_v3 }
 0x210   : > { %2027 = vmatprep.subr.bf16.mxu0 %v2755_v4 }
 0x213   : > { %2028 = vmatpush1.bf16.msra.mxu0 %v2753_v5 }
 0x214   : > { %2029 = vmatprep.subr.bf16.mxu0 %v2761_v6 }
 0x217   : > { %2030 = vmatpush1.bf16.msra.mxu0 %v2759_v7 }
 0x218   : > { %2031 = vmatprep.subr.bf16.mxu0 %v2767_v8 }
 0x21b   : > { %2032 = vmatpush1.bf16.msra.mxu0 %v2765_v9 }
 0x21c   : > { %2033 = vmatprep.subr.bf16.mxu0 %v2773_v10 }
 0x21f   : > { %2034 = vmatpush1.bf16.msra.mxu0 %v2771_v11 }
 0x220   : > { %2035 = vmatprep.subr.bf16.mxu0 %v2779_v12 }
 0x223   : > { %2036 = vmatpush1.bf16.msra.mxu0 %v2777_v13 }
 0x224   : > { %2037 = vmatprep.subr.bf16.mxu0 %v2785_v14 }
 0x227   : > { %2038 = vmatpush1.bf16.msra.mxu0 %v2783_v15 }
 0x228   : > { %2039 = vmatprep.subr.bf16.mxu0 %v2791_v16 }
 0x22b   : > { %2040 = vmatpush1.bf16.msra.mxu0 %v2789_v17 }
 0x22c   : > { %2041 = vmatprep.subr.bf16.mxu0 %v2797_v18 }
 0x22f   : > { %2042 = vmatpush1.bf16.msra.mxu0 %v2795_v19 }
 0x230   : > { %2043 = vmatprep.subr.bf16.mxu0 %v2803_v20 }
 0x233   : > { %2044 = vmatpush1.bf16.msra.mxu0 %v2801_v21 }
 0x234   : > { %2045 = vmatprep.subr.bf16.mxu0 %v2809_v22 }
 0x237   : > { %2046 = vmatpush1.bf16.msra.mxu0 %v2807_v23 }
 0x238   : > { %2047 = vmatprep.subr.bf16.mxu0 %v2815_v24 }
 0x23b   : > { %2048 = vmatpush1.bf16.msra.mxu0 %v2813_v25 }
 0x23c   : > { %2049 = vmatprep.subr.bf16.mxu0 %v2821_v26 }
 0x23f   : > { %2050 = vmatpush1.bf16.msra.mxu0 %v2819_v27 }
 0x240   : > { %2051 = vmatprep.subr.bf16.mxu0 %v2827_v30 }
 0x243   : > { %2052 = vmatpush1.bf16.msra.mxu0 %v2825_v33 }
 0x244   : > { %2053 = vmatprep.subr.bf16.mxu0 %v2833_v36 }
 0x247   : > { %2054 = vmatpush1.bf16.msra.mxu0 %v2831_v38  ;;  %v2863_v38 = vmov 1966171168  }
 0x248   : > { %v2127_v40 = vunpack.c.l.s4 %v2863_v38 }
 0x2dd   : > { %v1559_v45 = vpop.f32.mrb[12].mxu0 }
 0x2de   : > { %v1560_v46 = vadd.f32 %v1559_v45, %v1438_v43  ;;  %v1561_v47 = vpop.f32.mrb[13].mxu0 }
 0x2df   : > { %v1562_v48 = vadd.f32 %v1561_v47, %v1442_v44  ;;  %v1563_v49 = vpop.f32.mrb[14].mxu0 }
 0x2e0   : > { %v1564_v50 = vadd.f32 %v1563_v49, %v1438_v43  ;;  %v1565_v51 = vpop.f32.mrb[15].mxu0  ;;  %v1568_v53 = vmax.f32 %v1560_v46, 0.0  ;;  %v2128_v49 = vunpack.c.0.s8 %v2127_v40 }
 0x2e1   : > { %v1566_v52 = vadd.f32 %v1565_v51, %v1442_v44  ;;  %v1569_v55 = vmax.f32 %v1562_v48, 0.0 }
 0x2e2   : > { %v1570_v54 = vmax.f32 %v1564_v50, 0.0 }
 0x2e3   : > { %v1571_v56 = vmax.f32 %v1566_v52, 0.0 }
 0x2e4   : > { %v1572_v57 = vpack.c.bf16 %v1570_v54, %v1568_v53 }
 0x2e5   : > { %v1573_v58 = vpack.c.bf16 %v1571_v56, %v1569_v55 }
 0x2e7   : > { %2012 = vmatprep.mubr.bf16.mxu1 %v1573_v58  ;;  %2055 = vmatprep.mubr.bf16.mxu0 %v1573_v58  ;;  %v2131_v58 = vsub.s32 %v2128_v49, %v3444_v39 }
 0x2e8   : > { %2013 = vmatmul.mubr.bf16.vlgmr.msra.gmra.mrb[12].mxu1 %v1572_v57  ;;  %2056 = vmatmul.mubr.bf16.vlgmr.msra.gmra.mrb[16].mxu0 %v1572_v57 }
 0x3bb   : > { %v2014_v2 = vpop.f32.mrb[12].mxu1  ;;  %v2057_v3 = vpop.f32.mrb[16].mxu0 }
 0x3bc   : > { %v2015_v4 = vadd.f32 %v2014_v2, %v1643_v62  ;;  %v2058_v5 = vadd.f32 %v2057_v3, %v1651_v63  ;;  %v2016_v6 = vpop.f32.mrb[13].mxu1  ;;  %v2059_v7 = vpop.f32.mrb[17].mxu0 }
 0x3bd   : > { %v2017_v8 = vadd.f32 %v2016_v6, %v1647_v0  ;;  %v2060_v9 = vadd.f32 %v2059_v7, %v1655_v1  ;;  %v2018_v10 = vpop.f32.mrb[14].mxu1  ;;  %v2061_v11 = vpop.f32.mrb[18].mxu0 }
 0x3be   : > { %v2066_v12 = vmax.f32 %v2015_v4, 0.0  ;;  %v2068_v13 = vmax.f32 %v2058_v5, 0.0  ;;  %v2019_v14 = vadd.f32 %v2018_v10, %v1643_v62  ;;  %v2062_v15 = vadd.f32 %v2061_v11, %v1651_v63  ;;  %v2020_v16 = vpop.f32.mrb[15].mxu1  ;;  %v2063_v17 = vpop.f32.mrb[19].mxu0 }
 0x3bf   : > { %v2067_v18 = vmax.f32 %v2017_v8, 0.0  ;;  %v2069_v19 = vmax.f32 %v2060_v9, 0.0  ;;  %v2021_v20 = vadd.f32 %v2020_v16, %v1647_v0  ;;  %v2064_v21 = vadd.f32 %v2063_v17, %v1655_v1  ;;  %v2119_v1 = vld [vmem:[#allocation2] sm:$0xf] }
 0x3c0   : > { %2074 = vst [vmem:[%s499_s25] sm:$0xff] %v2066_v12  ;;  %2076 = vst [vmem:[%s499_s25 + $0x10] sm:$0xff] %v2068_v13  ;;  %v2070_v22 = vmax.f32 %v2019_v14, 0.0  ;;  %v2072_v23 = vmax.f32 %v2062_v15, 0.0 }
 0x3c1   : > { %2075 = vst [vmem:[%s499_s25 + $0x8] sm:$0xff] %v2067_v18  ;;  %2077 = vst [vmem:[%s499_s25 + $0x18] sm:$0xff] %v2069_v19  ;;  %v2071_v24 = vmax.f32 %v2021_v20, 0.0  ;;  %v2073_v25 = vmax.f32 %v2064_v21, 0.0 }
 0x3c2   : > { %2078 = vst [vmem:[%s499_s25 + $0x20] sm:$0xff] %v2070_v22  ;;  %v2082_v26 = vmax.f32 %v2066_v12, %v2070_v22  ;;  %2080 = vst [vmem:[%s499_s25 + $0x30] sm:$0xff] %v2072_v23  ;;  %v2096_v27 = vmax.f32 %v2068_v13, %v2072_v23 }
 0x3c3   : > { %2079 = vst [vmem:[%s499_s25 + $0x28] sm:$0xff] %v2071_v24  ;;  %v2089_v28 = vmax.f32 %v2067_v18, %v2071_v24  ;;  %2081 = vst [vmem:[%s499_s25 + $0x38] sm:$0xff] %v2073_v25  ;;  %v2103_v29 = vmax.f32 %v2069_v19, %v2073_v25 }
 0x3c4   : > { %v2083_v30 = vrot.slane %v2082_v26, 4  ;;  %v2097_v32 = vrot.slane %v2096_v27, 4 }
 0x3c5   : > { %v2090_v33 = vrot.slane %v2089_v28, 4  ;;  %v2104_v34 = vrot.slane %v2103_v29, 4 }
 0x3c6   : > { %v2084_v35 = vmax.f32 %v2082_v26, %v2083_v30  ;;  %v2098_v36 = vmax.f32 %v2096_v27, %v2097_v32 }
 0x3c7   : > { %v2091_v37 = vmax.f32 %v2089_v28, %v2090_v33  ;;  %v2105_v41 = vmax.f32 %v2103_v29, %v2104_v34 }
 0x3c8   : > { %v2085_v42 = vrot.slane %v2084_v35, 2  ;;  %v2099_v43 = vrot.slane %v2098_v36, 2 }
 0x3c9   : > { %v2092_v44 = vrot.slane %v2091_v37, 2  ;;  %v2106_v45 = vrot.slane %v2105_v41, 2 }
 0x3ca   : > { %v2086_v46 = vmax.f32 %v2084_v35, %v2085_v42  ;;  %v2100_v47 = vmax.f32 %v2098_v36, %v2099_v43 }
 0x3cb   : > { %v2093_v48 = vmax.f32 %v2091_v37, %v2092_v44  ;;  %v2107_v50 = vmax.f32 %v2105_v41, %v2106_v45 }
 0x3cc   : > { %v2087_v51 = vrot.slane %v2086_v46, 1  ;;  %v2101_v52 = vrot.slane %v2100_v47, 1 }
 0x3cd   : > { %v2094_v53 = vrot.slane %v2093_v48, 1  ;;  %v2108_v54 = vrot.slane %v2107_v50, 1 }
 0x3ce   : > { %v2088_v55 = vmax.f32 %v2086_v46, %v2087_v51  ;;  %v2102_v56 = vmax.f32 %v2100_v47, %v2101_v52 }
 0x3cf   : > { %v2095_v57 = vmax.f32 %v2093_v48, %v2094_v53  ;;  %v2109_v59 = vmax.f32 %v2107_v50, %v2108_v54 }
 0x3d1   : > { %v2124_v60 = vcombine.low %v2088_v55, %v2095_v57  ;;  %v2125_v61 = vcombine.low %v2102_v56, %v2109_v59 }
 0x3d3   : > { %v2132_v62 = vrot.slane %v2124_v60, %v2131_v58  ;;  %v2139_v63 = vrot.slane %v2125_v61, %v2131_v58 }
 0x3d5   : > { %v2140_v0 = vcombine.low %v2132_v62, %v2139_v63 }
 0x3d7   : > { %v2147_v2 = vrot.slane %v2140_v0, %v2131_v58 }
 0x3d9   : > { %v2149_v3 = vmax.f32 %v2119_v1, %v2147_v2 }
 0x3db   : > { %2154 = vst.msk [vmem:[#allocation2] sm:$0xf] %vm3420_vm4, %v2149_v3 }
 0x3e2   : > { %v2158_v4 = vld [vmem:[#allocation2] sm:$0xf] }
 0x3e3   : > { %2159 = vst.msk [vmem:[%s504_s28] sm:$0xf] %vm3420_vm4, %v2158_v4 }
 0x3e4 PF: > { %s23_s23 = sadd.s32 1, %s2856_s23   ;;  %s3494_s21 = smov %s2852_s22 }
 0x3e5   : > { %p20_p5 = scmp.ge.s32.totalorder %s23_s23, 4   ;;  %s3495_s22 = smov %s3497_s24 }
 0x3e7   :  { %22 = sbr.rel (!%p20_p5) target bundleno = 2 (0x2), region = 117 }

</bundles_post_ra>
